<compile_context>
chip_gen: v6e
topology: v6e:2x2x1
jax: 0.10.0
libtpu: 0.0.40
codegen_flags: <defaults>
</compile_context>

<pallas_src>
import functools

import jax
import jax.numpy as jnp
from jax.experimental import pallas as pl
from jax.experimental.pallas import tpu as pltpu


# ---------------------------------------------------------------------------
# Fused Pallas kernel
# ---------------------------------------------------------------------------
def _bottleneck_kernel(x_ref, w1_ref, b1_ref, w2_ref, b2_ref, w3_ref, b3_ref,
                       o_ref, t1_ref, *, dilation, th, fuse_kw):
    # x_ref : (1, H, W, Cin) bf16  same block for every row tile of this image
    # w1_ref: (Cin, Cw) bf16, BN1 scale folded in        b1_ref: (1, Cw) f32
    # w2_ref: fuse_kw -> (3, 3*Cw, Cw) else (9, Cw, Cw)  b2_ref: (1, Cw) f32
    # w3_ref: (Cw, C4) bf16, BN3 scale folded in         b3_ref: (1, C4) f32
    # o_ref : (1, th, W, C4)    output rows [rt*th, rt*th + th)
    # t1_ref: bf16 scratch holding the zero-padded, kw-shifted conv1 output:
    #         fuse_kw -> (Hp, W, 3*Cw) (tap kw at lanes [kw*Cw, (kw+1)*Cw))
    #         else      (3, Hp, W, Cw) (tap kw at leading index kw)
    d = dilation
    rt = pl.program_id(1)
    _, H, W, Cin = x_ref.shape
    Cw = w1_ref.shape[1]
    C4 = w3_ref.shape[1]

    # ---- stage 1 (once per image): conv1 (1x1) + bn1 + relu into scratch ---
    @pl.when(rt == 0)
    def _():
        y1 = jnp.dot(x_ref[0].reshape(H * W, Cin), w1_ref[...],
                     preferred_element_type=jnp.float32)
        y1 = jnp.maximum(y1 + b1_ref[...], 0.0)
        y1 = y1.reshape(H, W, Cw).astype(t1_ref.dtype)
        if fuse_kw:
            # Border-only zeroing (instead of re-storing the whole buffer);
            # the interior is fully overwritten by the shifted stores below.
            t1_ref[:d, :, :] = jnp.zeros((d, W, 3 * Cw), t1_ref.dtype)
            t1_ref[d + H:, :, :] = jnp.zeros((d, W, 3 * Cw), t1_ref.dtype)
            t1_ref[:, :d, :] = jnp.zeros((H + 2 * d, d, 3 * Cw), t1_ref.dtype)
            t1_ref[:, W - d:, :] = jnp.zeros((H + 2 * d, d, 3 * Cw), t1_ref.dtype)
            t1_ref[d:d + H, d:, 0:Cw] = y1[:, :W - d, :]            # kw = 0
            t1_ref[d:d + H, :, Cw:2 * Cw] = y1                      # kw = 1
            t1_ref[d:d + H, :W - d, 2 * Cw:] = y1[:, d:, :]         # kw = 2
        else:
            t1_ref[:, :d, :, :] = jnp.zeros((3, d, W, Cw), t1_ref.dtype)
            t1_ref[:, d + H:, :, :] = jnp.zeros((3, d, W, Cw), t1_ref.dtype)
            t1_ref[:, :, :d, :] = jnp.zeros((3, H + 2 * d, d, Cw), t1_ref.dtype)
            t1_ref[:, :, W - d:, :] = jnp.zeros((3, H + 2 * d, d, Cw), t1_ref.dtype)
            t1_ref[0, d:d + H, d:, :] = y1[:, :W - d, :]            # kw = 0
            t1_ref[1, d:d + H, :, :] = y1                           # kw = 1
            t1_ref[2, d:d + H, :W - d, :] = y1[:, d:, :]            # kw = 2

    # ---- stage 2: conv2 (3x3, pad=d) + bn2 + relu on a th-row tile ----------
    r0 = pl.multiple_of(rt * th, th)
    acc = jnp.zeros((th * W, Cw), jnp.float32)
    if fuse_kw:
        for kh in range(3):                                  # 3 deep-K matmuls
            patch = t1_ref[pl.ds(r0 + kh * d, th), :, :]     # (th, W, 3*Cw)
            acc = acc + jnp.dot(patch.reshape(th * W, 3 * Cw), w2_ref[kh],
                                preferred_element_type=jnp.float32)
    else:
        for kh in range(3):                                  # static 3x3 unroll
            for kw in range(3):
                patch = t1_ref[kw, pl.ds(r0 + kh * d, th), :, :]   # (th, W, Cw)
                acc = acc + jnp.dot(patch.reshape(th * W, Cw),
                                    w2_ref[kh * 3 + kw],
                                    preferred_element_type=jnp.float32)
    y2 = jnp.maximum(acc + b2_ref[...], 0.0).astype(w3_ref.dtype)   # bf16 for MXU

    # ---- stage 3: conv3 (1x1) + bn3 + residual + relu -----------------------
    res = x_ref[0, pl.ds(r0, th), :, :].reshape(th * W, Cin).astype(jnp.float32)
    y3 = jnp.dot(y2, w3_ref[...], preferred_element_type=jnp.float32)
    out = jnp.maximum(y3 + b3_ref[...] + res, 0.0)
    o_ref[...] = out.reshape(1, th, W, C4).astype(o_ref.dtype)


# ---------------------------------------------------------------------------
# Wrapper
# ---------------------------------------------------------------------------
def fold_bn(gamma, beta, mean, var, eps=1e-5):
    scale = gamma / jnp.sqrt(var + eps)
    bias = beta - mean * scale
    return scale.astype(jnp.float32), bias.astype(jnp.float32)


def bottleneck_forward(x_nchw, params, stride=1, dilation=1, row_tile=None):
    """Fused Bottleneck forward, downsample=None path.  x: (N, Cin, H, W)."""
    if stride != 1:
        # TODO(synk): stride>1 needs a downsample branch for the residual; the
        # downsample=None module path is only shape-valid at stride=1.
        raise NotImplementedError("fused kernel implements the stride=1 path")

    N, Cin, H, W = x_nchw.shape
    out_dtype = x_nchw.dtype
    # NHWC + bf16 operands: channels ride the lane axis, matmuls hit the bf16
    # MXU, x/scratch bytes halve; accumulation/epilogues stay f32 in-kernel.
    x = jnp.transpose(x_nchw, (0, 2, 3, 1)).astype(jnp.bfloat16)

    s1, b1 = fold_bn(*params["bn1"])
    s2, b2 = fold_bn(*params["bn2"])
    s3, b3 = fold_bn(*params["bn3"])

    # OIHW conv weights -> matmul layouts, eval-mode BN scales folded in.
    w1 = (jnp.transpose(params["w1"][:, :, 0, 0], (1, 0)) * s1[None, :]
          ).astype(jnp.bfloat16)                                       # (Cin, Cw)
    Cw = w1.shape[1]
    w2 = jnp.transpose(params["w2"], (2, 3, 1, 0)) * s2[None, None, None, :]
    w3 = (jnp.transpose(params["w3"][:, :, 0, 0], (1, 0)) * s3[None, :]
          ).astype(jnp.bfloat16)                                       # (Cw, C4)
    C4 = w3.shape[1]
    assert Cin == C4, "identity residual requires inplanes == planes * expansion"

    # Fold the 3 kw taps into the matmul K dimension when the channel width is
    # lane-aligned: 3 matmuls with K=3*Cw (fills the 256-deep v6e/v7x MXU)
    # instead of 9 shallow-K matmuls.  Non-aligned widths keep per-tap copies.
    fuse_kw = (Cw % 128 == 0)
    if fuse_kw:
        w2 = w2.reshape(3, 3 * Cw, Cw).astype(jnp.bfloat16)
        w2_spec = pl.BlockSpec((3, 3 * Cw, Cw), lambda n, r: (0, 0, 0))
    else:
        w2 = w2.reshape(9, Cw, Cw).astype(jnp.bfloat16)
        w2_spec = pl.BlockSpec((9, Cw, Cw), lambda n, r: (0, 0, 0))

    d = int(dilation)
    assert 1 <= d < W and d < H
    Hp = H + 2 * d

    # Output-row tile: largest divisor of H whose f32 conv2 accumulator
    # (th*W, Cw) stays within a vreg-friendly budget (avoids spills at real
    # ResNet widths while amortizing the ~0.35us/step grid overhead).
    if row_tile is not None:
        th = int(row_tile)
        assert H % th == 0
    else:
        acc_budget = 96 * 1024
        fitting = [t for t in range(1, H + 1)
                   if H % t == 0 and t * W * Cw * 4 <= acc_budget]
        th = max(fitting) if fitting else 1

    if fuse_kw:
        scratch = pltpu.VMEM((Hp, W, 3 * Cw), jnp.bfloat16)
    else:
        scratch = pltpu.VMEM((3, Hp, W, Cw), jnp.bfloat16)
    # TODO(synk): for large images on v7x (64 MiB VMEM), compute conv1 per row
    # tile with a (th+2d)-row halo instead of a whole-image scratch; that also
    # lets the row axis become "parallel" for dual-TC use when N == 1.

    out_bpe = jnp.dtype(out_dtype).itemsize
    flops = int(2 * N * H * W * (Cin * Cw + 9 * Cw * Cw + Cw * C4))
    bytes_accessed = int(x.size * 2 + N * H * W * C4 * out_bpe
                         + (w1.size + w2.size + w3.size) * 2 + (2 * Cw + C4) * 4)
    cost = pl.CostEstimate(flops=flops, transcendentals=0,
                           bytes_accessed=bytes_accessed)

    scratch_bytes = Hp * W * 3 * Cw * 2
    block_bytes = 2 * (H * W * Cin * 2 + th * W * C4 * out_bpe)        # dbl-buf
    weight_bytes = 2 * ((w1.size + w2.size + w3.size) * 2 + (2 * Cw + C4) * 4)
    vmem_limit = int(min(max(2 * (scratch_bytes + block_bytes + weight_bytes),
                             32 * 1024 * 1024), 100 * 1024 * 1024))

    kernel = functools.partial(_bottleneck_kernel, dilation=d, th=th,
                               fuse_kw=fuse_kw)
    # TODO(synk): on v7x, mark the constant weight/bias specs with
    # pipeline_mode=pl.Buffered(1) to avoid double-buffering them in VMEM.
    out = pl.pallas_call(
        kernel,
        out_shape=jax.ShapeDtypeStruct((N, H, W, C4), out_dtype),
        grid=(N, H // th),
        in_specs=[
            pl.BlockSpec((1, H, W, Cin), lambda n, r: (n, 0, 0, 0)),
            pl.BlockSpec((Cin, Cw), lambda n, r: (0, 0)),
            pl.BlockSpec((1, Cw), lambda n, r: (0, 0)),
            w2_spec,
            pl.BlockSpec((1, Cw), lambda n, r: (0, 0)),
            pl.BlockSpec((Cw, C4), lambda n, r: (0, 0)),
            pl.BlockSpec((1, C4), lambda n, r: (0, 0)),
        ],
        out_specs=pl.BlockSpec((1, th, W, C4), lambda n, r: (n, r, 0, 0)),
        scratch_shapes=[scratch],
        compiler_params=pltpu.CompilerParams(
            dimension_semantics=("parallel", "arbitrary"),
            vmem_limit_bytes=vmem_limit),
        cost_estimate=cost,
    )(x, w1, b1.reshape(1, Cw), w2, b2.reshape(1, Cw), w3, b3.reshape(1, C4))

    return jnp.transpose(out, (0, 3, 1, 2))                  # back to NCHW


# ---------------------------------------------------------------------------
# Parameter setup (deterministic, PyTorch OIHW weight layouts)
# ---------------------------------------------------------------------------
def make_bn_params(key, c):
    k1, k2, k3, k4 = jax.random.split(key, 4)
    gamma = 1.0 + 0.1 * jax.random.normal(k1, (c,), jnp.float32)
    beta = 0.1 * jax.random.normal(k2, (c,), jnp.float32)
    mean = 0.1 * jax.random.normal(k3, (c,), jnp.float32)
    var = 1.0 + 0.1 * jax.random.uniform(k4, (c,), jnp.float32)
    return gamma, beta, mean, var


def init_bottleneck_params(key, inplanes, planes, groups=1, base_width=64):
    assert groups == 1  # TODO(synk): grouped 3x3 conv (groups>1) not implemented
    expansion = 4
    width = int(planes * (base_width / 64.0)) * groups
    ks = jax.random.split(key, 6)
    params = {
        "w1": 0.1 * jax.random.normal(ks[0], (width, inplanes, 1, 1), jnp.float32),
        "bn1": make_bn_params(ks[1], width),
        "w2": 0.1 * jax.random.normal(ks[2], (width, width, 3, 3), jnp.float32),
        "bn2": make_bn_params(ks[3], width),
        "w3": 0.1 * jax.random.normal(ks[4], (planes * expansion, width, 1, 1), jnp.float32),
        "bn3": make_bn_params(ks[5], planes * expansion),
    }
    return params, width


# ---------------------------------------------------------------------------
# Pure-JAX reference (correctness check, full f32)
# ---------------------------------------------------------------------------
def _bn_ref(x, gamma, beta, mean, var, eps=1e-5):
    sh = (1, -1, 1, 1)
    return (x - mean.reshape(sh)) / jnp.sqrt(var.reshape(sh) + eps) * gamma.reshape(sh) \
        + beta.reshape(sh)


def bottleneck_reference(x, params, stride=1, dilation=1):
    def conv(x, w, stride, padding, dilation):
        return jax.lax.conv_general_dilated(
            x, w, window_strides=(stride, stride),
            padding=[(padding, padding)] * 2,
            rhs_dilation=(dilation, dilation),
            dimension_numbers=("NCHW", "OIHW", "NCHW"))

    identity = x
    out = jax.nn.relu(_bn_ref(conv(x, params["w1"], 1, 0, 1), *params["bn1"]))
    out = jax.nn.relu(_bn_ref(conv(out, params["w2"], stride, dilation, dilation),
                              *params["bn2"]))
    out = _bn_ref(conv(out, params["w3"], 1, 0, 1), *params["bn3"])
    out = out + identity
    return jax.nn.relu(out)


def _rel_err(a, b):
    a = jnp.asarray(a, jnp.float32).ravel()
    b = jnp.asarray(b, jnp.float32).ravel()
    return float(jnp.linalg.norm(a - b) / (jnp.linalg.norm(b) + 1e-12))


# ---------------------------------------------------------------------------
if __name__ == "__main__":
    key = jax.random.PRNGKey(0)
    kx, kp, kx2, kp2 = jax.random.split(key, 4)

    # Config A: Cw=32 (non-lane-aligned -> per-tap scratch copies, 9 matmuls).
    # inplanes == planes * expansion so the downsample=None residual is valid.
    N, inplanes, H, W = 2, 32, 16, 16
    planes = 8
    x = jax.random.normal(kx, (N, inplanes, H, W), jnp.float32)
    params, _ = init_bottleneck_params(kp, inplanes, planes)
    for dil, rtile in ((1, None), (2, 8)):     # rtile=8 exercises multi-row-tile path
        out = jax.block_until_ready(
            bottleneck_forward(x, params, stride=1, dilation=dil, row_tile=rtile))
        ref = bottleneck_reference(x, params, stride=1, dilation=dil)
        assert out.shape == (N, planes * 4, H, W)
        err = _rel_err(out, ref)
        assert err < 2e-2, err                 # bf16 operands, f32 accumulation

    # Config B: Cw=128 (lane-aligned -> kw taps fused into K, 3 deep-K matmuls).
    N2, inplanes2, H2, W2 = 2, 512, 16, 16
    planes2 = 128
    x2 = jax.random.normal(kx2, (N2, inplanes2, H2, W2), jnp.float32)
    params2, _ = init_bottleneck_params(kp2, inplanes2, planes2)
    out2 = jax.block_until_ready(bottleneck_forward(x2, params2, stride=1, dilation=1))
    ref2 = bottleneck_reference(x2, params2, stride=1, dilation=1)
    assert out2.shape == (N2, planes2 * 4, H2, W2)
    err2 = _rel_err(out2, ref2)
    assert err2 < 2e-2, err2

    print("KERNEL_OK")
</pallas_src>

<mosaic_0001>
module attributes {stable_mosaic.version = 11 : i64} {
  func.func @_bottleneck_kernel(%arg0: i32, %arg1: i32, %arg2: memref<1x16x16x32xbf16, #tpu.memory_space<vmem>>, %arg3: memref<32x8xbf16, #tpu.memory_space<vmem>>, %arg4: memref<1x8xf32, #tpu.memory_space<vmem>>, %arg5: memref<9x8x8xbf16, #tpu.memory_space<vmem>>, %arg6: memref<1x8xf32, #tpu.memory_space<vmem>>, %arg7: memref<8x32xbf16, #tpu.memory_space<vmem>>, %arg8: memref<1x32xf32, #tpu.memory_space<vmem>>, %arg9: memref<1x16x16x32xf32, #tpu.memory_space<vmem>>, %arg10: memref<3x18x16x8xbf16, #tpu.memory_space<vmem>>) attributes {dimension_semantics = [#tpu.dimension_semantics<parallel>, #tpu.dimension_semantics<arbitrary>], iteration_bounds = array<i64: 2, 1>, scalar_prefetch = 0 : i64, scratch_operands = 1 : i64, tpu.core_type = #tpu.core_type<tc>, window_params = [{transform_indices = @transform_0, window_bounds = array<i64: 1, 16, 16, 32>}, {pipeline_mode = #tpu.pipeline_mode<synchronous>, transform_indices = @transform_1, window_bounds = array<i64: 32, 8>}, {pipeline_mode = #tpu.pipeline_mode<synchronous>, transform_indices = @transform_2, window_bounds = array<i64: 1, 8>}, {pipeline_mode = #tpu.pipeline_mode<synchronous>, transform_indices = @transform_3, window_bounds = array<i64: 9, 8, 8>}, {pipeline_mode = #tpu.pipeline_mode<synchronous>, transform_indices = @transform_4, window_bounds = array<i64: 1, 8>}, {pipeline_mode = #tpu.pipeline_mode<synchronous>, transform_indices = @transform_5, window_bounds = array<i64: 8, 32>}, {pipeline_mode = #tpu.pipeline_mode<synchronous>, transform_indices = @transform_6, window_bounds = array<i64: 1, 32>}, {transform_indices = @transform_7, window_bounds = array<i64: 1, 16, 16, 32>}]} {
    %c0_i32 = arith.constant 0 : i32
    %0 = arith.cmpi eq, %arg1, %c0_i32 : i32
    %1 = arith.extui %0 : i1 to i32
    %c0_i32_0 = arith.constant 0 : i32
    %2 = arith.cmpi ne, %1, %c0_i32_0 : i32
    scf.if %2 {
      %c0_78 = arith.constant 0 : index
      %c0_79 = arith.constant 0 : index
      %c0_80 = arith.constant 0 : index
      %c0_81 = arith.constant 0 : index
      %108 = vector.load %arg2[%c0_78, %c0_79, %c0_80, %c0_81] : memref<1x16x16x32xbf16, #tpu.memory_space<vmem>>, vector<1x16x16x32xbf16>
      %109 = vector.shape_cast %108 : vector<1x16x16x32xbf16> to vector<16x16x32xbf16>
      %110 = vector.shape_cast %109 : vector<16x16x32xbf16> to vector<256x32xbf16>
      %c0_82 = arith.constant 0 : index
      %c0_83 = arith.constant 0 : index
      %111 = vector.load %arg3[%c0_82, %c0_83] : memref<32x8xbf16, #tpu.memory_space<vmem>>, vector<32x8xbf16>
      %cst_84 = arith.constant dense<0.000000e+00> : vector<256x8xf32>
      %112 = tpu.matmul %110, %111, %cst_84 {dimension_numbers = #tpu.dot_dimension_numbers<[1], [0], [0], [1], [0, 0, 1, 1], [], []>} : vector<256x32xbf16>, vector<32x8xbf16>, vector<256x8xf32> -> vector<256x8xf32>
      %c0_85 = arith.constant 0 : index
      %c0_86 = arith.constant 0 : index
      %113 = vector.load %arg4[%c0_85, %c0_86] : memref<1x8xf32, #tpu.memory_space<vmem>>, vector<1x8xf32>
      %114 = vector.broadcast %113 : vector<1x8xf32> to vector<256x8xf32>
      %115 = arith.addf %112, %114 : vector<256x8xf32>
      %cst_87 = arith.constant 0.000000e+00 : f32
      %116 = vector.broadcast %cst_87 : f32 to vector<256x8xf32>
      %117 = arith.maximumf %115, %116 : vector<256x8xf32>
      %118 = vector.shape_cast %117 : vector<256x8xf32> to vector<16x16x8xf32>
      %119 = arith.truncf %118 : vector<16x16x8xf32> to vector<16x16x8xbf16>
      %cst_88 = arith.constant 0.000000e+00 : bf16
      %120 = vector.broadcast %cst_88 : bf16 to vector<3x1x16x8xbf16>
      %c0_89 = arith.constant 0 : index
      %c0_90 = arith.constant 0 : index
      %c0_91 = arith.constant 0 : index
      %c0_92 = arith.constant 0 : index
      %121 = vector.load %arg10[%c0_89, %c0_90, %c0_91, %c0_92] : memref<3x18x16x8xbf16, #tpu.memory_space<vmem>>, vector<3x1x16x8xbf16>
      tpu.vector_store %arg10[%c0_89, %c0_90, %c0_91, %c0_92], %120 {strides = array<i32>} : memref<3x18x16x8xbf16, #tpu.memory_space<vmem>>, vector<3x1x16x8xbf16>,
      %cst_93 = arith.constant 0.000000e+00 : bf16
      %122 = vector.broadcast %cst_93 : bf16 to vector<3x1x16x8xbf16>
      %c0_94 = arith.constant 0 : index
      %c17 = arith.constant 17 : index
      %c0_95 = arith.constant 0 : index
      %c0_96 = arith.constant 0 : index
      %123 = vector.load %arg10[%c0_94, %c17, %c0_95, %c0_96] : memref<3x18x16x8xbf16, #tpu.memory_space<vmem>>, vector<3x1x16x8xbf16>
      tpu.vector_store %arg10[%c0_94, %c17, %c0_95, %c0_96], %122 {strides = array<i32>} : memref<3x18x16x8xbf16, #tpu.memory_space<vmem>>, vector<3x1x16x8xbf16>,
      %cst_97 = arith.constant 0.000000e+00 : bf16
      %124 = vector.broadcast %cst_97 : bf16 to vector<3x18x1x8xbf16>
      %c0_98 = arith.constant 0 : index
      %c0_99 = arith.constant 0 : index
      %c0_100 = arith.constant 0 : index
      %c0_101 = arith.constant 0 : index
      %125 = vector.load %arg10[%c0_98, %c0_99, %c0_100, %c0_101] : memref<3x18x16x8xbf16, #tpu.memory_space<vmem>>, vector<3x18x1x8xbf16>
      tpu.vector_store %arg10[%c0_98, %c0_99, %c0_100, %c0_101], %124 {strides = array<i32>} : memref<3x18x16x8xbf16, #tpu.memory_space<vmem>>, vector<3x18x1x8xbf16>,
      %cst_102 = arith.constant 0.000000e+00 : bf16
      %126 = vector.broadcast %cst_102 : bf16 to vector<3x18x1x8xbf16>
      %c0_103 = arith.constant 0 : index
      %c0_104 = arith.constant 0 : index
      %c15 = arith.constant 15 : index
      %c0_105 = arith.constant 0 : index
      %127 = vector.load %arg10[%c0_103, %c0_104, %c15, %c0_105] : memref<3x18x16x8xbf16, #tpu.memory_space<vmem>>, vector<3x18x1x8xbf16>
      tpu.vector_store %arg10[%c0_103, %c0_104, %c15, %c0_105], %126 {strides = array<i32>} : memref<3x18x16x8xbf16, #tpu.memory_space<vmem>>, vector<3x18x1x8xbf16>,
      %128 = vector.extract_strided_slice %119 {offsets = [0, 0, 0], sizes = [16, 15, 8], strides = [1, 1, 1]} : vector<16x16x8xbf16> to vector<16x15x8xbf16>
      %c0_106 = arith.constant 0 : index
      %c1_107 = arith.constant 1 : index
      %c1_108 = arith.constant 1 : index
      %c0_109 = arith.constant 0 : index
      %129 = vector.load %arg10[%c0_106, %c1_107, %c1_108, %c0_109] : memref<3x18x16x8xbf16, #tpu.memory_space<vmem>>, vector<1x16x15x8xbf16>
      %130 = vector.shape_cast %129 : vector<1x16x15x8xbf16> to vector<16x15x8xbf16>
      %131 = vector.shape_cast %128 : vector<16x15x8xbf16> to vector<1x16x15x8xbf16>
      tpu.vector_store %arg10[%c0_106, %c1_107, %c1_108, %c0_109], %131 {strides = array<i32>} : memref<3x18x16x8xbf16, #tpu.memory_space<vmem>>, vector<1x16x15x8xbf16>,
      %c1_110 = arith.constant 1 : index
      %c1_111 = arith.constant 1 : index
      %c0_112 = arith.constant 0 : index
      %c0_113 = arith.constant 0 : index
      %132 = vector.load %arg10[%c1_110, %c1_111, %c0_112, %c0_113] : memref<3x18x16x8xbf16, #tpu.memory_space<vmem>>, vector<1x16x16x8xbf16>
      %133 = vector.shape_cast %132 : vector<1x16x16x8xbf16> to vector<16x16x8xbf16>
      %134 = vector.shape_cast %119 : vector<16x16x8xbf16> to vector<1x16x16x8xbf16>
      tpu.vector_store %arg10[%c1_110, %c1_111, %c0_112, %c0_113], %134 {strides = array<i32>} : memref<3x18x16x8xbf16, #tpu.memory_space<vmem>>, vector<1x16x16x8xbf16>,
      %135 = vector.extract_strided_slice %119 {offsets = [0, 1, 0], sizes = [16, 15, 8], strides = [1, 1, 1]} : vector<16x16x8xbf16> to vector<16x15x8xbf16>
      %c2_114 = arith.constant 2 : index
      %c1_115 = arith.constant 1 : index
      %c0_116 = arith.constant 0 : index
      %c0_117 = arith.constant 0 : index
      %136 = vector.load %arg10[%c2_114, %c1_115, %c0_116, %c0_117] : memref<3x18x16x8xbf16, #tpu.memory_space<vmem>>, vector<1x16x15x8xbf16>
      %137 = vector.shape_cast %136 : vector<1x16x15x8xbf16> to vector<16x15x8xbf16>
      %138 = vector.shape_cast %135 : vector<16x15x8xbf16> to vector<1x16x15x8xbf16>
      tpu.vector_store %arg10[%c2_114, %c1_115, %c0_116, %c0_117], %138 {strides = array<i32>} : memref<3x18x16x8xbf16, #tpu.memory_space<vmem>>, vector<1x16x15x8xbf16>,
    } else {
    }
    %c16_i32 = arith.constant 16 : i32
    %3 = arith.muli %arg1, %c16_i32 : i32
    %4 = tpu.assume_multiple %3, 16 : i32
    %cst = arith.constant 0.000000e+00 : f32
    %5 = vector.broadcast %cst : f32 to vector<256x8xf32>
    %c0_i32_1 = arith.constant 0 : i32
    %6 = arith.addi %4, %c0_i32_1 : i32
    %c0 = arith.constant 0 : index
    %7 = arith.index_cast %6 : i32 to index
    %c0_2 = arith.constant 0 : index
    %c0_3 = arith.constant 0 : index
    %8 = vector.load %arg10[%c0, %7, %c0_2, %c0_3] : memref<3x18x16x8xbf16, #tpu.memory_space<vmem>>, vector<1x16x16x8xbf16>
    %9 = vector.shape_cast %8 : vector<1x16x16x8xbf16> to vector<16x16x8xbf16>
    %10 = vector.shape_cast %9 : vector<16x16x8xbf16> to vector<256x8xbf16>
    %c0_4 = arith.constant 0 : index
    %c0_5 = arith.constant 0 : index
    %c0_6 = arith.constant 0 : index
    %11 = vector.load %arg5[%c0_4, %c0_5, %c0_6] : memref<9x8x8xbf16, #tpu.memory_space<vmem>>, vector<1x8x8xbf16>
    %12 = vector.shape_cast %11 : vector<1x8x8xbf16> to vector<8x8xbf16>
    %cst_7 = arith.constant dense<0.000000e+00> : vector<256x8xf32>
    %13 = tpu.matmul %10, %12, %cst_7 {dimension_numbers = #tpu.dot_dimension_numbers<[1], [0], [0], [1], [0, 0, 1, 1], [], []>} : vector<256x8xbf16>, vector<8x8xbf16>, vector<256x8xf32> -> vector<256x8xf32>
    %14 = arith.addf %5, %13 : vector<256x8xf32>
    %c0_i32_8 = arith.constant 0 : i32
    %15 = arith.addi %4, %c0_i32_8 : i32
    %c1 = arith.constant 1 : index
    %16 = arith.index_cast %15 : i32 to index
    %c0_9 = arith.constant 0 : index
    %c0_10 = arith.constant 0 : index
    %17 = vector.load %arg10[%c1, %16, %c0_9, %c0_10] : memref<3x18x16x8xbf16, #tpu.memory_space<vmem>>, vector<1x16x16x8xbf16>
    %18 = vector.shape_cast %17 : vector<1x16x16x8xbf16> to vector<16x16x8xbf16>
    %19 = vector.shape_cast %18 : vector<16x16x8xbf16> to vector<256x8xbf16>
    %c1_11 = arith.constant 1 : index
    %c0_12 = arith.constant 0 : index
    %c0_13 = arith.constant 0 : index
    %20 = vector.load %arg5[%c1_11, %c0_12, %c0_13] : memref<9x8x8xbf16, #tpu.memory_space<vmem>>, vector<1x8x8xbf16>
    %21 = vector.shape_cast %20 : vector<1x8x8xbf16> to vector<8x8xbf16>
    %cst_14 = arith.constant dense<0.000000e+00> : vector<256x8xf32>
    %22 = tpu.matmul %19, %21, %cst_14 {dimension_numbers = #tpu.dot_dimension_numbers<[1], [0], [0], [1], [0, 0, 1, 1], [], []>} : vector<256x8xbf16>, vector<8x8xbf16>, vector<256x8xf32> -> vector<256x8xf32>
    %23 = arith.addf %14, %22 : vector<256x8xf32>
    %c0_i32_15 = arith.constant 0 : i32
    %24 = arith.addi %4, %c0_i32_15 : i32
    %c2 = arith.constant 2 : index
    %25 = arith.index_cast %24 : i32 to index
    %c0_16 = arith.constant 0 : index
    %c0_17 = arith.constant 0 : index
    %26 = vector.load %arg10[%c2, %25, %c0_16, %c0_17] : memref<3x18x16x8xbf16, #tpu.memory_space<vmem>>, vector<1x16x16x8xbf16>
    %27 = vector.shape_cast %26 : vector<1x16x16x8xbf16> to vector<16x16x8xbf16>
    %28 = vector.shape_cast %27 : vector<16x16x8xbf16> to vector<256x8xbf16>
    %c2_18 = arith.constant 2 : index
    %c0_19 = arith.constant 0 : index
    %c0_20 = arith.constant 0 : index
    %29 = vector.load %arg5[%c2_18, %c0_19, %c0_20] : memref<9x8x8xbf16, #tpu.memory_space<vmem>>, vector<1x8x8xbf16>
    %30 = vector.shape_cast %29 : vector<1x8x8xbf16> to vector<8x8xbf16>
    %cst_21 = arith.constant dense<0.000000e+00> : vector<256x8xf32>
    %31 = tpu.matmul %28, %30, %cst_21 {dimension_numbers = #tpu.dot_dimension_numbers<[1], [0], [0], [1], [0, 0, 1, 1], [], []>} : vector<256x8xbf16>, vector<8x8xbf16>, vector<256x8xf32> -> vector<256x8xf32>
    %32 = arith.addf %23, %31 : vector<256x8xf32>
    %c1_i32 = arith.constant 1 : i32
    %33 = arith.addi %4, %c1_i32 : i32
    %c0_22 = arith.constant 0 : index
    %34 = arith.index_cast %33 : i32 to index
    %c0_23 = arith.constant 0 : index
    %c0_24 = arith.constant 0 : index
    %35 = vector.load %arg10[%c0_22, %34, %c0_23, %c0_24] : memref<3x18x16x8xbf16, #tpu.memory_space<vmem>>, vector<1x16x16x8xbf16>
    %36 = vector.shape_cast %35 : vector<1x16x16x8xbf16> to vector<16x16x8xbf16>
    %37 = vector.shape_cast %36 : vector<16x16x8xbf16> to vector<256x8xbf16>
    %c3 = arith.constant 3 : index
    %c0_25 = arith.constant 0 : index
    %c0_26 = arith.constant 0 : index
    %38 = vector.load %arg5[%c3, %c0_25, %c0_26] : memref<9x8x8xbf16, #tpu.memory_space<vmem>>, vector<1x8x8xbf16>
    %39 = vector.shape_cast %38 : vector<1x8x8xbf16> to vector<8x8xbf16>
    %cst_27 = arith.constant dense<0.000000e+00> : vector<256x8xf32>
    %40 = tpu.matmul %37, %39, %cst_27 {dimension_numbers = #tpu.dot_dimension_numbers<[1], [0], [0], [1], [0, 0, 1, 1], [], []>} : vector<256x8xbf16>, vector<8x8xbf16>, vector<256x8xf32> -> vector<256x8xf32>
    %41 = arith.addf %32, %40 : vector<256x8xf32>
    %c1_i32_28 = arith.constant 1 : i32
    %42 = arith.addi %4, %c1_i32_28 : i32
    %c1_29 = arith.constant 1 : index
    %43 = arith.index_cast %42 : i32 to index
    %c0_30 = arith.constant 0 : index
    %c0_31 = arith.constant 0 : index
    %44 = vector.load %arg10[%c1_29, %43, %c0_30, %c0_31] : memref<3x18x16x8xbf16, #tpu.memory_space<vmem>>, vector<1x16x16x8xbf16>
    %45 = vector.shape_cast %44 : vector<1x16x16x8xbf16> to vector<16x16x8xbf16>
    %46 = vector.shape_cast %45 : vector<16x16x8xbf16> to vector<256x8xbf16>
    %c4 = arith.constant 4 : index
    %c0_32 = arith.constant 0 : index
    %c0_33 = arith.constant 0 : index
    %47 = vector.load %arg5[%c4, %c0_32, %c0_33] : memref<9x8x8xbf16, #tpu.memory_space<vmem>>, vector<1x8x8xbf16>
    %48 = vector.shape_cast %47 : vector<1x8x8xbf16> to vector<8x8xbf16>
    %cst_34 = arith.constant dense<0.000000e+00> : vector<256x8xf32>
    %49 = tpu.matmul %46, %48, %cst_34 {dimension_numbers = #tpu.dot_dimension_numbers<[1], [0], [0], [1], [0, 0, 1, 1], [], []>} : vector<256x8xbf16>, vector<8x8xbf16>, vector<256x8xf32> -> vector<256x8xf32>
    %50 = arith.addf %41, %49 : vector<256x8xf32>
    %c1_i32_35 = arith.constant 1 : i32
    %51 = arith.addi %4, %c1_i32_35 : i32
    %c2_36 = arith.constant 2 : index
    %52 = arith.index_cast %51 : i32 to index
    %c0_37 = arith.constant 0 : index
    %c0_38 = arith.constant 0 : index
    %53 = vector.load %arg10[%c2_36, %52, %c0_37, %c0_38] : memref<3x18x16x8xbf16, #tpu.memory_space<vmem>>, vector<1x16x16x8xbf16>
    %54 = vector.shape_cast %53 : vector<1x16x16x8xbf16> to vector<16x16x8xbf16>
    %55 = vector.shape_cast %54 : vector<16x16x8xbf16> to vector<256x8xbf16>
    %c5 = arith.constant 5 : index
    %c0_39 = arith.constant 0 : index
    %c0_40 = arith.constant 0 : index
    %56 = vector.load %arg5[%c5, %c0_39, %c0_40] : memref<9x8x8xbf16, #tpu.memory_space<vmem>>, vector<1x8x8xbf16>
    %57 = vector.shape_cast %56 : vector<1x8x8xbf16> to vector<8x8xbf16>
    %cst_41 = arith.constant dense<0.000000e+00> : vector<256x8xf32>
    %58 = tpu.matmul %55, %57, %cst_41 {dimension_numbers = #tpu.dot_dimension_numbers<[1], [0], [0], [1], [0, 0, 1, 1], [], []>} : vector<256x8xbf16>, vector<8x8xbf16>, vector<256x8xf32> -> vector<256x8xf32>
    %59 = arith.addf %50, %58 : vector<256x8xf32>
    %c2_i32 = arith.constant 2 : i32
    %60 = arith.addi %4, %c2_i32 : i32
    %c0_42 = arith.constant 0 : index
    %61 = arith.index_cast %60 : i32 to index
    %c0_43 = arith.constant 0 : index
    %c0_44 = arith.constant 0 : index
    %62 = vector.load %arg10[%c0_42, %61, %c0_43, %c0_44] : memref<3x18x16x8xbf16, #tpu.memory_space<vmem>>, vector<1x16x16x8xbf16>
    %63 = vector.shape_cast %62 : vector<1x16x16x8xbf16> to vector<16x16x8xbf16>
    %64 = vector.shape_cast %63 : vector<16x16x8xbf16> to vector<256x8xbf16>
    %c6 = arith.constant 6 : index
    %c0_45 = arith.constant 0 : index
    %c0_46 = arith.constant 0 : index
    %65 = vector.load %arg5[%c6, %c0_45, %c0_46] : memref<9x8x8xbf16, #tpu.memory_space<vmem>>, vector<1x8x8xbf16>
    %66 = vector.shape_cast %65 : vector<1x8x8xbf16> to vector<8x8xbf16>
    %cst_47 = arith.constant dense<0.000000e+00> : vector<256x8xf32>
    %67 = tpu.matmul %64, %66, %cst_47 {dimension_numbers = #tpu.dot_dimension_numbers<[1], [0], [0], [1], [0, 0, 1, 1], [], []>} : vector<256x8xbf16>, vector<8x8xbf16>, vector<256x8xf32> -> vector<256x8xf32>
    %68 = arith.addf %59, %67 : vector<256x8xf32>
    %c2_i32_48 = arith.constant 2 : i32
    %69 = arith.addi %4, %c2_i32_48 : i32
    %c1_49 = arith.constant 1 : index
    %70 = arith.index_cast %69 : i32 to index
    %c0_50 = arith.constant 0 : index
    %c0_51 = arith.constant 0 : index
    %71 = vector.load %arg10[%c1_49, %70, %c0_50, %c0_51] : memref<3x18x16x8xbf16, #tpu.memory_space<vmem>>, vector<1x16x16x8xbf16>
    %72 = vector.shape_cast %71 : vector<1x16x16x8xbf16> to vector<16x16x8xbf16>
    %73 = vector.shape_cast %72 : vector<16x16x8xbf16> to vector<256x8xbf16>
    %c7 = arith.constant 7 : index
    %c0_52 = arith.constant 0 : index
    %c0_53 = arith.constant 0 : index
    %74 = vector.load %arg5[%c7, %c0_52, %c0_53] : memref<9x8x8xbf16, #tpu.memory_space<vmem>>, vector<1x8x8xbf16>
    %75 = vector.shape_cast %74 : vector<1x8x8xbf16> to vector<8x8xbf16>
    %cst_54 = arith.constant dense<0.000000e+00> : vector<256x8xf32>
    %76 = tpu.matmul %73, %75, %cst_54 {dimension_numbers = #tpu.dot_dimension_numbers<[1], [0], [0], [1], [0, 0, 1, 1], [], []>} : vector<256x8xbf16>, vector<8x8xbf16>, vector<256x8xf32> -> vector<256x8xf32>
    %77 = arith.addf %68, %76 : vector<256x8xf32>
    %c2_i32_55 = arith.constant 2 : i32
    %78 = arith.addi %4, %c2_i32_55 : i32
    %c2_56 = arith.constant 2 : index
    %79 = arith.index_cast %78 : i32 to index
    %c0_57 = arith.constant 0 : index
    %c0_58 = arith.constant 0 : index
    %80 = vector.load %arg10[%c2_56, %79, %c0_57, %c0_58] : memref<3x18x16x8xbf16, #tpu.memory_space<vmem>>, vector<1x16x16x8xbf16>
    %81 = vector.shape_cast %80 : vector<1x16x16x8xbf16> to vector<16x16x8xbf16>
    %82 = vector.shape_cast %81 : vector<16x16x8xbf16> to vector<256x8xbf16>
    %c8 = arith.constant 8 : index
    %c0_59 = arith.constant 0 : index
    %c0_60 = arith.constant 0 : index
    %83 = vector.load %arg5[%c8, %c0_59, %c0_60] : memref<9x8x8xbf16, #tpu.memory_space<vmem>>, vector<1x8x8xbf16>
    %84 = vector.shape_cast %83 : vector<1x8x8xbf16> to vector<8x8xbf16>
    %cst_61 = arith.constant dense<0.000000e+00> : vector<256x8xf32>
    %85 = tpu.matmul %82, %84, %cst_61 {dimension_numbers = #tpu.dot_dimension_numbers<[1], [0], [0], [1], [0, 0, 1, 1], [], []>} : vector<256x8xbf16>, vector<8x8xbf16>, vector<256x8xf32> -> vector<256x8xf32>
    %86 = arith.addf %77, %85 : vector<256x8xf32>
    %c0_62 = arith.constant 0 : index
    %c0_63 = arith.constant 0 : index
    %87 = vector.load %arg6[%c0_62, %c0_63] : memref<1x8xf32, #tpu.memory_space<vmem>>, vector<1x8xf32>
    %88 = vector.broadcast %87 : vector<1x8xf32> to vector<256x8xf32>
    %89 = arith.addf %86, %88 : vector<256x8xf32>
    %cst_64 = arith.constant 0.000000e+00 : f32
    %90 = vector.broadcast %cst_64 : f32 to vector<256x8xf32>
    %91 = arith.maximumf %89, %90 : vector<256x8xf32>
    %92 = arith.truncf %91 : vector<256x8xf32> to vector<256x8xbf16>
    %c0_65 = arith.constant 0 : index
    %93 = arith.index_cast %4 : i32 to index
    %c0_66 = arith.constant 0 : index
    %c0_67 = arith.constant 0 : index
    %94 = vector.load %arg2[%c0_65, %93, %c0_66, %c0_67] : memref<1x16x16x32xbf16, #tpu.memory_space<vmem>>, vector<1x16x16x32xbf16>
    %95 = vector.shape_cast %94 : vector<1x16x16x32xbf16> to vector<16x16x32xbf16>
    %96 = vector.shape_cast %95 : vector<16x16x32xbf16> to vector<256x32xbf16>
    %97 = arith.extf %96 : vector<256x32xbf16> to vector<256x32xf32>
    %c0_68 = arith.constant 0 : index
    %c0_69 = arith.constant 0 : index
    %98 = vector.load %arg7[%c0_68, %c0_69] : memref<8x32xbf16, #tpu.memory_space<vmem>>, vector<8x32xbf16>
    %cst_70 = arith.constant dense<0.000000e+00> : vector<256x32xf32>
    %99 = tpu.matmul %92, %98, %cst_70 {dimension_numbers = #tpu.dot_dimension_numbers<[1], [0], [0], [1], [0, 0, 1, 1], [], []>} : vector<256x8xbf16>, vector<8x32xbf16>, vector<256x32xf32> -> vector<256x32xf32>
    %c0_71 = arith.constant 0 : index
    %c0_72 = arith.constant 0 : index
    %100 = vector.load %arg8[%c0_71, %c0_72] : memref<1x32xf32, #tpu.memory_space<vmem>>, vector<1x32xf32>
    %101 = vector.broadcast %100 : vector<1x32xf32> to vector<256x32xf32>
    %102 = arith.addf %99, %101 : vector<256x32xf32>
    %103 = arith.addf %102, %97 : vector<256x32xf32>
    %cst_73 = arith.constant 0.000000e+00 : f32
    %104 = vector.broadcast %cst_73 : f32 to vector<256x32xf32>
    %105 = arith.maximumf %103, %104 : vector<256x32xf32>
    %106 = vector.shape_cast %105 : vector<256x32xf32> to vector<1x16x16x32xf32>
    %c0_74 = arith.constant 0 : index
    %c0_75 = arith.constant 0 : index
    %c0_76 = arith.constant 0 : index
    %c0_77 = arith.constant 0 : index
    %107 = vector.load %arg9[%c0_74, %c0_75, %c0_76, %c0_77] : memref<1x16x16x32xf32, #tpu.memory_space<vmem>>, vector<1x16x16x32xf32>
    tpu.vector_store %arg9[%c0_74, %c0_75, %c0_76, %c0_77], %106 {strides = array<i32>} : memref<1x16x16x32xf32, #tpu.memory_space<vmem>>, vector<1x16x16x32xf32>,
    return
  }
  func.func @transform_0(%arg0: i32, %arg1: i32) -> (i32, i32, i32, i32) {
    %c0_i32 = arith.constant 0 : i32
    %c0_i32_0 = arith.constant 0 : i32
    %c0_i32_1 = arith.constant 0 : i32
    %c0_i32_2 = arith.constant 0 : i32
    return %arg0, %c0_i32, %c0_i32_0, %c0_i32_1 : i32, i32, i32, i32
  }
  func.func @transform_1(%arg0: i32, %arg1: i32) -> (i32, i32) {
    %c0_i32 = arith.constant 0 : i32
    %c0_i32_0 = arith.constant 0 : i32
    %c0_i32_1 = arith.constant 0 : i32
    return %c0_i32, %c0_i32_0 : i32, i32
  }
  func.func @transform_2(%arg0: i32, %arg1: i32) -> (i32, i32) {
    %c0_i32 = arith.constant 0 : i32
    %c0_i32_0 = arith.constant 0 : i32
    %c0_i32_1 = arith.constant 0 : i32
    return %c0_i32, %c0_i32_0 : i32, i32
  }
  func.func @transform_3(%arg0: i32, %arg1: i32) -> (i32, i32, i32) {
    %c0_i32 = arith.constant 0 : i32
    %c0_i32_0 = arith.constant 0 : i32
    %c0_i32_1 = arith.constant 0 : i32
    %c0_i32_2 = arith.constant 0 : i32
    return %c0_i32, %c0_i32_0, %c0_i32_1 : i32, i32, i32
  }
  func.func @transform_4(%arg0: i32, %arg1: i32) -> (i32, i32) {
    %c0_i32 = arith.constant 0 : i32
    %c0_i32_0 = arith.constant 0 : i32
    %c0_i32_1 = arith.constant 0 : i32
    return %c0_i32, %c0_i32_0 : i32, i32
  }
  func.func @transform_5(%arg0: i32, %arg1: i32) -> (i32, i32) {
    %c0_i32 = arith.constant 0 : i32
    %c0_i32_0 = arith.constant 0 : i32
    %c0_i32_1 = arith.constant 0 : i32
    return %c0_i32, %c0_i32_0 : i32, i32
  }
  func.func @transform_6(%arg0: i32, %arg1: i32) -> (i32, i32) {
    %c0_i32 = arith.constant 0 : i32
    %c0_i32_0 = arith.constant 0 : i32
    %c0_i32_1 = arith.constant 0 : i32
    return %c0_i32, %c0_i32_0 : i32, i32
  }
  func.func @transform_7(%arg0: i32, %arg1: i32) -> (i32, i32, i32, i32) {
    %c0_i32 = arith.constant 0 : i32
    %c0_i32_0 = arith.constant 0 : i32
    %c0_i32_1 = arith.constant 0 : i32
    return %arg0, %arg1, %c0_i32, %c0_i32_0 : i32, i32, i32, i32
  }
}

</mosaic_0001>

<bundles_post_ra>
// kernel: tpu_custom_call.1
= control target key start
LH: loop header
LB: loop body
LE: loop exit
PB: predicated region body
PF: predicated region fallthrough
CT: control target
= control target key end

     0   :  { %12 = vsyncpa [#allocation4], 0  ;;  %s9298_s0 = inlined_call_operand.hbm [shape: bf16[2,16,16,32], index: 0, kind: input, shape index: {}]   ;;  %s9299_s1 = inlined_call_operand.vmem [shape: bf16[32,8], index: 1, kind: input, shape index: {}]   ;;  %s9300_s2 = inlined_call_operand.vmem [shape: f32[1,8], index: 2, kind: input, shape index: {}]   ;;  %s9301_s3 = inlined_call_operand.vmem [shape: bf16[9,8,8], index: 3, kind: input, shape index: {}]   ;;  %s9302_s4 = inlined_call_operand.vmem [shape: f32[1,8], index: 4, kind: input, shape index: {}]   ;;  %s9303_s5 = inlined_call_operand.vmem [shape: bf16[8,32], index: 5, kind: input, shape index: {}]   ;;  %s9304_s6 = inlined_call_operand.vmem [shape: f32[1,32], index: 6, kind: input, shape index: {}]   ;;  %s9305_s7 = inlined_call_operand.hbm [shape: f32[2,16,16,32], index: 7, kind: output, shape index: {}]  }
   0x1   :  { %14 = vsyncpa [#allocation4 + $0x1], 0 }
   0x2   :  { %15 = vsyncpa [#allocation5], 0 }
   0x3   :  { %17 = vsyncpa [#allocation5 + $0x1], 0  ;;  %s7331_s24 = smov 0   ;;  %s7333_s25 = smov 0  }
   0x4   :  { %s7335_s26 = smov 0   ;;  %s7337_s27 = smov 0  }
   0x5   :  { %s7339_s28 = smov 0   ;;  %s7341_s29 = smov 0  }
   0x6 LB: > { %s5602_s30 = sadd.s32 4294967295, %s7282_s29   ;;  %s5603_s8 = sadd.s32 4294967294, %s7282_s29   ;;  %s7282_s29 = sphi %s7341_s29, %s23_s29   ;;  %s7278_s28 = sphi %s7339_s28, %s9395_s28   ;;  %s7274_s27 = sphi %s7337_s27, %s9394_s27   ;;  %s7270_s26 = sphi %s7335_s26, %s9393_s26   ;;  %s7266_s25 = sphi %s7333_s25, %s9392_s25   ;;  %s7262_s24 = sphi %s7331_s24, %s9391_s24  }
   0x7   : > { %s35_s9 = sadd.s32 1, %s7278_s28  ;;  %s42_s10 = sadd.s32 1, %s7270_s26 }
   0x8   : > { %p37_p0 = scmp.ge.s32.totalorder %s35_s9, 2  ;;  %p49_p1 = scmp.ne.s32.totalorder %s7270_s26, %s7266_s25 }
   0x9   : > { %p50_p2 = scmp.eq.s32.totalorder %s7282_s29, 0  ;;  %p55_p3 = scmp.ne.s32.totalorder %s7266_s25, %s7262_s24 }
   0xa   : > { %s9397_s9 = smov (%p37_p0, %s35_s9), 0  ;;  %p56_p5 = scmp.eq.s32.totalorder %s5602_s30, 0 }
   0xb   : > { %9307 = sst [smem:[#allocation9_spill]] %s9397_s9  ;;  %p7372_p4 = por %p50_p2, %p49_p1 }
   0xc   : > { %s39_s12 = ssub.s32 %s7278_s28, %s9397_s9  ;;  %p207_p6 = scmp.eq.s32.totalorder %s5602_s30, 1 }
   0xd   : > { %p40_p7 = scmp.eq.s32.totalorder %s39_s12, 0  ;;  %p7378_p8 = por %p56_p5, %p55_p3 }
   0xe   : > { %p7382_p9 = por %p207_p6, %p49_p1  ;;  %p213_p10 = scmp.eq.s32.totalorder %s5603_s8, 1 }
   0xf   : > { %s7387_s15 = scalar_select %p40_p7, %s7270_s26, %s42_s10  }
  0x10   : > { %p7389_p11 = por %p213_p10, %p55_p3  ;;  %p6956_p13 = scmp.lt.s32.totalorder %s7282_s29, 2 }
  0x11   : > { %s251_s17 = sand.u32 1, %s7270_s26   ;;  %s6254_s19 = sshll.u32 %s7278_s28, 11 }
  0x12   : > { %s5606_s18 = sshll.u32 %s251_s17, 7  ;;  %s261_s22 = scalar_lea.hbm %s9298_s0, %s6254_s19 }
  0x13   : > { %s255_s23 = scalar_lea.vmem [#allocation3], %s5606_s18  ;;  %p7402_p0 = pnand %p6956_p13, %p7372_p4 }
  0x14   : > { %s262_s30 = sshll.u32 %s255_s23, 4  ;;  %p5609_p1 = scmp.ge.s32.totalorder %s7282_s29, 1  ;;  %s263_s30 = int_to_ptr.vmem [resolvable:$true] %s262_s30 }
  0x15   : > { %s252_s10 = scalar_lea.sflag [#allocation4], %s251_s17  ;;  %p7176_p2 = pneg %p7402_p0 }
  0x16   : > { %s7187_s12 = scalar_lea.vmem %s263_s30, 2048  ;;  %s7284_s9 = smov [#allocation3]  }
  0x17   : > { %p7188_p3 = scmp.ne.s32.totalorder %s263_s30, %s7187_s12  ;;  %s7192_s20 = sshll.u32 %s7284_s9, 4  ;;  %s7193_s20 = int_to_ptr.vmem [resolvable:$false] %s7192_s20 }
  0x18   : > { %s7194_s18 = scalar_lea.vmem %s7193_s20, 4096  ;;  %p7195_p7 = scmp.lt.s32.totalorder %s263_s30, %s7193_s20 }
  0x19   : > { %p7190_p5 = pnand %p7188_p3, %p7176_p2  ;;  %p7196_p10 = scmp.lt.s32.totalorder %s7194_s18, %s7187_s12 }
  0x1b   : > { %p7191_p6 = pneg %p7190_p5  ;;  %p7197_p12 = por %p7196_p10, %p7195_p7 }
  0x1d   : > { %p7198_p4 = pnand %p7197_p12, %p7191_p6 }
  0x1f   : > { %7201 = shalt.err (!%p7198_p4)
}
  0x20   : > { %s7285_s11 = smov 64   ;;  %s7286_s17 = smov 4  }
  0x21   : > { %6951 = dma.hbm_to_vmem [thread:$0]  (!%p7402_p0), %s261_s22, 2048, %s263_s30, %s252_s10, %s7285_s11, %s7285_s11, %s7286_s17  }
  0x22   : > { %p270_p13 = scmp.lt.s32.totalorder %s7282_s29, 3 }
  0x24   : > { %p271_p2 = pnand %p5609_p1, %p270_p13 }
  0x26   : > { %274 = sbr.rel (%p271_p2) target bundleno = 1051 (0x41b), region = 48 }
  0x2b   : > { %s7415_s9 = sand.u32 1, %s7266_s25  }
  0x2c   : > { %s5610_s19 = sshll.u32 %s7415_s9, 7  ;;  %s277_s21 = scalar_lea.sflag [#allocation4], %s7415_s9 }
  0x2d   : > { %s7419_s23 = scalar_lea.vmem [#allocation3], %s5610_s19 }
  0x2e   : > { %7253 = dma.done.wait (%p7378_p8), %s277_s21, 2048  }
  0x2f   : > { %7255 = vsyncadd (%p7378_p8), %s277_s21, 4294965248  ;;  %v7011_v0 = vld [vmem:[%s9299_s1 + $0x8] sm:$0xff]   ;;  %v7012_v1 = vld [vmem:[%s9299_s1] sm:$0xff]   ;;  %vm452_vm0 = vcmask 261120   ;;  %vm724_vm1 = vcmask 57344   ;;  %vm889_vm4 = vcmask 60419  }
  0x30   : > { %6555 = vmatprep.subr.bf16.mxu0 %v7011_v0  ;;  %v7013_v2 = vld [vmem:[%s7419_s23] sm:$0xff]   ;;  %v7014_v3 = vld [vmem:[%s7419_s23 + $0x8] sm:$0xff]   ;;  %v7015_v4 = vld [vmem:[%s7419_s23 + $0x10] sm:$0xff]   ;;  %vm725_vm2 = vsmask.f32 256  ;;  %vm2005_vm7 = vcmask 1043456  }
  0x31   : > { %6556 = vmatpush3.bf16.msra.mxu0 %v7011_v0  ;;  %6559 = vmatprep.mubr.msk.bf16.mxu0 %vm452_vm0, %v7013_v2  ;;  %v7016_v5 = vld [vmem:[%s7419_s23 + $0x18] sm:$0xff]   ;;  %v7017_v6 = vld [vmem:[%s7419_s23 + $0x20] sm:$0xff]   ;;  %v7018_v7 = vld [vmem:[%s7419_s23 + $0x28] sm:$0xff]   ;;  %vm890_vm5 = vsmask.f32 7950  ;;  %vm710_vm8 = vcmask 60416  }
  0x32   : > { %6557 = vmatprep.subr.bf16.mxu0 %v7012_v1  ;;  %v7019_v8 = vld [vmem:[%s7419_s23 + $0x30] sm:$0xff]   ;;  %v7020_v9 = vld [vmem:[%s7419_s23 + $0x38] sm:$0xff]   ;;  %v7021_v10 = vld [vmem:[%s7419_s23 + $0x40] sm:$0xff]   ;;  %v7287_v55 = vmov 0   ;;  %vm1956_vm9 = vcmask 64512   ;;  %s5611_s11 = sshll.u32 %s7415_s9, 8 }
  0x33   : > { %v7022_v11 = vld [vmem:[%s7419_s23 + $0x48] sm:$0xff]   ;;  %v7023_v12 = vld [vmem:[%s7419_s23 + $0x50] sm:$0xff]   ;;  %v7024_v13 = vld [vmem:[%s7419_s23 + $0x58] sm:$0xff]   ;;  %713 = vst.msk [vmem:[#allocation2 + $0x90] sm:$0xf] %vm710_vm8, %v7287_v55  ;;  %s9136_s17 = scalar_lea.vmem [#allocation6], %s5611_s11 }
  0x34   : > { %v7025_v14 = vld [vmem:[%s7419_s23 + $0x60] sm:$0xff]   ;;  %v7026_v15 = vld [vmem:[%s7419_s23 + $0x68] sm:$0xff]   ;;  %v7027_v16 = vld [vmem:[%s7419_s23 + $0x70] sm:$0xff]   ;;  %714 = vst.msk [vmem:[#allocation2 + $0x94] sm:$0xf] %vm710_vm8, %v7287_v55  ;;  %s5478_s19 = sshll.u32 %s9136_s17, 4  ;;  %s9246_s19 = int_to_ptr.vmem [resolvable:$true] %s5478_s19 }
  0x35   : > { %6558 = vmatpush3.bf16.msra.mxu0 %v7012_v1  ;;  %v7028_v17 = vld [vmem:[%s7419_s23 + $0x78] sm:$0xff]   ;;  %vm7464_vm3 = vmand %vm724_vm1, %vm725_vm2  ;;  %v733_v19 = vld [vmem:[#allocation2 + $0x10] sm:$0x1]  ;;  %711 = vst.msk [vmem:[#allocation2] sm:$0xf] %vm710_vm8, %v7287_v55  ;;  %s7202_s8 = scalar_lea.vmem %s9246_s19, 4096 }
  0x36   : > { %v787_v20 = vld [vmem:[#allocation2 + $0xa0] sm:$0x1]  ;;  %v734_v21 = vsel %vm7464_vm3, 0, %v733_v19  ;;  %v730_v23 = vld [vmem:[#allocation2 + $0x8] sm:$0x1]  ;;  %vm7476_vm6 = vmand %vm889_vm4, %vm890_vm5  ;;  %p7203_p8 = scmp.ne.s32.totalorder %s9246_s19, %s7202_s8  ;;  %s7288_s10 = smov [#allocation6]  }
  0x37   : > { %v788_v22 = vsel %vm7464_vm3, 0, %v787_v20  ;;  %735 = vst [vmem:[#allocation2 + $0x10] sm:$0x1] %v734_v21  ;;  %v731_v24 = vsel %vm7464_vm3, 0, %v730_v23  ;;  %v784_v25 = vld [vmem:[#allocation2 + $0x98] sm:$0x1] }
  0x38   : > { %6560 = vmatmul.mubr.msk.bf16.vlgmr.msra.gmra.mxu0 %vm452_vm0, %v7014_v3  ;;  %789 = vst [vmem:[#allocation2 + $0xa0] sm:$0x1] %v788_v22  ;;  %732 = vst [vmem:[#allocation2 + $0x8] sm:$0x1] %v731_v24  ;;  %v785_v26 = vsel %vm7464_vm3, 0, %v784_v25  ;;  %p7204_p12 = pnand %p7203_p8, %p7382_p9  ;;  %s7206_s13 = sshll.u32 %s7288_s10, 4  ;;  %s7207_s13 = int_to_ptr.vmem [resolvable:$false] %s7206_s13 }
  0x39   : > { %6563 = vmatprep.mubr.msk.bf16.mxu0 %vm452_vm0, %v7015_v4  ;;  %786 = vst [vmem:[#allocation2 + $0x98] sm:$0x1] %v785_v26  ;;  %v952_v28 = vld [vmem:[#allocation2 + $0xa4] sm:$0x8]  ;;  %v1006_v30 = vld [vmem:[#allocation2 + $0x134] sm:$0x8]  ;;  %p7209_p1 = scmp.lt.s32.totalorder %s9246_s19, %s7207_s13 }
  0x3a   : > { %v953_v29 = vsel %vm7476_vm6, 0, %v952_v28  ;;  %v1007_v31 = vsel %vm7476_vm6, 0, %v1006_v30  ;;  %v949_v32 = vld [vmem:[#allocation2 + $0x9c] sm:$0x8]  ;;  %v1003_v34 = vld [vmem:[#allocation2 + $0x12c] sm:$0x8]  ;;  %p7205_p0 = pneg %p7204_p12 }
  0x3b   : > { %954 = vst [vmem:[#allocation2 + $0xa4] sm:$0x8] %v953_v29  ;;  %1008 = vst [vmem:[#allocation2 + $0x134] sm:$0x8] %v1007_v31  ;;  %v950_v33 = vsel %vm7476_vm6, 0, %v949_v32  ;;  %v1004_v35 = vsel %vm7476_vm6, 0, %v1003_v34 }
  0x3c   : > { %951 = vst [vmem:[#allocation2 + $0x9c] sm:$0x8] %v950_v33  ;;  %v5711_v36 = vld [vmem:[%s9301_s3 + $0x4] sm:$0xf]  ;;  %1005 = vst [vmem:[#allocation2 + $0x12c] sm:$0x8] %v1004_v35 }
  0x3d   : > { %6933 = vmatprep.subr.msk.bf16.mxu0 %vm2005_vm7, %v5711_v36  ;;  %v2007_v37 = vsel %vm2005_vm7, %v5711_v36, 0  ;;  %v841_v38 = vld [vmem:[#allocation2 + $0x130] sm:$0x1]  ;;  %6934 = vmatprep.subr.msk.bf16.mxu1 %vm2005_vm7, %v5711_v36  ;;  %v898_v40 = vld [vmem:[#allocation2 + $0x14] sm:$0x8]  ;;  %s7208_s12 = scalar_lea.vmem %s7207_s13, 8192 }
  0x3e   : > { %6592 = vmatpush3.bf16.msra.mxu0 %v2007_v37  ;;  %v842_v39 = vsel %vm7464_vm3, 0, %v841_v38  ;;  %6932 = vmatpush3.bf16.msra.mxu1 %v2007_v37  ;;  %v899_v41 = vsel %vm7476_vm6, 0, %v898_v40  ;;  %v838_v42 = vld [vmem:[#allocation2 + $0x128] sm:$0x1]  ;;  %v895_v44 = vld [vmem:[#allocation2 + $0xc] sm:$0x8]  ;;  %p7210_p3 = scmp.lt.s32.totalorder %s7208_s12, %s7202_s8 }
  0x3f   : > { %843 = vst [vmem:[#allocation2 + $0x130] sm:$0x1] %v842_v39  ;;  %900 = vst [vmem:[#allocation2 + $0x14] sm:$0x8] %v899_v41  ;;  %v839_v43 = vsel %vm7464_vm3, 0, %v838_v42  ;;  %v896_v46 = vsel %vm7476_vm6, 0, %v895_v44 }
  0x40   : > { %6564 = vmatmul.mubr.msk.bf16.gmra.mxu0 %vm452_vm0, %v7016_v5  ;;  %v739_v45 = vld [vmem:[#allocation2 + $0x20] sm:$0x1]  ;;  %840 = vst [vmem:[#allocation2 + $0x128] sm:$0x1] %v839_v43  ;;  %v793_v48 = vld [vmem:[#allocation2 + $0xb0] sm:$0x1]  ;;  %p7211_p5 = por %p7210_p3, %p7209_p1 }
  0x41   : > { %6567 = vmatprep.mubr.msk.bf16.mxu0 %vm452_vm0, %v7017_v6  ;;  %v740_v47 = vsel %vm7464_vm3, 0, %v739_v45  ;;  %897 = vst [vmem:[#allocation2 + $0xc] sm:$0x8] %v896_v46  ;;  %v794_v49 = vsel %vm7464_vm3, 0, %v793_v48  ;;  %v736_v50 = vld [vmem:[#allocation2 + $0x18] sm:$0x1] }
  0x42   : > { %741 = vst [vmem:[#allocation2 + $0x20] sm:$0x1] %v740_v47  ;;  %v790_v51 = vld [vmem:[#allocation2 + $0xa8] sm:$0x1]  ;;  %795 = vst [vmem:[#allocation2 + $0xb0] sm:$0x1] %v794_v49  ;;  %p7212_p6 = pnand %p7211_p5, %p7205_p0 }
  0x43   : > { %v737_v52 = vsel %vm7464_vm3, 0, %v736_v50  ;;  %v791_v53 = vsel %vm7464_vm3, 0, %v790_v51  ;;  %v958_v54 = vld [vmem:[#allocation2 + $0xb4] sm:$0x8]  ;;  %712 = vst.msk [vmem:[#allocation2 + $0x4] sm:$0xf] %vm710_vm8, %v7287_v55 }
  0x44   : > { %715 = vst.msk [vmem:[#allocation2 + $0x120] sm:$0xf] %vm710_vm8, %v7287_v55  ;;  %716 = vst.msk [vmem:[#allocation2 + $0x124] sm:$0xf] %vm710_vm8, %v7287_v55  ;;  %v959_v56 = vsel %vm7476_vm6, 0, %v958_v54 }
  0x45   : > { %718 = vst.msk [vmem:[#allocation2 + $0x88] sm:$0xf] %vm710_vm8, %v7287_v55  ;;  %719 = vst.msk [vmem:[#allocation2 + $0x8c] sm:$0xf] %vm710_vm8, %v7287_v55  ;;  %v1012_v57 = vld [vmem:[#allocation2 + $0x144] sm:$0x8] }
  0x46   : > { %720 = vst.msk [vmem:[#allocation2 + $0x118] sm:$0xf] %vm710_vm8, %v7287_v55  ;;  %721 = vst.msk [vmem:[#allocation2 + $0x11c] sm:$0xf] %vm710_vm8, %v7287_v55  ;;  %v1013_v58 = vsel %vm7476_vm6, 0, %v1012_v57 }
  0x47   : > { %722 = vst.msk [vmem:[#allocation2 + $0x1a8] sm:$0xf] %vm710_vm8, %v7287_v55  ;;  %723 = vst.msk [vmem:[#allocation2 + $0x1ac] sm:$0xf] %vm710_vm8, %v7287_v55  ;;  %v847_v59 = vld [vmem:[#allocation2 + $0x140] sm:$0x1] }
  0x48   : > { %6568 = vmatmul.mubr.msk.bf16.gmra.mxu0 %vm452_vm0, %v7018_v7  ;;  %738 = vst [vmem:[#allocation2 + $0x18] sm:$0x1] %v737_v52  ;;  %792 = vst [vmem:[#allocation2 + $0xa8] sm:$0x1] %v791_v53  ;;  %v955_v60 = vld [vmem:[#allocation2 + $0xac] sm:$0x8] }
  0x49   : > { %6571 = vmatprep.mubr.msk.bf16.mxu0 %vm452_vm0, %v7019_v8  ;;  %960 = vst [vmem:[#allocation2 + $0xb4] sm:$0x8] %v959_v56  ;;  %1014 = vst [vmem:[#allocation2 + $0x144] sm:$0x8] %v1013_v58  ;;  %v848_v61 = vsel %vm7464_vm3, 0, %v847_v59  ;;  %v956_v62 = vsel %vm7476_vm6, 0, %v955_v60 }
  0x4a   : > { %v1009_v63 = vld [vmem:[#allocation2 + $0x13c] sm:$0x8]  ;;  %849 = vst [vmem:[#allocation2 + $0x140] sm:$0x1] %v848_v61  ;;  %v904_v0 = vld [vmem:[#allocation2 + $0x24] sm:$0x8] }
  0x4b   : > { %957 = vst [vmem:[#allocation2 + $0xac] sm:$0x8] %v956_v62  ;;  %v1010_v1 = vsel %vm7476_vm6, 0, %v1009_v63  ;;  %v781_v2 = vld [vmem:[#allocation2 + $0x90] sm:$0x1]  ;;  %v905_v3 = vsel %vm7476_vm6, 0, %v904_v0 }
  0x4c   : > { %1011 = vst [vmem:[#allocation2 + $0x13c] sm:$0x8] %v1010_v1  ;;  %v782_v4 = vsel %vm7464_vm3, 0, %v781_v2  ;;  %v946_v5 = vld [vmem:[#allocation2 + $0x94] sm:$0x8] }
  0x4d   : > { %906 = vst [vmem:[#allocation2 + $0x24] sm:$0x8] %v905_v3  ;;  %v745_v6 = vld [vmem:[#allocation2 + $0x30] sm:$0x1]  ;;  %783 = vst [vmem:[#allocation2 + $0x90] sm:$0x1] %v782_v4 }
  0x4e   : > { %v947_v7 = vsel %vm7476_vm6, 0, %v946_v5  ;;  %v844_v8 = vld [vmem:[#allocation2 + $0x138] sm:$0x1]  ;;  %v964_v20 = vld [vmem:[#allocation2 + $0xc4] sm:$0x8] }
  0x4f   : > { %948 = vst [vmem:[#allocation2 + $0x94] sm:$0x8] %v947_v7  ;;  %v965_v21 = vsel %vm7476_vm6, 0, %v964_v20  ;;  %v1018_v22 = vld [vmem:[#allocation2 + $0x154] sm:$0x8] }
  0x50   : > { %6572 = vmatmul.mubr.msk.bf16.gmra.mxu0 %vm452_vm0, %v7020_v9  ;;  %v746_v9 = vsel %vm7464_vm3, 0, %v745_v6  ;;  %966 = vst [vmem:[#allocation2 + $0xc4] sm:$0x8] %v965_v21  ;;  %v1019_v23 = vsel %vm7476_vm6, 0, %v1018_v22  ;;  %v853_v25 = vld [vmem:[#allocation2 + $0x150] sm:$0x1] }
  0x51   : > { %6575 = vmatprep.mubr.msk.bf16.mxu0 %vm452_vm0, %v7021_v10  ;;  %v799_v10 = vld [vmem:[#allocation2 + $0xc0] sm:$0x1]  ;;  %747 = vst [vmem:[#allocation2 + $0x30] sm:$0x1] %v746_v9  ;;  %1020 = vst [vmem:[#allocation2 + $0x154] sm:$0x8] %v1019_v23 }
  0x52   : > { %v854_v26 = vsel %vm7464_vm3, 0, %v853_v25  ;;  %v910_v28 = vld [vmem:[#allocation2 + $0x34] sm:$0x8]  ;;  %v961_v30 = vld [vmem:[#allocation2 + $0xbc] sm:$0x8] }
  0x53   : > { %855 = vst [vmem:[#allocation2 + $0x150] sm:$0x1] %v854_v26  ;;  %v911_v29 = vsel %vm7476_vm6, 0, %v910_v28  ;;  %v962_v31 = vsel %vm7476_vm6, 0, %v961_v30  ;;  %v1015_v32 = vld [vmem:[#allocation2 + $0x14c] sm:$0x8] }
  0x54   : > { %912 = vst [vmem:[#allocation2 + $0x34] sm:$0x8] %v911_v29  ;;  %v751_v33 = vld [vmem:[#allocation2 + $0x40] sm:$0x1]  ;;  %963 = vst [vmem:[#allocation2 + $0xbc] sm:$0x8] %v962_v31 }
  0x55   : > { %v1016_v34 = vsel %vm7476_vm6, 0, %v1015_v32  ;;  %v752_v35 = vsel %vm7464_vm3, 0, %v751_v33  ;;  %v805_v36 = vld [vmem:[#allocation2 + $0xd0] sm:$0x1]  ;;  %v748_v38 = vld [vmem:[#allocation2 + $0x38] sm:$0x1] }
  0x56   : > { %v7029_v24 = vld [vmem:[#allocation2 + $0x90] sm:$0xff]   ;;  %1017 = vst [vmem:[#allocation2 + $0x14c] sm:$0x8] %v1016_v34  ;;  %753 = vst [vmem:[#allocation2 + $0x40] sm:$0x1] %v752_v35  ;;  %v806_v37 = vsel %vm7464_vm3, 0, %v805_v36 }
  0x57   : > { %807 = vst [vmem:[#allocation2 + $0xd0] sm:$0x1] %v806_v37  ;;  %v749_v39 = vsel %vm7464_vm3, 0, %v748_v38  ;;  %v802_v40 = vld [vmem:[#allocation2 + $0xc8] sm:$0x1] }
  0x58   : > { %6576 = vmatmul.mubr.msk.bf16.gmra.mxu0 %vm452_vm0, %v7022_v11  ;;  %v845_v11 = vsel %vm7464_vm3, 0, %v844_v8  ;;  %v850_v41 = vld [vmem:[#allocation2 + $0x148] sm:$0x1]  ;;  %v907_v42 = vld [vmem:[#allocation2 + $0x2c] sm:$0x8]  ;;  %v803_v43 = vsel %vm7464_vm3, 0, %v802_v40 }
  0x59   : > { %6579 = vmatprep.mubr.msk.bf16.mxu0 %vm452_vm0, %v7023_v12  ;;  %v800_v12 = vsel %vm7464_vm3, 0, %v799_v10  ;;  %846 = vst [vmem:[#allocation2 + $0x138] sm:$0x1] %v845_v11  ;;  %750 = vst [vmem:[#allocation2 + $0x38] sm:$0x1] %v749_v39  ;;  %v851_v44 = vsel %vm7464_vm3, 0, %v850_v41 }
  0x5a   : > { %801 = vst [vmem:[#allocation2 + $0xc0] sm:$0x1] %v800_v12  ;;  %v908_v45 = vsel %vm7476_vm6, 0, %v907_v42  ;;  %804 = vst [vmem:[#allocation2 + $0xc8] sm:$0x1] %v803_v43 }
  0x5b   : > { %v970_v46 = vld [vmem:[#allocation2 + $0xd4] sm:$0x8]  ;;  %852 = vst [vmem:[#allocation2 + $0x148] sm:$0x1] %v851_v44  ;;  %909 = vst [vmem:[#allocation2 + $0x2c] sm:$0x8] %v908_v45 }
  0x5c   : > { %v971_v47 = vsel %vm7476_vm6, 0, %v970_v46  ;;  %v1024_v48 = vld [vmem:[#allocation2 + $0x164] sm:$0x8]  ;;  %v967_v50 = vld [vmem:[#allocation2 + $0xcc] sm:$0x8] }
  0x5d   : > { %972 = vst [vmem:[#allocation2 + $0xd4] sm:$0x8] %v971_v47  ;;  %v1025_v49 = vsel %vm7476_vm6, 0, %v1024_v48  ;;  %v968_v51 = vsel %vm7476_vm6, 0, %v967_v50  ;;  %v859_v52 = vld [vmem:[#allocation2 + $0x160] sm:$0x1] }
  0x5e   : > { %1026 = vst [vmem:[#allocation2 + $0x164] sm:$0x8] %v1025_v49  ;;  %969 = vst [vmem:[#allocation2 + $0xcc] sm:$0x8] %v968_v51  ;;  %v1021_v53 = vld [vmem:[#allocation2 + $0x15c] sm:$0x8] }
  0x5f   : > { %v757_v54 = vld [vmem:[#allocation2 + $0x50] sm:$0x1]  ;;  %v860_v55 = vsel %vm7464_vm3, 0, %v859_v52  ;;  %v1022_v56 = vsel %vm7476_vm6, 0, %v1021_v53  ;;  %v916_v58 = vld [vmem:[#allocation2 + $0x44] sm:$0x8] }
  0x60   : > { %6580 = vmatmul.mubr.msk.bf16.gmra.mxu0 %vm452_vm0, %v7024_v13  ;;  %v742_v13 = vld [vmem:[#allocation2 + $0x28] sm:$0x1]  ;;  %v758_v57 = vsel %vm7464_vm3, 0, %v757_v54  ;;  %861 = vst [vmem:[#allocation2 + $0x160] sm:$0x1] %v860_v55  ;;  %v917_v61 = vsel %vm7476_vm6, 0, %v916_v58 }
  0x61   : > { %6583 = vmatprep.mubr.msk.bf16.mxu0 %vm452_vm0, %v7025_v14  ;;  %v901_v14 = vld [vmem:[#allocation2 + $0x1c] sm:$0x8]  ;;  %1023 = vst [vmem:[#allocation2 + $0x15c] sm:$0x8] %v1022_v56  ;;  %759 = vst [vmem:[#allocation2 + $0x50] sm:$0x1] %v758_v57 }
  0x62   : > { %v811_v59 = vld [vmem:[#allocation2 + $0xe0] sm:$0x1]  ;;  %v754_v60 = vld [vmem:[#allocation2 + $0x48] sm:$0x1]  ;;  %v856_v62 = vld [vmem:[#allocation2 + $0x158] sm:$0x1] }
  0x63   : > { %v812_v63 = vsel %vm7464_vm3, 0, %v811_v59  ;;  %v755_v0 = vsel %vm7464_vm3, 0, %v754_v60  ;;  %918 = vst [vmem:[#allocation2 + $0x44] sm:$0x8] %v917_v61  ;;  %v857_v1 = vsel %vm7464_vm3, 0, %v856_v62 }
  0x64   : > { %813 = vst [vmem:[#allocation2 + $0xe0] sm:$0x1] %v812_v63  ;;  %756 = vst [vmem:[#allocation2 + $0x48] sm:$0x1] %v755_v0  ;;  %v808_v2 = vld [vmem:[#allocation2 + $0xd8] sm:$0x1] }
  0x65   : > { %858 = vst [vmem:[#allocation2 + $0x158] sm:$0x1] %v857_v1  ;;  %v913_v3 = vld [vmem:[#allocation2 + $0x3c] sm:$0x8]  ;;  %v809_v4 = vsel %vm7464_vm3, 0, %v808_v2 }
  0x66   : > { %v914_v5 = vsel %vm7476_vm6, 0, %v913_v3  ;;  %810 = vst [vmem:[#allocation2 + $0xd8] sm:$0x1] %v809_v4  ;;  %v976_v6 = vld [vmem:[#allocation2 + $0xe4] sm:$0x8] }
  0x67   : > { %915 = vst [vmem:[#allocation2 + $0x3c] sm:$0x8] %v914_v5  ;;  %v977_v7 = vsel %vm7476_vm6, 0, %v976_v6  ;;  %v1030_v8 = vld [vmem:[#allocation2 + $0x174] sm:$0x8] }
  0x68   : > { %6584 = vmatmul.mubr.msk.bf16.gmra.mxu0 %vm452_vm0, %v7026_v15  ;;  %v743_v15 = vsel %vm7464_vm3, 0, %v742_v13  ;;  %v835_v9 = vld [vmem:[#allocation2 + $0x120] sm:$0x1]  ;;  %978 = vst [vmem:[#allocation2 + $0xe4] sm:$0x8] %v977_v7  ;;  %v1031_v10 = vsel %vm7476_vm6, 0, %v1030_v8 }
  0x69   : > { %6587 = vmatprep.mubr.msk.bf16.mxu0 %vm452_vm0, %v7027_v16  ;;  %v796_v16 = vld [vmem:[#allocation2 + $0xb8] sm:$0x1]  ;;  %744 = vst [vmem:[#allocation2 + $0x28] sm:$0x1] %v743_v15  ;;  %v973_v11 = vld [vmem:[#allocation2 + $0xdc] sm:$0x8] }
  0x6a   : > { %v797_v19 = vsel %vm7464_vm3, 0, %v796_v16  ;;  %v836_v12 = vsel %vm7464_vm3, 0, %v835_v9  ;;  %1032 = vst [vmem:[#allocation2 + $0x174] sm:$0x8] %v1031_v10  ;;  %v974_v13 = vsel %vm7476_vm6, 0, %v973_v11 }
  0x6b   : > { %798 = vst [vmem:[#allocation2 + $0xb8] sm:$0x1] %v797_v19  ;;  %v763_v15 = vld [vmem:[#allocation2 + $0x60] sm:$0x1]  ;;  %837 = vst [vmem:[#allocation2 + $0x120] sm:$0x1] %v836_v12 }
  0x6c   : > { %975 = vst [vmem:[#allocation2 + $0xdc] sm:$0x8] %v974_v13  ;;  %v817_v19 = vld [vmem:[#allocation2 + $0xf0] sm:$0x1]  ;;  %v7614_v20 = vld [vmem:[%s9301_s3 + $0x8] sm:$0xf] }
  0x6d   : > { %v865_v21 = vld [vmem:[#allocation2 + $0x170] sm:$0x1]  ;;  %v922_v22 = vld [vmem:[#allocation2 + $0x54] sm:$0x8]  ;;  %v818_v23 = vsel %vm7464_vm3, 0, %v817_v19  ;;  %6936 = vmatprep.subr.msk.bf16.mxu0 %vm2005_vm7, %v7614_v20 }
  0x6e   : > { %v923_v25 = vsel %vm7476_vm6, 0, %v922_v22  ;;  %819 = vst [vmem:[#allocation2 + $0xf0] sm:$0x1] %v818_v23  ;;  %v760_v26 = vld [vmem:[#allocation2 + $0x58] sm:$0x1] }
  0x6f   : > { %924 = vst [vmem:[#allocation2 + $0x54] sm:$0x8] %v923_v25  ;;  %v862_v28 = vld [vmem:[#allocation2 + $0x168] sm:$0x1]  ;;  %v761_v29 = vsel %vm7464_vm3, 0, %v760_v26 }
  0x70   : > { %6588 = vmatmul.mubr.msk.bf16.gmra.mxu0 %vm452_vm0, %v7028_v17  ;;  %v902_v17 = vsel %vm7476_vm6, 0, %v901_v14  ;;  %v1027_v14 = vld [vmem:[#allocation2 + $0x16c] sm:$0x8]  ;;  %v814_v30 = vld [vmem:[#allocation2 + $0xe8] sm:$0x1]  ;;  %v863_v31 = vsel %vm7464_vm3, 0, %v862_v28 }
  0x71   : > { %903 = vst [vmem:[#allocation2 + $0x1c] sm:$0x8] %v902_v17  ;;  %6593 = vmatprep.mubr.msk.bf16.mxu0 %vm1956_vm9, %v7029_v24  ;;  %v1028_v16 = vsel %vm7476_vm6, 0, %v1027_v14  ;;  %v764_v17 = vsel %vm7464_vm3, 0, %v763_v15  ;;  %v866_v24 = vsel %vm7464_vm3, 0, %v865_v21  ;;  %v815_v32 = vsel %vm7464_vm3, 0, %v814_v30 }
  0x72   : > { %1029 = vst [vmem:[#allocation2 + $0x16c] sm:$0x8] %v1028_v16  ;;  %765 = vst [vmem:[#allocation2 + $0x60] sm:$0x1] %v764_v17  ;;  %v1000_v33 = vld [vmem:[#allocation2 + $0x124] sm:$0x8] }
  0x73   : > { %867 = vst [vmem:[#allocation2 + $0x170] sm:$0x1] %v866_v24  ;;  %762 = vst [vmem:[#allocation2 + $0x58] sm:$0x1] %v761_v29  ;;  %v919_v34 = vld [vmem:[#allocation2 + $0x4c] sm:$0x8] }
  0x74   : > { %864 = vst [vmem:[#allocation2 + $0x168] sm:$0x1] %v863_v31  ;;  %816 = vst [vmem:[#allocation2 + $0xe8] sm:$0x1] %v815_v32  ;;  %v1001_v35 = vsel %vm7476_vm6, 0, %v1000_v33  ;;  %v920_v36 = vsel %vm7476_vm6, 0, %v919_v34 }
  0x75   : > { %1002 = vst [vmem:[#allocation2 + $0x124] sm:$0x8] %v1001_v35  ;;  %921 = vst [vmem:[#allocation2 + $0x4c] sm:$0x8] %v920_v36  ;;  %v982_v37 = vld [vmem:[#allocation2 + $0xf4] sm:$0x8] }
  0x76   : > { %v983_v38 = vsel %vm7476_vm6, 0, %v982_v37  ;;  %v1036_v39 = vld [vmem:[#allocation2 + $0x184] sm:$0x8]  ;;  %v979_v41 = vld [vmem:[#allocation2 + $0xec] sm:$0x8] }
  0x77   : > { %984 = vst [vmem:[#allocation2 + $0xf4] sm:$0x8] %v983_v38  ;;  %v1037_v40 = vsel %vm7476_vm6, 0, %v1036_v39  ;;  %v871_v42 = vld [vmem:[#allocation2 + $0x180] sm:$0x1]  ;;  %v980_v44 = vsel %vm7476_vm6, 0, %v979_v41 }
  0x78   : > { %1038 = vst [vmem:[#allocation2 + $0x184] sm:$0x8] %v1037_v40  ;;  %v928_v43 = vld [vmem:[#allocation2 + $0x64] sm:$0x8]  ;;  %v872_v45 = vsel %vm7464_vm3, 0, %v871_v42 }
  0x79   : > { %v929_v46 = vsel %vm7476_vm6, 0, %v928_v43  ;;  %981 = vst [vmem:[#allocation2 + $0xec] sm:$0x8] %v980_v44  ;;  %v1033_v47 = vld [vmem:[#allocation2 + $0x17c] sm:$0x8] }
  0x7a   : > { %873 = vst [vmem:[#allocation2 + $0x180] sm:$0x1] %v872_v45  ;;  %930 = vst [vmem:[#allocation2 + $0x64] sm:$0x8] %v929_v46  ;;  %v1034_v48 = vsel %vm7476_vm6, 0, %v1033_v47 }
  0x7b   : > { %v769_v49 = vld [vmem:[#allocation2 + $0x70] sm:$0x1]  ;;  %v823_v50 = vld [vmem:[#allocation2 + $0x100] sm:$0x1]  ;;  %1035 = vst [vmem:[#allocation2 + $0x17c] sm:$0x8] %v1034_v48 }
  0x7c   : > { %v770_v51 = vsel %vm7464_vm3, 0, %v769_v49  ;;  %v824_v52 = vsel %vm7464_vm3, 0, %v823_v50  ;;  %v766_v53 = vld [vmem:[#allocation2 + $0x68] sm:$0x1]  ;;  %v868_v54 = vld [vmem:[#allocation2 + $0x178] sm:$0x1] }
  0x7d   : > { %771 = vst [vmem:[#allocation2 + $0x70] sm:$0x1] %v770_v51  ;;  %825 = vst [vmem:[#allocation2 + $0x100] sm:$0x1] %v824_v52  ;;  %v767_v55 = vsel %vm7464_vm3, 0, %v766_v53  ;;  %v869_v57 = vsel %vm7464_vm3, 0, %v868_v54 }
  0x7e   : > { %v820_v56 = vld [vmem:[#allocation2 + $0xf8] sm:$0x1]  ;;  %768 = vst [vmem:[#allocation2 + $0x68] sm:$0x1] %v767_v55  ;;  %870 = vst [vmem:[#allocation2 + $0x178] sm:$0x1] %v869_v57 }
  0x7f   : > { %v821_v58 = vsel %vm7464_vm3, 0, %v820_v56  ;;  %v925_v59 = vld [vmem:[#allocation2 + $0x5c] sm:$0x8]  ;;  %v988_v61 = vld [vmem:[#allocation2 + $0x104] sm:$0x8] }
  0x80   : > { %822 = vst [vmem:[#allocation2 + $0xf8] sm:$0x1] %v821_v58  ;;  %v926_v60 = vsel %vm7476_vm6, 0, %v925_v59  ;;  %v989_v62 = vsel %vm7476_vm6, 0, %v988_v61  ;;  %v1042_v63 = vld [vmem:[#allocation2 + $0x194] sm:$0x8] }
  0x81   : > { %927 = vst [vmem:[#allocation2 + $0x5c] sm:$0x8] %v926_v60  ;;  %990 = vst [vmem:[#allocation2 + $0x104] sm:$0x8] %v989_v62  ;;  %v1043_v0 = vsel %vm7476_vm6, 0, %v1042_v63  ;;  %v7726_v63 = vsel %vm2005_vm7, %v7614_v20, 0 }
  0x82   : > { %1044 = vst [vmem:[#allocation2 + $0x194] sm:$0x8] %v1043_v0  ;;  %v7665_v1 = vld [vmem:[%s9301_s3] sm:$0xf]  ;;  %v877_v2 = vld [vmem:[#allocation2 + $0x190] sm:$0x1] }
  0x83   : > { %6935 = vmatprep.subr.msk.bf16.mxu1 %vm2005_vm7, %v7665_v1  ;;  %v878_v3 = vsel %vm7464_vm3, 0, %v877_v2  ;;  %v985_v4 = vld [vmem:[#allocation2 + $0xfc] sm:$0x8]  ;;  %v1039_v5 = vld [vmem:[#allocation2 + $0x18c] sm:$0x8]  ;;  %v7730_v0 = vsel %vm2005_vm7, %v7665_v1, 0 }
  0x84   : > { %879 = vst [vmem:[#allocation2 + $0x190] sm:$0x1] %v878_v3  ;;  %v934_v6 = vld [vmem:[#allocation2 + $0x74] sm:$0x8]  ;;  %v986_v7 = vsel %vm7476_vm6, 0, %v985_v4  ;;  %v1040_v8 = vsel %vm7476_vm6, 0, %v1039_v5 }
  0x85   : > { %v775_v9 = vld [vmem:[#allocation2 + $0x80] sm:$0x1]  ;;  %v935_v10 = vsel %vm7476_vm6, 0, %v934_v6  ;;  %987 = vst [vmem:[#allocation2 + $0xfc] sm:$0x8] %v986_v7 }
  0x86   : > { %1041 = vst [vmem:[#allocation2 + $0x18c] sm:$0x8] %v1040_v8  ;;  %v776_v11 = vsel %vm7464_vm3, 0, %v775_v9  ;;  %v829_v12 = vld [vmem:[#allocation2 + $0x110] sm:$0x1] }
  0x87   : > { %936 = vst [vmem:[#allocation2 + $0x74] sm:$0x8] %v935_v10  ;;  %777 = vst [vmem:[#allocation2 + $0x80] sm:$0x1] %v776_v11  ;;  %v830_v13 = vsel %vm7464_vm3, 0, %v829_v12 }
  0x88   : > { %v772_v14 = vld [vmem:[#allocation2 + $0x78] sm:$0x1]  ;;  %v874_v15 = vld [vmem:[#allocation2 + $0x188] sm:$0x1]  ;;  %831 = vst [vmem:[#allocation2 + $0x110] sm:$0x1] %v830_v13 }
  0x89   : > { %v773_v16 = vsel %vm7464_vm3, 0, %v772_v14  ;;  %v826_v17 = vld [vmem:[#allocation2 + $0x108] sm:$0x1]  ;;  %v875_v19 = vsel %vm7464_vm3, 0, %v874_v15  ;;  %v931_v22 = vld [vmem:[#allocation2 + $0x6c] sm:$0x8] }
  0x8a   : > { %774 = vst [vmem:[#allocation2 + $0x78] sm:$0x1] %v773_v16  ;;  %v827_v21 = vsel %vm7464_vm3, 0, %v826_v17  ;;  %876 = vst [vmem:[#allocation2 + $0x188] sm:$0x1] %v875_v19  ;;  %v932_v23 = vsel %vm7476_vm6, 0, %v931_v22 }
  0x8b   : > { %828 = vst [vmem:[#allocation2 + $0x108] sm:$0x1] %v827_v21  ;;  %933 = vst [vmem:[#allocation2 + $0x6c] sm:$0x8] %v932_v23  ;;  %v994_v24 = vld [vmem:[#allocation2 + $0x114] sm:$0x8] }
  0x8c   : > { %v995_v25 = vsel %vm7476_vm6, 0, %v994_v24  ;;  %v1048_v26 = vld [vmem:[#allocation2 + $0x1a4] sm:$0x8]  ;;  %v991_v29 = vld [vmem:[#allocation2 + $0x10c] sm:$0x8] }
  0x8d   : > { %996 = vst [vmem:[#allocation2 + $0x114] sm:$0x8] %v995_v25  ;;  %v1049_v28 = vsel %vm7476_vm6, 0, %v1048_v26  ;;  %v992_v30 = vsel %vm7476_vm6, 0, %v991_v29  ;;  %v1045_v31 = vld [vmem:[#allocation2 + $0x19c] sm:$0x8] }
  0x8e   : > { %1050 = vst [vmem:[#allocation2 + $0x1a4] sm:$0x8] %v1049_v28  ;;  %v883_v32 = vld [vmem:[#allocation2 + $0x1a0] sm:$0x1]  ;;  %993 = vst [vmem:[#allocation2 + $0x10c] sm:$0x8] %v992_v30 }
  0x8f   : > { %v1046_v33 = vsel %vm7476_vm6, 0, %v1045_v31  ;;  %v884_v34 = vsel %vm7464_vm3, 0, %v883_v32  ;;  %v940_v35 = vld [vmem:[#allocation2 + $0x84] sm:$0x8]  ;;  %v880_v37 = vld [vmem:[#allocation2 + $0x198] sm:$0x1] }
  0x90   : > { %1047 = vst [vmem:[#allocation2 + $0x19c] sm:$0x8] %v1046_v33  ;;  %885 = vst [vmem:[#allocation2 + $0x1a0] sm:$0x1] %v884_v34  ;;  %v941_v36 = vsel %vm7476_vm6, 0, %v940_v35  ;;  %v881_v38 = vsel %vm7464_vm3, 0, %v880_v37 }
  0x91   : > { %942 = vst [vmem:[#allocation2 + $0x84] sm:$0x8] %v941_v36  ;;  %882 = vst [vmem:[#allocation2 + $0x198] sm:$0x1] %v881_v38  ;;  %v937_v39 = vld [vmem:[#allocation2 + $0x7c] sm:$0x8] }
  0x92   : > { %v938_v40 = vsel %vm7476_vm6, 0, %v937_v39  ;;  %v727_v41 = vld [vmem:[#allocation2] sm:$0x1]  ;;  %v892_v42 = vld [vmem:[#allocation2 + $0x4] sm:$0x8] }
  0x93   : > { %939 = vst [vmem:[#allocation2 + $0x7c] sm:$0x8] %v938_v40  ;;  %v728_v43 = vsel %vm7464_vm3, 0, %v727_v41  ;;  %v893_v44 = vsel %vm7476_vm6, 0, %v892_v42  ;;  %v7712_v45 = vld [vmem:[%s9300_s2] ss:$0 sm:$0xff] }
  0x94   : > { %729 = vst [vmem:[#allocation2] sm:$0x1] %v728_v43  ;;  %894 = vst [vmem:[#allocation2 + $0x4] sm:$0x8] %v893_v44  ;;  %vm1426_vm10 = vsmask.f32 7938 }
  0x95   : > { %v7720_v55 = vld [vmem:[%s9301_s3 + $0x10] sm:$0xf]  ;;  %vm1134_vm11 = vsmask.f32 4368  ;;  %vm1557_vm12 = vsmask.f32 3328  ;;  %vm7739_vm14 = vmand %vm710_vm8, %vm1426_vm10 }
  0x96   : > { %vm1558_vm13 = vsmask.f32 7440  ;;  %v7734_v2 = vsel %vm2005_vm7, %v7720_v55, 0  ;;  %v1432_v20 = vld [vmem:[#allocation2 + $0x10] sm:$0xf]  ;;  %vm7761_vm1 = vmor %vm725_vm2, %vm1134_vm11 }
  0x97   : > { %v1428_v16 = vld [vmem:[#allocation2 + $0x8] sm:$0xf]  ;;  %vm7753_vm15 = vmor %vm1557_vm12, %vm1558_vm13 }
  0x98   : > { %vm7772_vm4 = vmand %vm710_vm8, %vm1557_vm12 }
  0xf8   : > { %v6561_v46 = vpop.f32.mrf.mxu0 }
  0xf9   : > { %v544_v47 = vadd.f32 %v6561_v46, %v7712_v45 }
  0xfa   : > { %v535_v48 = vpop.f32.mrf.mxu0 }
  0xfb   : > { %v664_v49 = vmax.f32 %v544_v47, 0.0  ;;  %v536_v50 = vadd.f32 %v7712_v45, %v535_v48  ;;  %v1743_v47 = vld [vmem:[#allocation2 + $0x134] sm:$0xf] }
  0xfc   : > { %v6562_v51 = vpop.f32.mrf.mxu0 }
  0xfd   : > { %v6257_v52 = vpack.c.bf16 %v664_v49, %v664_v49  ;;  %v662_v53 = vmax.f32 %v536_v50, 0.0  ;;  %v547_v54 = vadd.f32 %v6562_v51, %v7712_v45 }
  0xfe   : > { %v538_v56 = vpop.f32.mrf.mxu0 }
  0xff   : > { %v1153_v57 = vshrl.u32 %v6257_v52, 16  ;;  %v1156_v58 = vshll.u32 %v6257_v52, 16  ;;  %1527 = vst.msk [vmem:[#allocation2 + $0xa0] sm:$0xf] %vm710_vm8, %v6257_v52  ;;  %v6255_v59 = vpack.c.bf16 %v662_v53, %v662_v53  ;;  %v665_v60 = vmax.f32 %v547_v54, 0.0 }
 0x100   : > { %v539_v61 = vadd.f32 %v7712_v45, %v538_v56  ;;  %v6565_v62 = vpop.f32.mrf.mxu0 }
 0x101   : > { %v1155_v3 = vrot.slane %v1153_v57, 7  ;;  %v1569_v4 = vrot.slane %v1153_v57, 4  ;;  %v1570_v5 = vrot.slane %v1156_v58, 5  ;;  %v1137_v6 = vshrl.u32 %v6255_v59, 16  ;;  %1525 = vst.msk [vmem:[#allocation2 + $0x98] sm:$0xf] %vm710_vm8, %v6255_v59 }
 0x102   : > { %v1140_v8 = vshll.u32 %v6255_v59, 16  ;;  %v6258_v1 = vpack.c.bf16 %v665_v60, %v665_v60  ;;  %v663_v9 = vmax.f32 %v539_v61, 0.0  ;;  %v560_v10 = vadd.f32 %v6565_v62, %v7712_v45  ;;  %v551_v11 = vpop.f32.mrf.mxu0 }
 0x103   : > { %v1158_v12 = vor.u32 %v1156_v58, %v1155_v3  ;;  %v1159_v13 = vrot.slane %v1155_v3, 4  ;;  %v1571_v14 = vor.u32 %v1570_v5, %v1569_v4  ;;  %v7744_v15 = vrot.slane %v1137_v6, 7  ;;  %v1739_v3 = vld [vmem:[#allocation2 + $0x12c] sm:$0xf]  ;;  %v1440_v5 = vld [vmem:[#allocation2 + $0x20] sm:$0xf] }
 0x104   : > { %v1560_v17 = vrot.slane %v1137_v6, 4  ;;  %v1561_v19 = vrot.slane %v1140_v8, 5  ;;  %v1161_v21 = vshrl.u32 %v6258_v1, 16  ;;  %v1164_v22 = vshll.u32 %v6258_v1, 16  ;;  %1528 = vst.msk [vmem:[#allocation2 + $0xa4] sm:$0xf] %vm710_vm8, %v6258_v1  ;;  %v6566_v23 = vpop.f32.mrf.mxu0 }
 0x105   : > { %v1433_v24 = vsel %vm7739_vm14, %v1158_v12, %v1432_v20  ;;  %v1572_v25 = vrot.slane %v1571_v14, 4  ;;  %v1142_v26 = vor.u32 %v1140_v8, %v7744_v15  ;;  %v1143_v28 = vrot.slane %v7744_v15, 4 }
 0x106   : > { %1434 = vst [vmem:[#allocation2 + $0x10] sm:$0xf] %v1433_v24  ;;  %v1562_v30 = vor.u32 %v1561_v19, %v1560_v17  ;;  %v1163_v31 = vrot.slane %v1161_v21, 7  ;;  %v1573_v32 = vrot.slane %v1164_v22, 5  ;;  %v1575_v33 = vrot.slane %v1161_v21, 4  ;;  %v554_v34 = vpop.f32.mrf.mxu0 }
 0x107   : > { %v1429_v35 = vsel %vm7739_vm14, %v1142_v26, %v1428_v16  ;;  %v6256_v37 = vpack.c.bf16 %v663_v9, %v663_v9  ;;  %v668_v38 = vmax.f32 %v560_v10, 0.0  ;;  %v552_v39 = vadd.f32 %v7712_v45, %v551_v11 }
 0x108   : > { %1430 = vst [vmem:[#allocation2 + $0x8] sm:$0xf] %v1429_v35  ;;  %v1563_v40 = vrot.slane %v1562_v30, 4  ;;  %v1166_v41 = vor.u32 %v1164_v22, %v1163_v31  ;;  %v1574_v42 = vsel %vm7753_vm15, %v1572_v25, %v1573_v32  ;;  %v1576_v43 = vor.u32 %v1575_v33, %v1573_v32  ;;  %v7768_v44 = vpop.f32.mrf.mxu0 }
 0x109   : > { %1742 = vst.msk [vmem:[#allocation2 + $0x130] sm:$0xf] %vm710_vm8, %v1574_v42  ;;  %v1145_v48 = vshrl.u32 %v6256_v37, 16  ;;  %v1148_v49 = vshll.u32 %v6256_v37, 16  ;;  %1526 = vst.msk [vmem:[#allocation2 + $0x9c] sm:$0xf] %vm710_vm8, %v6256_v37  ;;  %v6261_v50 = vpack.c.bf16 %v668_v38, %v668_v38  ;;  %v563_v54 = vadd.f32 %v6566_v23, %v7712_v45 }
 0x10a   : > { %v666_v51 = vmax.f32 %v552_v39, 0.0  ;;  %v1167_v52 = vsel %vm7761_vm1, %v1159_v13, %v1166_v41  ;;  %v1577_v53 = vrot.slane %v1576_v43, 4  ;;  %v555_v56 = vadd.f32 %v7712_v45, %v554_v34  ;;  %v567_v57 = vpop.f32.mrf.mxu0  ;;  %v1436_v23 = vld [vmem:[#allocation2 + $0x18] sm:$0xf] }
 0x10b   : > { %1435 = vst.msk [vmem:[#allocation2 + $0x14] sm:$0xf] %vm710_vm8, %v1167_v52  ;;  %v1147_v58 = vrot.slane %v1145_v48, 7  ;;  %v1564_v59 = vrot.slane %v1148_v49, 5  ;;  %v1566_v60 = vrot.slane %v1145_v48, 4  ;;  %v1185_v61 = vshrl.u32 %v6261_v50, 16 }
 0x10c   : > { %1531 = vst.msk [vmem:[#allocation2 + $0xb0] sm:$0xf] %vm710_vm8, %v6261_v50  ;;  %v1744_v62 = vsel %vm7772_vm4, %v1577_v53, %v1743_v47  ;;  %v1188_v4 = vshll.u32 %v6261_v50, 16  ;;  %v6259_v6 = vpack.c.bf16 %v666_v51, %v666_v51  ;;  %v669_v20 = vmax.f32 %v563_v54, 0.0  ;;  %v6570_v8 = vpop.f32.mrf.mxu0  ;;  %v7031_v37 = vld [vmem:[#allocation2 + $0xa0] sm:$0xff]  }
 0x10d   : > { %1745 = vst [vmem:[#allocation2 + $0x134] sm:$0xf] %v1744_v62  ;;  %v1150_v1 = vor.u32 %v1148_v49, %v1147_v58  ;;  %v1565_v9 = vsel %vm7753_vm15, %v1563_v40, %v1564_v59  ;;  %v1567_v10 = vor.u32 %v1566_v60, %v1564_v59  ;;  %v7788_v11 = vrot.slane %v1185_v61, 7 }
 0x10e   : > { %1737 = vst.msk [vmem:[#allocation2 + $0x128] sm:$0xf] %vm710_vm8, %v1565_v9  ;;  %v1587_v12 = vrot.slane %v1185_v61, 4  ;;  %v1588_v13 = vrot.slane %v1188_v4, 5  ;;  %v1169_v14 = vshrl.u32 %v6259_v6, 16  ;;  %v1172_v15 = vshll.u32 %v6259_v6, 16  ;;  %v7792_v16 = vpop.f32.mrf.mxu0 }
 0x10f   : > { %1529 = vst.msk [vmem:[#allocation2 + $0xa8] sm:$0xf] %vm710_vm8, %v6259_v6  ;;  %v1151_v17 = vsel %vm7761_vm1, %v1143_v28, %v1150_v1  ;;  %v1568_v19 = vrot.slane %v1567_v10, 4  ;;  %v1190_v21 = vor.u32 %v1188_v4, %v7788_v11  ;;  %v1191_v22 = vrot.slane %v7788_v11, 4 }
 0x110   : > { %1431 = vst.msk [vmem:[#allocation2 + $0xc] sm:$0xf] %vm710_vm8, %v1151_v17  ;;  %v1589_v24 = vor.u32 %v1588_v13, %v1587_v12  ;;  %v7799_v25 = vrot.slane %v1169_v14, 7  ;;  %v1578_v26 = vrot.slane %v1169_v14, 4  ;;  %v1579_v30 = vrot.slane %v1172_v15, 5  ;;  %v7030_v31 = vld [vmem:[#allocation2 + $0x98] sm:$0xff]   ;;  %v7801_v32 = vpop.f32.mrf.mxu0 }
 0x111   : > { %v1740_v33 = vsel %vm7772_vm4, %v1568_v19, %v1739_v3  ;;  %v1441_v28 = vsel %vm7739_vm14, %v1190_v21, %v1440_v5  ;;  %v6262_v34 = vpack.c.bf16 %v669_v20, %v669_v20  ;;  %v667_v35 = vmax.f32 %v555_v56, 0.0  ;;  %6594 = vmatmul.mubr.msk.bf16.vlgmr.msra.gmra.mxu0 %vm1956_vm9, %v7030_v31  ;;  %v1747_v19 = vld [vmem:[#allocation2 + $0x13c] sm:$0xf] }
 0x112   : > { %1741 = vst [vmem:[#allocation2 + $0x12c] sm:$0xf] %v1740_v33  ;;  %1442 = vst [vmem:[#allocation2 + $0x20] sm:$0xf] %v1441_v28  ;;  %v1590_v38 = vrot.slane %v1589_v24, 4  ;;  %v1174_v39 = vor.u32 %v1172_v15, %v7799_v25  ;;  %v1175_v40 = vrot.slane %v7799_v25, 4  ;;  %v1580_v41 = vor.u32 %v1579_v30, %v1578_v26  ;;  %v7810_v42 = vpop.f32.mrf.mxu0  ;;  %6597 = vmatprep.mubr.msk.bf16.mxu0 %vm1956_vm9, %v7031_v37 }
 0x113   : > { %v1193_v43 = vshrl.u32 %v6262_v34, 16  ;;  %v1196_v47 = vshll.u32 %v6262_v34, 16  ;;  %1532 = vst.msk [vmem:[#allocation2 + $0xb4] sm:$0xf] %vm710_vm8, %v6262_v34  ;;  %v6260_v48 = vpack.c.bf16 %v667_v35, %v667_v35  ;;  %v576_v49 = vadd.f32 %v7768_v44, %v7712_v45  ;;  %6660 = vmatpush3.bf16.msra.mxu0 %v7726_v63  ;;  %v1448_v25 = vld [vmem:[#allocation2 + $0x30] sm:$0xf] }
 0x114   : > { %v1437_v50 = vsel %vm7739_vm14, %v1174_v39, %v1436_v23  ;;  %v1581_v51 = vrot.slane %v1580_v41, 4  ;;  %v568_v52 = vadd.f32 %v7712_v45, %v567_v57  ;;  %v579_v53 = vadd.f32 %v6570_v8, %v7712_v45  ;;  %v7821_v54 = vpop.f32.mrf.mxu0  ;;  %6938 = vmatprep.subr.msk.bf16.mxu0 %vm2005_vm7, %v7720_v55  ;;  %v1751_v55 = vld [vmem:[#allocation2 + $0x144] sm:$0xf]  ;;  %v1444_v35 = vld [vmem:[#allocation2 + $0x28] sm:$0xf]  ;;  %v7059_v36 = vld [vmem:[#allocation2 + $0x10] sm:$0xff]  }
 0x115   : > { %1438 = vst [vmem:[#allocation2 + $0x18] sm:$0xf] %v1437_v50  ;;  %v1195_v56 = vrot.slane %v1193_v43, 7  ;;  %v1591_v44 = vrot.slane %v1196_v47, 5  ;;  %v1593_v58 = vrot.slane %v1193_v43, 4  ;;  %v1177_v59 = vshrl.u32 %v6260_v48, 16 }
 0x116   : > { %1530 = vst.msk [vmem:[#allocation2 + $0xac] sm:$0xf] %vm710_vm8, %v6260_v48  ;;  %v1180_v63 = vshll.u32 %v6260_v48, 16  ;;  %v672_v60 = vmax.f32 %v576_v49, 0.0  ;;  %v670_v61 = vmax.f32 %v568_v52, 0.0  ;;  %v673_v62 = vmax.f32 %v579_v53, 0.0  ;;  %v7826_v3 = vpop.f32.mrf.mxu0 }
 0x117   : > { %v1198_v57 = vor.u32 %v1196_v47, %v1195_v56  ;;  %v1592_v4 = vsel %vm7753_vm15, %v1590_v38, %v1591_v44  ;;  %v1594_v5 = vor.u32 %v1593_v58, %v1591_v44  ;;  %v1179_v6 = vrot.slane %v1177_v59, 7  ;;  %v7068_v46 = vld [vmem:[#allocation2 + $0x98] sm:$0xff]   ;;  %v7132_v18 = vld [vmem:[#allocation2 + $0x130] sm:$0xff]  }
 0x118   : > { %1750 = vst.msk [vmem:[#allocation2 + $0x140] sm:$0xf] %vm710_vm8, %v1592_v4  ;;  %v1582_v20 = vrot.slane %v1180_v63, 5  ;;  %v1584_v8 = vrot.slane %v1177_v59, 4  ;;  %v6265_v1 = vpack.c.bf16 %v672_v60, %v672_v60  ;;  %v6263_v9 = vpack.c.bf16 %v670_v61, %v670_v61  ;;  %v6577_v14 = vpop.f32.mrf.mxu0 }
 0x119   : > { %v1199_v10 = vsel %vm7761_vm1, %v1191_v22, %v1198_v57  ;;  %v1595_v11 = vrot.slane %v1594_v5, 4  ;;  %v1182_v12 = vor.u32 %v1180_v63, %v1179_v6  ;;  %v6266_v13 = vpack.c.bf16 %v673_v62, %v673_v62 }
 0x11a   : > { %1443 = vst.msk [vmem:[#allocation2 + $0x24] sm:$0xf] %vm710_vm8, %v1199_v10  ;;  %v1583_v15 = vsel %vm7753_vm15, %v1581_v51, %v1582_v20  ;;  %v1585_v17 = vor.u32 %v1584_v8, %v1582_v20  ;;  %v1217_v21 = vshrl.u32 %v6265_v1, 16  ;;  %v1220_v23 = vshll.u32 %v6265_v1, 16  ;;  %1535 = vst.msk [vmem:[#allocation2 + $0xc0] sm:$0xf] %vm710_vm8, %v6265_v1  ;;  %v599_v43 = vpop.f32.mrf.mxu0 }
 0x11b   : > { %1533 = vst.msk [vmem:[#allocation2 + $0xb8] sm:$0xf] %vm710_vm8, %v6263_v9  ;;  %v1752_v22 = vsel %vm7772_vm4, %v1595_v11, %v1751_v55  ;;  %v1183_v24 = vsel %vm7761_vm1, %v1175_v40, %v1182_v12  ;;  %1746 = vst.msk [vmem:[#allocation2 + $0x138] sm:$0xf] %vm710_vm8, %v1583_v15  ;;  %v1201_v26 = vshrl.u32 %v6263_v9, 16  ;;  %v1204_v30 = vshll.u32 %v6263_v9, 16 }
 0x11c   : > { %1536 = vst.msk [vmem:[#allocation2 + $0xc4] sm:$0xf] %vm710_vm8, %v6266_v13  ;;  %1753 = vst [vmem:[#allocation2 + $0x144] sm:$0xf] %v1752_v22  ;;  %v1586_v31 = vrot.slane %v1585_v17, 4  ;;  %v1219_v33 = vrot.slane %v1217_v21, 7  ;;  %v571_v57 = vadd.f32 %v7712_v45, %v7792_v16  ;;  %v592_v4 = vadd.f32 %v7801_v32, %v7712_v45  ;;  %v7861_v5 = vpop.f32.mrf.mxu0 }
 0x11d   : > { %1439 = vst.msk [vmem:[#allocation2 + $0x1c] sm:$0xf] %vm710_vm8, %v1183_v24  ;;  %v1605_v28 = vrot.slane %v1217_v21, 4  ;;  %v1606_v34 = vrot.slane %v1220_v23, 5  ;;  %v7845_v37 = vrot.slane %v1201_v26, 7  ;;  %v1596_v38 = vrot.slane %v1201_v26, 4 }
 0x11e   : > { %v1597_v39 = vrot.slane %v1204_v30, 5  ;;  %v1225_v40 = vshrl.u32 %v6266_v13, 16  ;;  %v7032_v41 = vld [vmem:[#allocation2 + $0xa8] sm:$0xff]   ;;  %v1748_v47 = vsel %vm7772_vm4, %v1586_v31, %v1747_v19  ;;  %v1222_v48 = vor.u32 %v1220_v23, %v1219_v33  ;;  %v7033_v51 = vld [vmem:[#allocation2 + $0xb0] sm:$0xff]   ;;  %v7882_v19 = vpop.f32.mrf.mxu0 }
 0x11f   : > { %v1223_v49 = vrot.slane %v1219_v33, 4  ;;  %v1607_v50 = vor.u32 %v1606_v34, %v1605_v28  ;;  %1749 = vst [vmem:[#allocation2 + $0x13c] sm:$0xf] %v1748_v47  ;;  %v1206_v52 = vor.u32 %v1204_v30, %v7845_v37  ;;  %v1207_v53 = vrot.slane %v7845_v37, 4  ;;  %6598 = vmatmul.mubr.msk.bf16.gmra.mxu0 %vm1956_vm9, %v7032_v41  ;;  %v1759_v9 = vld [vmem:[#allocation2 + $0x154] sm:$0xf] }
 0x120   : > { %v1598_v56 = vor.u32 %v1597_v39, %v1596_v38  ;;  %v1227_v44 = vrot.slane %v1225_v40, 7  ;;  %v1449_v58 = vsel %vm7739_vm14, %v1222_v48, %v1448_v25  ;;  %v1228_v63 = vshll.u32 %v6266_v13, 16  ;;  %6601 = vmatprep.mubr.msk.bf16.mxu0 %vm1956_vm9, %v7033_v51  ;;  %v1456_v28 = vld [vmem:[#allocation2 + $0x40] sm:$0xf]  ;;  %v7895_v47 = vpop.f32.mrf.mxu0  ;;  %v1755_v48 = vld [vmem:[#allocation2 + $0x14c] sm:$0xf] }
 0x121   : > { %v1608_v59 = vrot.slane %v1607_v50, 4  ;;  %v1611_v60 = vrot.slane %v1225_v40, 4  ;;  %1450 = vst [vmem:[#allocation2 + $0x30] sm:$0xf] %v1449_v58  ;;  %v1445_v61 = vsel %vm7739_vm14, %v1206_v52, %v1444_v35  ;;  %v584_v20 = vadd.f32 %v7712_v45, %v7810_v42 }
 0x122   : > { %v1599_v62 = vrot.slane %v1598_v56, 4  ;;  %1446 = vst [vmem:[#allocation2 + $0x28] sm:$0xf] %v1445_v61  ;;  %v1230_v6 = vor.u32 %v1228_v63, %v1227_v44  ;;  %v1609_v55 = vrot.slane %v1228_v63, 5  ;;  %v595_v8 = vadd.f32 %v7821_v54, %v7712_v45  ;;  %v1452_v63 = vld [vmem:[#allocation2 + $0x38] sm:$0xf] }
 0x123   : > { %v7034_v1 = vld [vmem:[#allocation2 + $0xc0] sm:$0xff]   ;;  %v671_v10 = vmax.f32 %v571_v57, 0.0  ;;  %v676_v11 = vmax.f32 %v592_v4, 0.0  ;;  %v7869_v16 = vadd.f32 %v7712_v45, %v7826_v3  ;;  %v7872_v32 = vadd.f32 %v6577_v14, %v7712_v45 }
 0x124   : > { %v1231_v12 = vsel %vm7761_vm1, %v1223_v49, %v1230_v6  ;;  %v1610_v42 = vsel %vm7753_vm15, %v1608_v59, %v1609_v55  ;;  %v1612_v13 = vor.u32 %v1611_v60, %v1609_v55  ;;  %v674_v15 = vmax.f32 %v584_v20, 0.0  ;;  %6605 = vmatprep.mubr.msk.bf16.mxu1 %vm1956_vm9, %v7034_v1  ;;  %v7036_v1 = vld [vmem:[#allocation2 + $0x120] sm:$0xff]  }
 0x125   : > { %1451 = vst.msk [vmem:[#allocation2 + $0x34] sm:$0xf] %vm710_vm8, %v1231_v12  ;;  %1758 = vst.msk [vmem:[#allocation2 + $0x150] sm:$0xf] %vm710_vm8, %v1610_v42  ;;  %v6264_v54 = vpack.c.bf16 %v671_v10, %v671_v10  ;;  %v6269_v3 = vpack.c.bf16 %v676_v11, %v676_v11  ;;  %v677_v17 = vmax.f32 %v595_v8, 0.0  ;;  %v675_v14 = vmax.f32 %v7869_v16, 0.0  ;;  %v7913_v8 = vpop.f32.mrf.mxu0 }
 0x126   : > { %v1613_v21 = vrot.slane %v1612_v13, 4  ;;  %v6267_v23 = vpack.c.bf16 %v674_v15, %v674_v15  ;;  %v680_v22 = vmax.f32 %v7872_v32, 0.0  ;;  %v7886_v24 = vadd.f32 %v7712_v45, %v599_v43 }
 0x127   : > { %v1209_v25 = vshrl.u32 %v6264_v54, 16  ;;  %v1212_v26 = vshll.u32 %v6264_v54, 16  ;;  %1534 = vst.msk [vmem:[#allocation2 + $0xbc] sm:$0xf] %vm710_vm8, %v6264_v54  ;;  %v1249_v30 = vshrl.u32 %v6269_v3, 16  ;;  %v1252_v31 = vshll.u32 %v6269_v3, 16 }
 0x128   : > { %1539 = vst.msk [vmem:[#allocation2 + $0xd0] sm:$0xf] %vm710_vm8, %v6269_v3  ;;  %v1760_v33 = vsel %vm7772_vm4, %v1613_v21, %v1759_v9  ;;  %v1233_v34 = vshrl.u32 %v6267_v23, 16  ;;  %v1236_v35 = vshll.u32 %v6267_v23, 16  ;;  %1537 = vst.msk [vmem:[#allocation2 + $0xc8] sm:$0xf] %vm710_vm8, %v6267_v23  ;;  %v6270_v38 = vpack.c.bf16 %v677_v17, %v677_v17 }
 0x129   : > { %1761 = vst [vmem:[#allocation2 + $0x154] sm:$0xf] %v1760_v33  ;;  %v1211_v39 = vrot.slane %v1209_v25, 7  ;;  %v1600_v40 = vrot.slane %v1212_v26, 5  ;;  %v1602_v41 = vrot.slane %v1209_v25, 4  ;;  %v7893_v43 = vrot.slane %v1249_v30, 7 }
 0x12a   : > { %v1623_v49 = vrot.slane %v1249_v30, 4  ;;  %v1624_v50 = vrot.slane %v1252_v31, 5  ;;  %v7897_v51 = vrot.slane %v1233_v34, 7  ;;  %v1614_v52 = vrot.slane %v1233_v34, 4  ;;  %1540 = vst.msk [vmem:[#allocation2 + $0xd4] sm:$0xf] %vm710_vm8, %v6270_v38 }
 0x12b   : > { %v1214_v56 = vor.u32 %v1212_v26, %v1211_v39  ;;  %v1601_v44 = vsel %vm7753_vm15, %v1599_v62, %v1600_v40  ;;  %v1603_v58 = vor.u32 %v1602_v41, %v1600_v40  ;;  %v1254_v59 = vor.u32 %v1252_v31, %v7893_v43  ;;  %v7924_v26 = vpop.f32.mrf.mxu0  ;;  %v1464_v33 = vld [vmem:[#allocation2 + $0x50] sm:$0xf] }
 0x12c   : > { %1754 = vst.msk [vmem:[#allocation2 + $0x148] sm:$0xf] %vm710_vm8, %v1601_v44  ;;  %v1255_v60 = vrot.slane %v7893_v43, 4  ;;  %v1625_v61 = vor.u32 %v1624_v50, %v1623_v49  ;;  %v1238_v57 = vor.u32 %v1236_v35, %v7897_v51  ;;  %v1239_v4 = vrot.slane %v7897_v51, 4 }
 0x12d   : > { %v1215_v6 = vsel %vm7761_vm1, %v1207_v53, %v1214_v56  ;;  %v1604_v55 = vrot.slane %v1603_v58, 4  ;;  %v1457_v62 = vsel %vm7739_vm14, %v1254_v59, %v1456_v28  ;;  %v1615_v20 = vrot.slane %v1236_v35, 5  ;;  %v7938_v44 = vpop.f32.mrf.mxu0 }
 0x12e   : > { %1447 = vst.msk [vmem:[#allocation2 + $0x2c] sm:$0xf] %vm710_vm8, %v1215_v6  ;;  %1458 = vst [vmem:[#allocation2 + $0x40] sm:$0xf] %v1457_v62  ;;  %v1626_v9 = vrot.slane %v1625_v61, 4  ;;  %v1453_v10 = vsel %vm7739_vm14, %v1238_v57, %v1452_v63  ;;  %v1257_v11 = vshrl.u32 %v6270_v38, 16  ;;  %v6268_v12 = vpack.c.bf16 %v675_v14, %v675_v14 }
 0x12f   : > { %v1260_v37 = vshll.u32 %v6270_v38, 16  ;;  %v7035_v16 = vld [vmem:[#allocation2 + $0xb8] sm:$0xff]   ;;  %v1756_v53 = vsel %vm7772_vm4, %v1604_v55, %v1755_v48  ;;  %1454 = vst [vmem:[#allocation2 + $0x38] sm:$0xf] %v1453_v10  ;;  %v1616_v32 = vor.u32 %v1615_v20, %v1614_v52  ;;  %v6273_v42 = vpack.c.bf16 %v680_v22, %v680_v22  ;;  %v7038_v61 = vld [vmem:[#allocation2 + $0x128] sm:$0xff]   ;;  %v7040_v20 = vld [vmem:[#allocation2 + $0x130] sm:$0xff]  }
 0x130   : > { %1757 = vst [vmem:[#allocation2 + $0x14c] sm:$0xf] %v1756_v53  ;;  %v1259_v13 = vrot.slane %v1257_v11, 7  ;;  %v1629_v54 = vrot.slane %v1257_v11, 4  ;;  %v678_v3 = vmax.f32 %v7886_v24, 0.0  ;;  %6602 = vmatmul.mubr.msk.bf16.gmra.mxu0 %vm1956_vm9, %v7035_v16  ;;  %v1241_v21 = vshrl.u32 %v6268_v12, 16 }
 0x131   : > { %v1627_v15 = vrot.slane %v1260_v37, 5  ;;  %v1617_v17 = vrot.slane %v1616_v32, 4  ;;  %v1244_v23 = vshll.u32 %v6268_v12, 16  ;;  %1538 = vst.msk [vmem:[#allocation2 + $0xcc] sm:$0xf] %vm710_vm8, %v6268_v12  ;;  %v1281_v25 = vshrl.u32 %v6273_v42, 16  ;;  %6661 = vmatprep.mubr.msk.bf16.mxu0 %vm1956_vm9, %v7036_v1  ;;  %v7970_v32 = vpop.f32.mrf.mxu0 }
 0x132   : > { %1543 = vst.msk [vmem:[#allocation2 + $0xe0] sm:$0xf] %vm710_vm8, %v6273_v42  ;;  %v1262_v14 = vor.u32 %v1260_v37, %v1259_v13  ;;  %v1767_v24 = vld [vmem:[#allocation2 + $0x164] sm:$0xf]  ;;  %v1284_v31 = vshll.u32 %v6273_v42, 16  ;;  %v1243_v28 = vrot.slane %v1241_v21, 7  ;;  %v611_v62 = vadd.f32 %v7861_v5, %v7712_v45 }
 0x133   : > { %v1628_v22 = vsel %vm7753_vm15, %v1626_v9, %v1627_v15  ;;  %v1630_v30 = vor.u32 %v1629_v54, %v1627_v15  ;;  %v1618_v34 = vrot.slane %v1244_v23, 5  ;;  %v1620_v35 = vrot.slane %v1241_v21, 4  ;;  %v1763_v52 = vld [vmem:[#allocation2 + $0x15c] sm:$0xf]  ;;  %v7955_v1 = vld [vmem:[%s9301_s3 + $0xc] sm:$0xf] }
 0x134   : > { %1766 = vst.msk [vmem:[#allocation2 + $0x160] sm:$0xf] %vm710_vm8, %v1628_v22  ;;  %v7930_v38 = vrot.slane %v1281_v25, 7  ;;  %v1263_v39 = vsel %vm7761_vm1, %v1255_v60, %v1262_v14  ;;  %v1641_v41 = vrot.slane %v1281_v25, 4  ;;  %v1642_v43 = vrot.slane %v1284_v31, 5  ;;  %v7039_v12 = vld [vmem:[#allocation2 + $0xd0] sm:$0xff]  }
 0x135   : > { %v1631_v40 = vrot.slane %v1630_v30, 4  ;;  %1459 = vst.msk [vmem:[#allocation2 + $0x44] sm:$0xf] %vm710_vm8, %v1263_v39  ;;  %v1246_v48 = vor.u32 %v1244_v23, %v1243_v28  ;;  %v1619_v49 = vsel %vm7753_vm15, %v1617_v17, %v1618_v34  ;;  %v1621_v50 = vor.u32 %v1620_v35, %v1618_v34  ;;  %v1460_v54 = vld [vmem:[#allocation2 + $0x48] sm:$0xf]  ;;  %v7995_v30 = vpop.f32.mrf.mxu0  ;;  %v7042_v35 = vld [vmem:[#allocation2 + $0x138] sm:$0xff]  }
 0x136   : > { %v1286_v56 = vor.u32 %v1284_v31, %v7930_v38  ;;  %1762 = vst.msk [vmem:[#allocation2 + $0x158] sm:$0xf] %vm710_vm8, %v1619_v49  ;;  %v1287_v59 = vrot.slane %v7930_v38, 4  ;;  %v1643_v63 = vor.u32 %v1642_v43, %v1641_v41  ;;  %v6271_v60 = vpack.c.bf16 %v678_v3, %v678_v3  ;;  %v7990_v14 = vld [vmem:[%s9301_s3 + $0x18] sm:$0xf] }
 0x137   : > { %v1768_v58 = vsel %vm7772_vm4, %v1631_v40, %v1767_v24  ;;  %v1247_v57 = vsel %vm7761_vm1, %v1239_v4, %v1246_v48  ;;  %v1622_v6 = vrot.slane %v1621_v50, 4  ;;  %v603_v10 = vadd.f32 %v7712_v45, %v7882_v19  ;;  %v7044_v24 = vld [vmem:[#allocation2 + $0x140] sm:$0xff]   ;;  %v1775_v48 = vld [vmem:[#allocation2 + $0x174] sm:$0xf]  ;;  %v7046_v38 = vld [vmem:[#allocation2 + $0x148] sm:$0xff]  }
 0x138   : > { %1769 = vst [vmem:[#allocation2 + $0x164] sm:$0xf] %v1768_v58  ;;  %v1465_v55 = vsel %vm7739_vm14, %v1286_v56, %v1464_v33  ;;  %1455 = vst.msk [vmem:[#allocation2 + $0x3c] sm:$0xf] %vm710_vm8, %v1247_v57  ;;  %v7958_v51 = vrot.slane %v1643_v63, 4  ;;  %v1265_v9 = vshrl.u32 %v6271_v60, 16  ;;  %6662 = vmatmul.mubr.msk.bf16.vlgmr.msra.gmra.mxu0 %vm1956_vm9, %v7038_v61  ;;  %v624_v16 = vadd.f32 %v7895_v47, %v7712_v45 }
 0x139   : > { %1466 = vst [vmem:[#allocation2 + $0x50] sm:$0xf] %v1465_v55  ;;  %v1268_v4 = vshll.u32 %v6271_v60, 16  ;;  %1541 = vst.msk [vmem:[#allocation2 + $0xd8] sm:$0xf] %vm710_vm8, %v6271_v60  ;;  %v7037_v11 = vld [vmem:[#allocation2 + $0xc8] sm:$0xff]   ;;  %v1764_v5 = vsel %vm7772_vm4, %v1622_v6, %v1763_v52  ;;  %v616_v53 = vadd.f32 %v7712_v45, %v7913_v8  ;;  %6665 = vmatprep.mubr.msk.bf16.mxu0 %vm1956_vm9, %v7040_v20  ;;  %6728 = vmatpush3.bf16.msra.mxu0 %v7734_v2  ;;  %v6586_v55 = vpop.f32.mrf.mxu0 }
 0x13a   : > { %v681_v37 = vmax.f32 %v611_v62, 0.0  ;;  %1765 = vst [vmem:[#allocation2 + $0x15c] sm:$0xf] %v1764_v5  ;;  %v7974_v19 = vrot.slane %v1265_v9, 7  ;;  %v1632_v42 = vrot.slane %v1265_v9, 4  ;;  %v679_v15 = vmax.f32 %v603_v10, 0.0  ;;  %6606 = vmatmul.mubr.msk.bf16.vlgmr.msra.gmra.mxu1 %vm1956_vm9, %v7037_v11  ;;  %6940 = vmatprep.subr.msk.bf16.mxu0 %vm2005_vm7, %v7990_v14 }
 0x13b   : > { %v1633_v13 = vrot.slane %v1268_v4, 5  ;;  %v684_v3 = vmax.f32 %v624_v16, 0.0  ;;  %v682_v17 = vmax.f32 %v616_v53, 0.0  ;;  %v7979_v8 = vadd.f32 %v7924_v26, %v7712_v45  ;;  %6626 = vmatpush3.bf16.msra.mxu1 %v7730_v0  ;;  %6609 = vmatprep.mubr.msk.bf16.mxu1 %vm1956_vm9, %v7039_v12  ;;  %v1771_v61 = vld [vmem:[#allocation2 + $0x16c] sm:$0xf] }
 0x13c   : > { %v6274_v47 = vpack.c.bf16 %v681_v37, %v681_v37  ;;  %v1270_v2 = vor.u32 %v1268_v4, %v7974_v19  ;;  %v1271_v21 = vrot.slane %v7974_v19, 4  ;;  %v6272_v25 = vpack.c.bf16 %v679_v15, %v679_v15  ;;  %6937 = vmatprep.subr.msk.bf16.mxu1 %vm2005_vm7, %v7955_v1  ;;  %v1472_v6 = vld [vmem:[#allocation2 + $0x60] sm:$0xf] }
 0x13d   : > { %v1634_v23 = vor.u32 %v1633_v13, %v1632_v42  ;;  %v6277_v0 = vpack.c.bf16 %v684_v3, %v684_v3  ;;  %v7993_v22 = vpack.c.bf16 %v682_v17, %v682_v17  ;;  %v1468_v13 = vld [vmem:[#allocation2 + $0x58] sm:$0xf]  ;;  %v685_v15 = vmax.f32 %v7979_v8, 0.0 }
 0x13e   : > { %v1289_v45 = vshrl.u32 %v6274_v47, 16  ;;  %v1292_v26 = vshll.u32 %v6274_v47, 16  ;;  %1544 = vst.msk [vmem:[#allocation2 + $0xe4] sm:$0xf] %vm710_vm8, %v6274_v47  ;;  %v1461_v31 = vsel %vm7739_vm14, %v1270_v2, %v1460_v54  ;;  %v1273_v28 = vshrl.u32 %v6272_v25, 16  ;;  %v634_v54 = vpop.f32.mrf.mxu0 }
 0x13f   : > { %v1635_v33 = vrot.slane %v1634_v23, 4  ;;  %v1276_v34 = vshll.u32 %v6272_v25, 16  ;;  %1542 = vst.msk [vmem:[#allocation2 + $0xdc] sm:$0xf] %vm710_vm8, %v6272_v25  ;;  %1462 = vst [vmem:[#allocation2 + $0x48] sm:$0xf] %v1461_v31 }
 0x140   : > { %v1291_v39 = vrot.slane %v1289_v45, 7  ;;  %v1645_v40 = vrot.slane %v1292_v26, 5  ;;  %v1647_v41 = vrot.slane %v1289_v45, 4  ;;  %v1313_v43 = vshrl.u32 %v6277_v0, 16  ;;  %1547 = vst.msk [vmem:[#allocation2 + $0xf0] sm:$0xf] %vm710_vm8, %v6277_v0  ;;  %6666 = vmatmul.mubr.msk.bf16.gmra.mxu0 %vm1956_vm9, %v7042_v35 }
 0x141   : > { %1545 = vst.msk [vmem:[#allocation2 + $0xe8] sm:$0xf] %vm710_vm8, %v7993_v22  ;;  %v1275_v49 = vrot.slane %v1273_v28, 7  ;;  %v1636_v50 = vrot.slane %v1276_v34, 5  ;;  %v1638_v52 = vrot.slane %v1273_v28, 4  ;;  %v1316_v56 = vshll.u32 %v6277_v0, 16  ;;  %6669 = vmatprep.mubr.msk.bf16.mxu0 %vm1956_vm9, %v7044_v24 }
 0x142   : > { %v1294_v58 = vor.u32 %v1292_v26, %v1291_v39  ;;  %v1646_v63 = vsel %vm7753_vm15, %v7958_v51, %v1645_v40  ;;  %v1648_v60 = vor.u32 %v1647_v41, %v1645_v40  ;;  %v8009_v57 = vrot.slane %v1313_v43, 7  ;;  %v8040_v26 = vld [vmem:[%s9300_s2] ss:$0 sm:$0xff]  ;;  %v8054_v39 = vpop.f32.mrf.mxu0 }
 0x143   : > { %1774 = vst.msk [vmem:[#allocation2 + $0x170] sm:$0xf] %vm710_vm8, %v1646_v63  ;;  %v1278_v62 = vor.u32 %v1276_v34, %v1275_v49  ;;  %v1637_v20 = vsel %vm7753_vm15, %v1635_v33, %v1636_v50  ;;  %v1639_v9 = vor.u32 %v1638_v52, %v1636_v50  ;;  %v1659_v4 = vrot.slane %v1313_v43, 4 }
 0x144   : > { %v1295_v51 = vsel %vm7761_vm1, %v1287_v59, %v1294_v58  ;;  %v1649_v10 = vrot.slane %v1648_v60, 4  ;;  %1770 = vst.msk [vmem:[#allocation2 + $0x168] sm:$0xf] %vm710_vm8, %v1637_v20  ;;  %v1318_v11 = vor.u32 %v1316_v56, %v8009_v57  ;;  %v1319_v5 = vrot.slane %v8009_v57, 4 }
 0x145   : > { %1467 = vst.msk [vmem:[#allocation2 + $0x54] sm:$0xf] %vm710_vm8, %v1295_v51  ;;  %v1279_v37 = vsel %vm7761_vm1, %v1271_v21, %v1278_v62  ;;  %v1640_v16 = vrot.slane %v1639_v9, 4  ;;  %v1660_v53 = vrot.slane %v1316_v56, 5  ;;  %v1297_v12 = vshrl.u32 %v7993_v22, 16  ;;  %v7043_v3 = vld [vmem:[#allocation2 + $0xe0] sm:$0xff]  }
 0x146   : > { %v1776_v59 = vsel %vm7772_vm4, %v1649_v10, %v1775_v48  ;;  %1463 = vst.msk [vmem:[#allocation2 + $0x4c] sm:$0xf] %vm710_vm8, %v1279_v37  ;;  %v1473_v19 = vsel %vm7739_vm14, %v1318_v11, %v1472_v6  ;;  %v1300_v42 = vshll.u32 %v7993_v22, 16  ;;  %v7041_v47 = vld [vmem:[#allocation2 + $0xd8] sm:$0xff]   ;;  %v6278_v45 = vpack.c.bf16 %v685_v15, %v685_v15  ;;  %v7048_v22 = vld [vmem:[#allocation2 + $0x150] sm:$0xff]  }
 0x147   : > { %1777 = vst [vmem:[#allocation2 + $0x174] sm:$0xf] %v1776_v59  ;;  %v1772_v17 = vsel %vm7772_vm4, %v1640_v16, %v1771_v61  ;;  %1474 = vst [vmem:[#allocation2 + $0x60] sm:$0xf] %v1473_v19  ;;  %v1661_v2 = vor.u32 %v1660_v53, %v1659_v4  ;;  %v8035_v21 = vrot.slane %v1297_v12, 7  ;;  %v1650_v23 = vrot.slane %v1297_v12, 4  ;;  %6610 = vmatmul.mubr.msk.bf16.gmra.mxu1 %vm1956_vm9, %v7041_v47 }
 0x148   : > { %1773 = vst [vmem:[#allocation2 + $0x16c] sm:$0xf] %v1772_v17  ;;  %v1651_v25 = vrot.slane %v1300_v42, 5  ;;  %v619_v8 = vadd.f32 %v8040_v26, %v7938_v44  ;;  %v640_v0 = vadd.f32 %v8040_v26, %v7970_v32  ;;  %v632_v28 = vadd.f32 %v8040_v26, %v7995_v30  ;;  %6613 = vmatprep.mubr.msk.bf16.mxu1 %vm1956_vm9, %v7043_v3  ;;  %v1783_v56 = vld [vmem:[#allocation2 + $0x184] sm:$0xf]  ;;  %v7050_v4 = vld [vmem:[#allocation2 + $0x158] sm:$0xff]  }
 0x149   : > { %v1662_v24 = vrot.slane %v1661_v2, 4  ;;  %v1302_v31 = vor.u32 %v1300_v42, %v8035_v21  ;;  %v1303_v33 = vrot.slane %v8035_v21, 4  ;;  %6670 = vmatmul.mubr.msk.bf16.gmra.mxu0 %vm1956_vm9, %v7046_v38  ;;  %v1321_v44 = vshrl.u32 %v6278_v45, 16  ;;  %1548 = vst.msk [vmem:[#allocation2 + $0xf4] sm:$0xf] %vm710_vm8, %v6278_v45  ;;  %v7052_v19 = vld [vmem:[#allocation2 + $0x160] sm:$0xff]  }
 0x14a   : > { %v1652_v34 = vor.u32 %v1651_v25, %v1650_v23  ;;  %v1324_v35 = vshll.u32 %v6278_v45, 16  ;;  %v683_v32 = vmax.f32 %v619_v8, 0.0  ;;  %6673 = vmatprep.mubr.msk.bf16.mxu0 %vm1956_vm9, %v7048_v22  ;;  %v688_v41 = vmax.f32 %v640_v0, 0.0  ;;  %v1480_v12 = vld [vmem:[#allocation2 + $0x70] sm:$0xf] }
 0x14b   : > { %v1469_v40 = vsel %vm7739_vm14, %v1302_v31, %v1468_v13  ;;  %v686_v43 = vmax.f32 %v632_v28, 0.0  ;;  %v8060_v30 = vadd.f32 %v8040_v26, %v6586_v55  ;;  %v1323_v49 = vrot.slane %v1321_v44, 7  ;;  %v647_v55 = vpop.f32.mrf.mxu0  ;;  %v1779_v47 = vld [vmem:[#allocation2 + $0x17c] sm:$0xf]  ;;  %v1476_v0 = vld [vmem:[#allocation2 + $0x68] sm:$0xf] }
 0x14c   : > { %1470 = vst [vmem:[#allocation2 + $0x58] sm:$0xf] %v1469_v40  ;;  %v1653_v48 = vrot.slane %v1652_v34, 4  ;;  %v1663_v50 = vrot.slane %v1324_v35, 5  ;;  %v1665_v52 = vrot.slane %v1321_v44, 4  ;;  %v6276_v58 = vpack.c.bf16 %v683_v32, %v683_v32 }
 0x14d   : > { %v6281_v63 = vpack.c.bf16 %v688_v41, %v688_v41  ;;  %v6279_v60 = vpack.c.bf16 %v686_v43, %v686_v43  ;;  %v689_v61 = vmax.f32 %v8060_v30, 0.0  ;;  %v1326_v6 = vor.u32 %v1324_v35, %v1323_v49  ;;  %v6590_v2 = vpop.f32.mrf.mxu0 }
 0x14e   : > { %v1664_v62 = vsel %vm7753_vm15, %v1662_v24, %v1663_v50  ;;  %v1666_v20 = vor.u32 %v1665_v52, %v1663_v50  ;;  %v8066_v9 = vadd.f32 %v8040_v26, %v634_v54  ;;  %v1305_v51 = vshrl.u32 %v6276_v58, 16  ;;  %1546 = vst.msk [vmem:[#allocation2 + $0xec] sm:$0xf] %vm710_vm8, %v6276_v58  ;;  %v7055_v50 = vld [vmem:[#allocation2 + $0x170] sm:$0xff]  }
 0x14f   : > { %1782 = vst.msk [vmem:[#allocation2 + $0x180] sm:$0xf] %vm710_vm8, %v1664_v62  ;;  %v1308_v10 = vshll.u32 %v6276_v58, 16  ;;  %v1345_v11 = vshrl.u32 %v6281_v63, 16  ;;  %v1348_v37 = vshll.u32 %v6281_v63, 16  ;;  %v1327_v16 = vsel %vm7761_vm1, %v1319_v5, %v1326_v6  ;;  %v7054_v21 = vld [vmem:[#allocation2 + $0x168] sm:$0xff]  }
 0x150   : > { %1551 = vst.msk [vmem:[#allocation2 + $0x100] sm:$0xf] %vm710_vm8, %v6281_v63  ;;  %1549 = vst.msk [vmem:[#allocation2 + $0xf8] sm:$0xf] %vm710_vm8, %v6279_v60  ;;  %v1667_v53 = vrot.slane %v1666_v20, 4  ;;  %v1329_v38 = vshrl.u32 %v6279_v60, 16  ;;  %v6282_v30 = vpack.c.bf16 %v689_v61, %v689_v61  ;;  %v648_v58 = vadd.f32 %v8040_v26, %v647_v55 }
 0x151   : > { %v1332_v59 = vshll.u32 %v6279_v60, 16  ;;  %1475 = vst.msk [vmem:[#allocation2 + $0x64] sm:$0xf] %vm710_vm8, %v1327_v16  ;;  %v1307_v42 = vrot.slane %v1305_v51, 7  ;;  %v1654_v13 = vrot.slane %v1308_v10, 5  ;;  %v1656_v15 = vrot.slane %v1305_v51, 4  ;;  %6674 = vmatmul.mubr.msk.bf16.gmra.mxu0 %vm1956_vm9, %v7050_v4 }
 0x152   : > { %v8077_v54 = vrot.slane %v1345_v11, 7  ;;  %v1784_v57 = vsel %vm7772_vm4, %v1667_v53, %v1783_v56  ;;  %v1677_v3 = vrot.slane %v1345_v11, 4  ;;  %v1678_v5 = vrot.slane %v1348_v37, 5  ;;  %6677 = vmatprep.mubr.msk.bf16.mxu0 %vm1956_vm9, %v7052_v19  ;;  %v7047_v63 = vld [vmem:[#allocation2 + $0xf0] sm:$0xff]   ;;  %1552 = vst.msk [vmem:[#allocation2 + $0x104] sm:$0xf] %vm710_vm8, %v6282_v30 }
 0x153   : > { %v8082_v17 = vrot.slane %v1329_v38, 7  ;;  %1785 = vst [vmem:[#allocation2 + $0x184] sm:$0xf] %v1784_v57  ;;  %v1310_v23 = vor.u32 %v1308_v10, %v1307_v42  ;;  %v1655_v25 = vsel %vm7753_vm15, %v1653_v48, %v1654_v13  ;;  %v1657_v45 = vor.u32 %v1656_v15, %v1654_v13  ;;  %v650_v48 = vpop.f32.mrf.mxu0 }
 0x154   : > { %v1350_v8 = vor.u32 %v1348_v37, %v8077_v54  ;;  %1778 = vst.msk [vmem:[#allocation2 + $0x178] sm:$0xf] %vm710_vm8, %v1655_v25  ;;  %v1351_v22 = vrot.slane %v8077_v54, 4  ;;  %v1679_v24 = vor.u32 %v1678_v5, %v1677_v3  ;;  %v1668_v32 = vrot.slane %v1329_v38, 4  ;;  %v1791_v37 = vld [vmem:[#allocation2 + $0x194] sm:$0xf] }
 0x155   : > { %v1334_v31 = vor.u32 %v1332_v59, %v8082_v17  ;;  %v1335_v28 = vrot.slane %v8082_v17, 4  ;;  %v1311_v34 = vsel %vm7761_vm1, %v1303_v33, %v1310_v23  ;;  %v1658_v44 = vrot.slane %v1657_v45, 4  ;;  %v7045_v49 = vld [vmem:[#allocation2 + $0xe8] sm:$0xff]   ;;  %v1488_v23 = vld [vmem:[#allocation2 + $0x80] sm:$0xf] }
 0x156   : > { %v1481_v35 = vsel %vm7739_vm14, %v1350_v8, %v1480_v12  ;;  %1471 = vst.msk [vmem:[#allocation2 + $0x5c] sm:$0xf] %vm710_vm8, %v1311_v34  ;;  %v1680_v40 = vrot.slane %v1679_v24, 4  ;;  %v1669_v43 = vrot.slane %v1332_v59, 5  ;;  %v687_v52 = vmax.f32 %v8066_v9, 0.0  ;;  %6614 = vmatmul.mubr.msk.bf16.gmra.mxu1 %vm1956_vm9, %v7045_v49 }
 0x157   : > { %1482 = vst [vmem:[#allocation2 + $0x70] sm:$0xf] %v1481_v35  ;;  %v1477_v41 = vsel %vm7739_vm14, %v1334_v31, %v1476_v0  ;;  %v1780_v33 = vsel %vm7772_vm4, %v1658_v44, %v1779_v47  ;;  %v656_v56 = vadd.f32 %v8040_v26, %v8054_v39  ;;  %v1353_v6 = vshrl.u32 %v6282_v30, 16  ;;  %6617 = vmatprep.mubr.msk.bf16.mxu1 %vm1956_vm9, %v7047_v63  ;;  %v1787_v5 = vld [vmem:[#allocation2 + $0x18c] sm:$0xf] }
 0x158   : > { %1478 = vst [vmem:[#allocation2 + $0x68] sm:$0xf] %v1477_v41  ;;  %1781 = vst [vmem:[#allocation2 + $0x17c] sm:$0xf] %v1780_v33  ;;  %v1670_v60 = vor.u32 %v1669_v43, %v1668_v32  ;;  %v1356_v61 = vshll.u32 %v6282_v30, 16  ;;  %v659_v62 = vadd.f32 %v8040_v26, %v6590_v2  ;;  %v6280_v20 = vpack.c.bf16 %v687_v52, %v687_v52 }
 0x159   : > { %v692_v4 = vmax.f32 %v656_v56, 0.0  ;;  %v690_v51 = vmax.f32 %v648_v58, 0.0  ;;  %v8111_v9 = vadd.f32 %v8040_v26, %v650_v48  ;;  %6678 = vmatmul.mubr.msk.bf16.gmra.mxu0 %vm1956_vm9, %v7054_v21  ;;  %v1355_v55 = vrot.slane %v1353_v6, 7  ;;  %v1484_v43 = vld [vmem:[#allocation2 + $0x78] sm:$0xf]  ;;  %v7051_v56 = vld [vmem:[#allocation2 + $0x100] sm:$0xff]  }
 0x15a   : > { %v1671_v39 = vrot.slane %v1670_v60, 4  ;;  %v1681_v10 = vrot.slane %v1356_v61, 5  ;;  %v1683_v11 = vrot.slane %v1353_v6, 4  ;;  %6681 = vmatprep.mubr.msk.bf16.mxu0 %vm1956_vm9, %v7055_v50  ;;  %v1337_v16 = vshrl.u32 %v6280_v20, 16  ;;  %1550 = vst.msk [vmem:[#allocation2 + $0xfc] sm:$0xf] %vm710_vm8, %v6280_v20 }
 0x15b   : > { %v1340_v53 = vshll.u32 %v6280_v20, 16  ;;  %v6285_v12 = vpack.c.bf16 %v692_v4, %v692_v4  ;;  %v6283_v38 = vpack.c.bf16 %v690_v51, %v690_v51  ;;  %v1358_v59 = vor.u32 %v1356_v61, %v1355_v55  ;;  %v7060_v30 = vld [vmem:[#allocation2 + $0x180] sm:$0xff]  }
 0x15c   : > { %v1682_v26 = vsel %vm7753_vm15, %v1680_v40, %v1681_v10  ;;  %v1684_v19 = vor.u32 %v1683_v11, %v1681_v10  ;;  %v693_v42 = vmax.f32 %v659_v62, 0.0  ;;  %v1339_v13 = vrot.slane %v1337_v16, 7 }
 0x15d   : > { %1790 = vst.msk [vmem:[#allocation2 + $0x190] sm:$0xf] %vm710_vm8, %v1682_v26  ;;  %v1672_v15 = vrot.slane %v1340_v53, 5  ;;  %v1674_v54 = vrot.slane %v1337_v16, 4  ;;  %v1377_v57 = vshrl.u32 %v6285_v12, 16  ;;  %v1359_v47 = vsel %vm7761_vm1, %v1351_v22, %v1358_v59 }
 0x15e   : > { %1555 = vst.msk [vmem:[#allocation2 + $0x110] sm:$0xf] %vm710_vm8, %v6285_v12  ;;  %1553 = vst.msk [vmem:[#allocation2 + $0x108] sm:$0xf] %vm710_vm8, %v6283_v38  ;;  %v1685_v3 = vrot.slane %v1684_v19, 4  ;;  %v1380_v2 = vshll.u32 %v6285_v12, 16  ;;  %v1342_v45 = vor.u32 %v1340_v53, %v1339_v13  ;;  %v6286_v52 = vpack.c.bf16 %v693_v42, %v693_v42 }
 0x15f   : > { %v1361_v25 = vshrl.u32 %v6283_v38, 16  ;;  %1483 = vst.msk [vmem:[#allocation2 + $0x74] sm:$0xf] %vm710_vm8, %v1359_v47  ;;  %v1673_v8 = vsel %vm7753_vm15, %v1671_v39, %v1672_v15  ;;  %v1675_v0 = vor.u32 %v1674_v54, %v1672_v15  ;;  %v1379_v24 = vrot.slane %v1377_v57, 7  ;;  %v7058_v35 = vld [vmem:[#allocation2 + $0x178] sm:$0xff]  }
 0x160   : > { %v1792_v31 = vsel %vm7772_vm4, %v1685_v3, %v1791_v37  ;;  %1786 = vst.msk [vmem:[#allocation2 + $0x188] sm:$0xf] %vm710_vm8, %v1673_v8  ;;  %v1695_v34 = vrot.slane %v1377_v57, 4  ;;  %v1696_v22 = vrot.slane %v1380_v2, 5  ;;  %v1343_v32 = vsel %vm7761_vm1, %v1335_v28, %v1342_v45  ;;  %1556 = vst.msk [vmem:[#allocation2 + $0x114] sm:$0xf] %vm710_vm8, %v6286_v52 }
 0x161   : > { %v8130_v44 = vrot.slane %v1361_v25, 7  ;;  %1793 = vst [vmem:[#allocation2 + $0x194] sm:$0xf] %v1792_v31  ;;  %v1676_v40 = vrot.slane %v1675_v0, 4  ;;  %v1382_v41 = vor.u32 %v1380_v2, %v1379_v24  ;;  %1479 = vst.msk [vmem:[#allocation2 + $0x6c] sm:$0xf] %vm710_vm8, %v1343_v32  ;;  %6682 = vmatmul.mubr.msk.bf16.gmra.mxu0 %vm1956_vm9, %v7058_v35 }
 0x162   : > { %v1697_v48 = vor.u32 %v1696_v22, %v1695_v34  ;;  %v1364_v49 = vshll.u32 %v6283_v38, 16  ;;  %v1686_v21 = vrot.slane %v1361_v25, 4  ;;  %v7049_v50 = vld [vmem:[#allocation2 + $0xf8] sm:$0xff]   ;;  %v691_v28 = vmax.f32 %v8111_v9, 0.0  ;;  %6685 = vmatprep.mubr.msk.bf16.mxu0 %vm1956_vm9, %v7060_v30  ;;  %v1799_v16 = vld [vmem:[#allocation2 + $0x1a4] sm:$0xf] }
 0x163   : > { %v1788_v33 = vsel %vm7772_vm4, %v1676_v40, %v1787_v5  ;;  %v1489_v17 = vsel %vm7739_vm14, %v1382_v41, %v1488_v23  ;;  %6618 = vmatmul.mubr.msk.bf16.gmra.mxu1 %vm1956_vm9, %v7049_v50  ;;  %v1385_v6 = vshrl.u32 %v6286_v52, 16  ;;  %v1388_v61 = vshll.u32 %v6286_v52, 16  ;;  %v1795_v54 = vld [vmem:[#allocation2 + $0x19c] sm:$0xf]  ;;  %v7056_v57 = vld [vmem:[#allocation2] sm:$0xff]   ;;  %v7057_v0 = vld [vmem:[#allocation2 + $0x8] sm:$0xff]  }
 0x164   : > { %1789 = vst [vmem:[#allocation2 + $0x18c] sm:$0xf] %v1788_v33  ;;  %1490 = vst [vmem:[#allocation2 + $0x80] sm:$0xf] %v1489_v17  ;;  %v1366_v58 = vor.u32 %v1364_v49, %v8130_v44  ;;  %v1687_v63 = vrot.slane %v1364_v49, 5  ;;  %v1698_v60 = vrot.slane %v1697_v48, 4  ;;  %v6284_v62 = vpack.c.bf16 %v691_v28, %v691_v28  ;;  %6621 = vmatprep.mubr.msk.bf16.mxu1 %vm1956_vm9, %v7051_v56 }
 0x165   : > { %v1387_v51 = vrot.slane %v1385_v6, 7  ;;  %v1699_v9 = vrot.slane %v1388_v61, 5  ;;  %v1701_v39 = vrot.slane %v1385_v6, 4  ;;  %v1383_v10 = vrot.slane %v1379_v24, 4  ;;  %v8177_v31 = vld [vmem:[%s9301_s3 + $0x14] sm:$0xf] }
 0x166   : > { %v1485_v20 = vsel %vm7739_vm14, %v1366_v58, %v1484_v43  ;;  %v1688_v4 = vor.u32 %v1687_v63, %v1686_v21  ;;  %v1369_v55 = vshrl.u32 %v6284_v62, 16  ;;  %1554 = vst.msk [vmem:[#allocation2 + $0x10c] sm:$0xf] %vm710_vm8, %v6284_v62  ;;  %v1367_v11 = vrot.slane %v8130_v44, 4  ;;  %v7070_v22 = vld [vmem:[#allocation2 + $0xa0] sm:$0xff]   ;;  %v7072_v35 = vld [vmem:[#allocation2 + $0xa8] sm:$0xff]  }
 0x167   : > { %1486 = vst [vmem:[#allocation2 + $0x78] sm:$0xf] %v1485_v20  ;;  %v1372_v53 = vshll.u32 %v6284_v62, 16  ;;  %v1390_v12 = vor.u32 %v1388_v61, %v1387_v51  ;;  %v1700_v38 = vsel %vm7753_vm15, %v1698_v60, %v1699_v9  ;;  %v1702_v7 = vor.u32 %v1701_v39, %v1699_v9  ;;  %v7063_v44 = vld [vmem:[#allocation2 + $0x20] sm:$0xff]   ;;  %v7065_v41 = vld [vmem:[#allocation2 + $0x28] sm:$0xff]   ;;  %v7074_v43 = vld [vmem:[#allocation2 + $0xb0] sm:$0xff]  }
 0x168   : > { %v1689_v37 = vrot.slane %v1688_v4, 4  ;;  %v1371_v59 = vrot.slane %v1369_v55, 7  ;;  %1798 = vst.msk [vmem:[#allocation2 + $0x1a0] sm:$0xf] %vm710_vm8, %v1700_v38  ;;  %v1692_v19 = vrot.slane %v1369_v55, 4  ;;  %v7064_v2 = vld [vmem:[#allocation2 + $0x190] sm:$0xff]  }
 0x169   : > { %v1690_v26 = vrot.slane %v1372_v53, 5  ;;  %v1391_v42 = vsel %vm7761_vm1, %v1383_v10, %v1390_v12  ;;  %v1703_v13 = vrot.slane %v1702_v7, 4  ;;  %v2990_v24 = vsel %vm2005_vm7, %v7955_v1, 0  ;;  %v7061_v1 = vld [vmem:[#allocation2 + $0x18] sm:$0xff]   ;;  %v8192_v40 = vld [vmem:[%s9301_s3 + $0x20] sm:$0xf] }
 0x16a   : > { %v1374_v15 = vor.u32 %v1372_v53, %v1371_v59  ;;  %1491 = vst.msk [vmem:[#allocation2 + $0x84] sm:$0xf] %vm710_vm8, %v1391_v42  ;;  %v4074_v32 = vsel %vm2005_vm7, %v7990_v14, 0  ;;  %v7067_v30 = vld [vmem:[#allocation2 + $0x30] sm:$0xff]   ;;  %v7076_v14 = vld [vmem:[#allocation2 + $0xb8] sm:$0xff]   ;;  %v7071_v17 = vld [vmem:[#allocation2 + $0x40] sm:$0xff]  }
 0x16b   : > { %v7062_v47 = vld [vmem:[#allocation2 + $0x188] sm:$0xff]   ;;  %v1691_v3 = vsel %vm7753_vm15, %v1689_v37, %v1690_v26  ;;  %v1693_v5 = vor.u32 %v1692_v19, %v1690_v26  ;;  %v1800_v23 = vsel %vm7772_vm4, %v1703_v13, %v1799_v16  ;;  %v7069_v33 = vld [vmem:[#allocation2 + $0x38] sm:$0xff]   ;;  %v7078_v52 = vld [vmem:[#allocation2 + $0xc0] sm:$0xff]   ;;  %v3712_v53 = vsel %vm2005_vm7, %v8177_v31, 0 }
 0x16c   : > { %v1375_v25 = vsel %vm7761_vm1, %v1367_v11, %v1374_v15  ;;  %1794 = vst.msk [vmem:[#allocation2 + $0x198] sm:$0xf] %vm710_vm8, %v1691_v3  ;;  %6686 = vmatmul.mubr.msk.bf16.gmra.mxu0 %vm1956_vm9, %v7062_v47  ;;  %1801 = vst [vmem:[#allocation2 + $0x1a4] sm:$0xf] %v1800_v23  ;;  %v778_v48 = vld [vmem:[#allocation2 + $0x88] sm:$0x1] }
 0x16d   : > { %1487 = vst.msk [vmem:[#allocation2 + $0x7c] sm:$0xf] %vm710_vm8, %v1375_v25  ;;  %v1694_v45 = vrot.slane %v1693_v5, 4  ;;  %v7053_v8 = vld [vmem:[#allocation2 + $0x108] sm:$0xff]   ;;  %6689 = vmatprep.mubr.msk.bf16.mxu0 %vm1956_vm9, %v7064_v2  ;;  %v779_v21 = vsel %vm7464_vm3, 0, %v778_v48  ;;  %v7075_v58 = vld [vmem:[#allocation2 + $0x50] sm:$0xff]  }
 0x16e   : > { %6622 = vmatmul.mubr.msk.bf16.gmra.mxu1 %vm1956_vm9, %v7053_v8  ;;  %v943_v49 = vld [vmem:[#allocation2 + $0x8c] sm:$0x8]  ;;  %780 = vst [vmem:[#allocation2 + $0x88] sm:$0x1] %v779_v21  ;;  %v7082_v63 = vld [vmem:[#allocation2 + $0xd0] sm:$0xff]   ;;  %v7084_v60 = vld [vmem:[#allocation2 + $0xd8] sm:$0xff]  }
 0x16f   : > { %v1796_v29 = vsel %vm7772_vm4, %v1694_v45, %v1795_v54  ;;  %6627 = vmatprep.mubr.msk.bf16.mxu1 %vm1956_vm9, %v7056_v57  ;;  %v944_v50 = vsel %vm7476_vm6, 0, %v943_v49  ;;  %v7080_v28 = vld [vmem:[#allocation2 + $0xc8] sm:$0xff]   ;;  %v7077_v6 = vld [vmem:[#allocation2 + $0x58] sm:$0xff]   ;;  %v7079_v61 = vld [vmem:[#allocation2 + $0x60] sm:$0xff]   ;;  %v4796_v13 = vsel %vm2005_vm7, %v8192_v40, 0 }
 0x170   : > { %1797 = vst [vmem:[#allocation2 + $0x19c] sm:$0xf] %v1796_v29  ;;  %945 = vst [vmem:[#allocation2 + $0x8c] sm:$0x8] %v944_v50  ;;  %v7073_v56 = vld [vmem:[#allocation2 + $0x48] sm:$0xff]   ;;  %v7086_v62 = vld [vmem:[#allocation2 + $0xe0] sm:$0xff]  }
 0x171   : > { %v7088_v20 = vld [vmem:[#allocation2 + $0xe8] sm:$0xff]   ;;  %v7083_v51 = vld [vmem:[#allocation2 + $0x70] sm:$0xff]   ;;  %v7092_v39 = vld [vmem:[#allocation2 + $0xf8] sm:$0xff]  }
 0x172   : > { %v7081_v4 = vld [vmem:[#allocation2 + $0x68] sm:$0xff]   ;;  %v7090_v9 = vld [vmem:[#allocation2 + $0xf0] sm:$0xff]   ;;  %v7094_v11 = vld [vmem:[#allocation2 + $0x100] sm:$0xff]  }
 0x173   : > { %v7087_v10 = vld [vmem:[#allocation2 + $0x8] sm:$0xff]   ;;  %v7089_v16 = vld [vmem:[#allocation2 + $0x10] sm:$0xff]   ;;  %v7091_v12 = vld [vmem:[#allocation2 + $0x18] sm:$0xff]  }
 0x174   : > { %v7085_v55 = vld [vmem:[#allocation2 + $0x78] sm:$0xff]   ;;  %v7096_v37 = vld [vmem:[#allocation2 + $0x108] sm:$0xff]   ;;  %v7098_v7 = vld [vmem:[#allocation2 + $0x110] sm:$0xff]  }
 0x175   : > { %v8231_v38 = vld [vmem:[%s9301_s3 + $0x1c] sm:$0xf]  ;;  %v7100_v59 = vld [vmem:[#allocation2 + $0x10] sm:$0xff]   ;;  %v7093_v26 = vld [vmem:[#allocation2 + $0x20] sm:$0xff]  }
 0x176   : > { %6628 = vmatmul.mubr.msk.bf16.vlgmr.msra.gmra.mxu1 %vm1956_vm9, %v7057_v0  ;;  %v7095_v19 = vld [vmem:[#allocation2 + $0x28] sm:$0xff]   ;;  %v7102_v42 = vld [vmem:[#allocation2 + $0x18] sm:$0xff]   ;;  %v7104_v15 = vld [vmem:[#allocation2 + $0x20] sm:$0xff]  }
 0x177   : > { %v7066_v34 = vld [vmem:[#allocation2 + $0x198] sm:$0xff]   ;;  %6694 = vmatpush3.bf16.msra.mxu1 %v2990_v24  ;;  %6631 = vmatprep.mubr.msk.bf16.mxu1 %vm1956_vm9, %v7059_v36  ;;  %v7097_v54 = vld [vmem:[#allocation2 + $0x30] sm:$0xff]   ;;  %v7106_v47 = vld [vmem:[#allocation2 + $0x28] sm:$0xff]  }
 0x178   : > { %6690 = vmatmul.mubr.msk.bf16.gmra.mxu0 %vm1956_vm9, %v7066_v34  ;;  %6939 = vmatprep.subr.msk.bf16.mxu1 %vm2005_vm7, %v8177_v31  ;;  %v7099_v57 = vld [vmem:[#allocation2 + $0x38] sm:$0xff]   ;;  %v7108_v3 = vld [vmem:[#allocation2 + $0x30] sm:$0xff]   ;;  %v7101_v5 = vld [vmem:[#allocation2 + $0x40] sm:$0xff]  }
 0x179   : > { %6729 = vmatprep.mubr.msk.bf16.mxu0 %vm1956_vm9, %v7068_v46  ;;  %v7103_v2 = vld [vmem:[#allocation2 + $0x48] sm:$0xff]   ;;  %v7110_v23 = vld [vmem:[#allocation2 + $0x38] sm:$0xff]   ;;  %v7112_v25 = vld [vmem:[#allocation2 + $0x40] sm:$0xff]  }
 0x17a   : > { %v7105_v29 = vld [vmem:[#allocation2 + $0x50] sm:$0xff]   ;;  %v7107_v36 = vld [vmem:[#allocation2 + $0x58] sm:$0xff]   ;;  %v7114_v0 = vld [vmem:[#allocation2 + $0x48] sm:$0xff]  }
 0x17b   : > { %v7116_v24 = vld [vmem:[#allocation2 + $0x50] sm:$0xff]   ;;  %v7109_v46 = vld [vmem:[#allocation2 + $0x60] sm:$0xff]   ;;  %v886_v49 = vld [vmem:[#allocation2 + $0x1a8] sm:$0x1] }
 0x17c   : > { %v1051_v21 = vld [vmem:[#allocation2 + $0x1ac] sm:$0x8]  ;;  %v7117_v50 = vld [vmem:[#allocation2 + $0x80] sm:$0xff]  }
 0x17e   : > { %6632 = vmatmul.mubr.msk.bf16.gmra.mxu1 %vm1956_vm9, %v7061_v1  ;;  %v7111_v1 = vld [vmem:[#allocation2 + $0x68] sm:$0xff]  }
 0x17f   : > { %6635 = vmatprep.mubr.msk.bf16.mxu1 %vm1956_vm9, %v7063_v44  ;;  %v7120_v44 = vld [vmem:[#allocation2 + $0x60] sm:$0xff]  }
 0x180   : > { %6730 = vmatmul.mubr.msk.bf16.vlgmr.msra.gmra.mxu0 %vm1956_vm9, %v7070_v22  ;;  %v7118_v22 = vld [vmem:[#allocation2 + $0x58] sm:$0xff]  }
 0x181   : > { %6733 = vmatprep.mubr.msk.bf16.mxu0 %vm1956_vm9, %v7072_v35  ;;  %6796 = vmatpush3.bf16.msra.mxu0 %v4074_v32 }
 0x182   : > { %6942 = vmatprep.subr.msk.bf16.mxu0 %vm2005_vm7, %v8192_v40  ;;  %v7113_v40 = vld [vmem:[#allocation2 + $0x70] sm:$0xff]  }
 0x186   : > { %6636 = vmatmul.mubr.msk.bf16.gmra.mxu1 %vm1956_vm9, %v7065_v41  ;;  %v7115_v41 = vld [vmem:[#allocation2 + $0x78] sm:$0xff]  }
 0x187   : > { %6639 = vmatprep.mubr.msk.bf16.mxu1 %vm1956_vm9, %v7067_v30  ;;  %v7124_v30 = vld [vmem:[#allocation2 + $0x70] sm:$0xff]  }
 0x188   : > { %6734 = vmatmul.mubr.msk.bf16.gmra.mxu0 %vm1956_vm9, %v7074_v43  ;;  %v7122_v43 = vld [vmem:[#allocation2 + $0x68] sm:$0xff]  }
 0x189   : > { %6737 = vmatprep.mubr.msk.bf16.mxu0 %vm1956_vm9, %v7076_v14 }
 0x18e   : > { %6640 = vmatmul.mubr.msk.bf16.gmra.mxu1 %vm1956_vm9, %v7069_v33  ;;  %v887_v33 = vsel %vm7464_vm3, 0, %v886_v49  ;;  %v7137_v49 = vld [vmem:[#allocation2 + $0x170] sm:$0xff]  }
 0x18f   : > { %6643 = vmatprep.mubr.msk.bf16.mxu1 %vm1956_vm9, %v7071_v17  ;;  %v1052_v17 = vsel %vm7476_vm6, 0, %v1051_v21  ;;  %888 = vst [vmem:[#allocation2 + $0x1a8] sm:$0x1] %v887_v33  ;;  %v7139_v21 = vld [vmem:[#allocation2 + $0x178] sm:$0xff]  }
 0x190   : > { %6738 = vmatmul.mubr.msk.bf16.gmra.mxu0 %vm1956_vm9, %v7078_v52  ;;  %v7119_v52 = vld [vmem:[#allocation2 + $0x128] sm:$0xff]   ;;  %1053 = vst [vmem:[#allocation2 + $0x1ac] sm:$0x8] %v1052_v17 }
 0x191   : > { %6741 = vmatprep.mubr.msk.bf16.mxu0 %vm1956_vm9, %v7080_v28  ;;  %v7126_v28 = vld [vmem:[#allocation2 + $0x78] sm:$0xff]   ;;  %v7146_v17 = vld [vmem:[#allocation2 + $0x168] sm:$0xff]  }
 0x196   : > { %6644 = vmatmul.mubr.msk.bf16.gmra.mxu1 %vm1956_vm9, %v7073_v56  ;;  %v7128_v56 = vld [vmem:[#allocation2 + $0x80] sm:$0xff]  }
 0x197   : > { %6647 = vmatprep.mubr.msk.bf16.mxu1 %vm1956_vm9, %v7075_v58 }
 0x198   : > { %6742 = vmatmul.mubr.msk.bf16.gmra.mxu0 %vm1956_vm9, %v7082_v63  ;;  %v832_v63 = vld [vmem:[#allocation2 + $0x118] sm:$0x1] }
 0x199   : > { %6745 = vmatprep.mubr.msk.bf16.mxu0 %vm1956_vm9, %v7084_v60  ;;  %v997_v60 = vld [vmem:[#allocation2 + $0x11c] sm:$0x8] }
 0x19e   : > { %6648 = vmatmul.mubr.msk.bf16.gmra.mxu1 %vm1956_vm9, %v7077_v6  ;;  %v833_v6 = vsel %vm7464_vm3, 0, %v832_v63 }
 0x19f   : > { %6651 = vmatprep.mubr.msk.bf16.mxu1 %vm1956_vm9, %v7079_v61  ;;  %v998_v61 = vsel %vm7476_vm6, 0, %v997_v60  ;;  %834 = vst [vmem:[#allocation2 + $0x118] sm:$0x1] %v833_v6 }
 0x1a0   : > { %6746 = vmatmul.mubr.msk.bf16.gmra.mxu0 %vm1956_vm9, %v7086_v62  ;;  %999 = vst [vmem:[#allocation2 + $0x11c] sm:$0x8] %v998_v61  ;;  %v7141_v61 = vld [vmem:[#allocation2 + $0x180] sm:$0xff]  }
 0x1a1   : > { %6749 = vmatprep.mubr.msk.bf16.mxu0 %vm1956_vm9, %v7088_v20  ;;  %v7121_v20 = vld [vmem:[#allocation2 + $0x130] sm:$0xff]  }
 0x1a6   : > { %6652 = vmatmul.mubr.msk.bf16.gmra.mxu1 %vm1956_vm9, %v7081_v4 }
 0x1a7   : > { %6655 = vmatprep.mubr.msk.bf16.mxu1 %vm1956_vm9, %v7083_v51  ;;  %v4435_v51 = vsel %vm2005_vm7, %v8231_v38, 0 }
 0x1a8   : > { %6750 = vmatmul.mubr.msk.bf16.gmra.mxu0 %vm1956_vm9, %v7090_v9  ;;  %v7130_v9 = vld [vmem:[#allocation2 + $0x88] sm:$0xff]  }
 0x1a9   : > { %6753 = vmatprep.mubr.msk.bf16.mxu0 %vm1956_vm9, %v7092_v39  ;;  %v7123_v39 = vld [vmem:[#allocation2 + $0x138] sm:$0xff]  }
 0x1ae   : > { %6656 = vmatmul.mubr.msk.bf16.gmra.mxu1 %vm1956_vm9, %v7085_v55 }
 0x1af   : > { %6695 = vmatprep.mubr.msk.bf16.mxu1 %vm1956_vm9, %v7087_v10 }
 0x1b0   : > { %6754 = vmatmul.mubr.msk.bf16.gmra.mxu0 %vm1956_vm9, %v7094_v11 }
 0x1b1   : > { %6757 = vmatprep.mubr.msk.bf16.mxu0 %vm1956_vm9, %v7096_v37 }
 0x1b6   : > { %6696 = vmatmul.mubr.msk.bf16.vlgmr.msra.gmra.mxu1 %vm1956_vm9, %v7089_v16 }
 0x1b7   : > { %6762 = vmatpush3.bf16.msra.mxu1 %v3712_v53  ;;  %6699 = vmatprep.mubr.msk.bf16.mxu1 %vm1956_vm9, %v7091_v12  ;;  %v7125_v53 = vld [vmem:[#allocation2 + $0x140] sm:$0xff]   ;;  %v7127_v12 = vld [vmem:[#allocation2 + $0x148] sm:$0xff]  }
 0x1b8   : > { %6758 = vmatmul.mubr.msk.bf16.gmra.mxu0 %vm1956_vm9, %v7098_v7  ;;  %6941 = vmatprep.subr.msk.bf16.mxu1 %vm2005_vm7, %v8231_v38  ;;  %v7134_v7 = vld [vmem:[#allocation2 + $0x138] sm:$0xff]  }
 0x1b9   : > { %6797 = vmatprep.mubr.msk.bf16.mxu0 %vm1956_vm9, %v7100_v59 }
 0x1be   : > { %6700 = vmatmul.mubr.msk.bf16.gmra.mxu1 %vm1956_vm9, %v7093_v26  ;;  %v7136_v26 = vld [vmem:[#allocation2 + $0x140] sm:$0xff]  }
 0x1bf   : > { %6703 = vmatprep.mubr.msk.bf16.mxu1 %vm1956_vm9, %v7095_v19 }
 0x1c0   : > { %6798 = vmatmul.mubr.msk.bf16.vlgmr.msra.gmra.mxu0 %vm1956_vm9, %v7102_v42 }
 0x1c1   : > { %6801 = vmatprep.mubr.msk.bf16.mxu0 %vm1956_vm9, %v7104_v15  ;;  %6864 = vmatpush3.bf16.msra.mxu0 %v4796_v13 }
 0x1c6   : > { %6704 = vmatmul.mubr.msk.bf16.gmra.mxu1 %vm1956_vm9, %v7097_v54  ;;  %v7129_v54 = vld [vmem:[#allocation2 + $0x150] sm:$0xff]  }
 0x1c7   : > { %6707 = vmatprep.mubr.msk.bf16.mxu1 %vm1956_vm9, %v7099_v57  ;;  %v7131_v57 = vld [vmem:[#allocation2 + $0x158] sm:$0xff]  }
 0x1c8   : > { %6802 = vmatmul.mubr.msk.bf16.gmra.mxu0 %vm1956_vm9, %v7106_v47 }
 0x1c9   : > { %6805 = vmatprep.mubr.msk.bf16.mxu0 %vm1956_vm9, %v7108_v3 }
 0x1ce   : > { %6708 = vmatmul.mubr.msk.bf16.gmra.mxu1 %vm1956_vm9, %v7101_v5  ;;  %v7138_v5 = vld [vmem:[#allocation2 + $0x148] sm:$0xff]  }
 0x1cf   : > { %6711 = vmatprep.mubr.msk.bf16.mxu1 %vm1956_vm9, %v7103_v2  ;;  %v7140_v2 = vld [vmem:[#allocation2 + $0x150] sm:$0xff]  }
 0x1d0   : > { %6806 = vmatmul.mubr.msk.bf16.gmra.mxu0 %vm1956_vm9, %v7110_v23 }
 0x1d1   : > { %6809 = vmatprep.mubr.msk.bf16.mxu0 %vm1956_vm9, %v7112_v25  ;;  %v8253_v45 = vpop.f32.mrf.mxu0 }
 0x1d3   : > { %v8255_v8 = vpop.f32.mrf.mxu0 }
 0x1d5   : > { %v8259_v31 = vpop.f32.mrf.mxu0 }
 0x1d6   : > { %6712 = vmatmul.mubr.msk.bf16.gmra.mxu1 %vm1956_vm9, %v7105_v29 }
 0x1d7   : > { %6715 = vmatprep.mubr.msk.bf16.mxu1 %vm1956_vm9, %v7107_v36  ;;  %v8263_v34 = vpop.f32.mrf.mxu0 }
 0x1d8   : > { %6810 = vmatmul.mubr.msk.bf16.gmra.mxu0 %vm1956_vm9, %v7114_v0  ;;  %v7133_v0 = vld [vmem:[#allocation2 + $0x160] sm:$0xff]  }
 0x1d9   : > { %6813 = vmatprep.mubr.msk.bf16.mxu0 %vm1956_vm9, %v7116_v24  ;;  %v7135_v24 = vld [vmem:[#allocation2 + $0x168] sm:$0xff]  }
 0x1de   : > { %6716 = vmatmul.mubr.msk.bf16.gmra.mxu1 %vm1956_vm9, %v7109_v46 }
 0x1df   : > { %6719 = vmatprep.mubr.msk.bf16.mxu1 %vm1956_vm9, %v7111_v1  ;;  %v8267_v35 = vpop.f32.mrf.mxu0 }
 0x1e0   : > { %6814 = vmatmul.mubr.msk.bf16.gmra.mxu0 %vm1956_vm9, %v7118_v22  ;;  %v7142_v22 = vld [vmem:[#allocation2 + $0x158] sm:$0xff]  }
 0x1e1   : > { %6817 = vmatprep.mubr.msk.bf16.mxu0 %vm1956_vm9, %v7120_v44  ;;  %v8271_v32 = vpop.f32.mrf.mxu0  ;;  %v7144_v44 = vld [vmem:[#allocation2 + $0x160] sm:$0xff]  }
 0x1e3   : > { %v8275_v14 = vpop.f32.mrf.mxu0 }
 0x1e5   : > { %v8279_v48 = vpop.f32.mrf.mxu0 }
 0x1e6   : > { %6720 = vmatmul.mubr.msk.bf16.gmra.mxu1 %vm1956_vm9, %v7113_v40 }
 0x1e7   : > { %6723 = vmatprep.mubr.msk.bf16.mxu1 %vm1956_vm9, %v7115_v41 }
 0x1e8   : > { %6818 = vmatmul.mubr.msk.bf16.gmra.mxu0 %vm1956_vm9, %v7122_v43 }
 0x1e9   : > { %6821 = vmatprep.mubr.msk.bf16.mxu0 %vm1956_vm9, %v7124_v30 }
 0x1ee   : > { %6724 = vmatmul.mubr.msk.bf16.gmra.mxu1 %vm1956_vm9, %v7117_v50 }
 0x1ef   : > { %6763 = vmatprep.mubr.msk.bf16.mxu1 %vm1956_vm9, %v7119_v52  ;;  %v7148_v52 = vld [vmem:[#allocation2 + $0x170] sm:$0xff]  }
 0x1f0   : > { %v8287_v58 = vpop.f32.mrf.mxu0  ;;  %6822 = vmatmul.mubr.msk.bf16.gmra.mxu0 %vm1956_vm9, %v7126_v28 }
 0x1f1   : > { %6825 = vmatprep.mubr.msk.bf16.mxu0 %vm1956_vm9, %v7128_v56 }
 0x1f2   : > { %v8295_v62 = vpop.f32.mrf.mxu0 }
 0x1f4   : > { %v8297_v4 = vpop.f32.mrf.mxu0 }
 0x1f6   : > { %v8301_v55 = vpop.f32.mrf.mxu0  ;;  %6764 = vmatmul.mubr.msk.bf16.vlgmr.msra.gmra.mxu1 %vm1956_vm9, %v7121_v20  ;;  %v7143_v20 = vld [vmem:[#allocation2 + $0x188] sm:$0xff]  }
 0x1f7   : > { %6830 = vmatpush3.bf16.msra.mxu1 %v4435_v51  ;;  %6767 = vmatprep.mubr.msk.bf16.mxu1 %vm1956_vm9, %v7123_v39  ;;  %v7150_v39 = vld [vmem:[#allocation2 + $0x178] sm:$0xff]  }
 0x1f8   : > { %v8305_v27 = vpop.f32.mrf.mxu0  ;;  %6826 = vmatmul.mubr.msk.bf16.gmra.mxu0 %vm1956_vm9, %v7130_v9 }
 0x1f9   : > { %6865 = vmatprep.mubr.msk.bf16.mxu0 %vm1956_vm9, %v7132_v18  ;;  %v7152_v18 = vld [vmem:[#allocation2 + $0x180] sm:$0xff]  }
 0x1fa   : > { %v8309_v10 = vpop.f32.mrf.mxu1  ;;  %v8311_v11 = vpop.f32.mrf.mxu0 }
 0x1fc   : > { %v8313_v37 = vpop.f32.mrf.mxu1  ;;  %v8315_v16 = vpop.f32.mrf.mxu0 }
 0x1fe   : > { %v8317_v38 = vpop.f32.mrf.mxu0  ;;  %6768 = vmatmul.mubr.msk.bf16.gmra.mxu1 %vm1956_vm9, %v7125_v53  ;;  %v8320_v59 = vpop.f32.mrf.mxu1 }
 0x1ff   : > { %6771 = vmatprep.mubr.msk.bf16.mxu1 %vm1956_vm9, %v7127_v12 }
 0x200   : > { %v8323_v19 = vpop.f32.mrf.mxu0  ;;  %6866 = vmatmul.mubr.msk.bf16.vlgmr.msra.gmra.mxu0 %vm1956_vm9, %v7134_v7  ;;  %v8329_v13 = vpop.f32.mrf.mxu1 }
 0x201   : > { %6869 = vmatprep.mubr.msk.bf16.mxu0 %vm1956_vm9, %v7136_v26  ;;  %v7145_v26 = vld [vmem:[#allocation2 + $0x190] sm:$0xff]  }
 0x202   : > { %v8327_v42 = vpop.f32.mrf.mxu0 }
 0x204   : > { %v8331_v15 = vpop.f32.mrf.mxu0 }
 0x206   : > { %v8333_v47 = vpop.f32.mrf.mxu0  ;;  %6772 = vmatmul.mubr.msk.bf16.gmra.mxu1 %vm1956_vm9, %v7129_v54 }
 0x207   : > { %v8336_v3 = vpop.f32.mrf.mxu1  ;;  %6775 = vmatprep.mubr.msk.bf16.mxu1 %vm1956_vm9, %v7131_v57 }
 0x208   : > { %6870 = vmatmul.mubr.msk.bf16.gmra.mxu0 %vm1956_vm9, %v7138_v5  ;;  %v7147_v5 = vld [vmem:[#allocation2 + $0x198] sm:$0xff]  }
 0x209   : > { %v8339_v23 = vpop.f32.mrf.mxu0  ;;  %6873 = vmatprep.mubr.msk.bf16.mxu0 %vm1956_vm9, %v7140_v2  ;;  %v8345_v29 = vpop.f32.mrf.mxu1 }
 0x20b   : > { %v8343_v25 = vpop.f32.mrf.mxu0  ;;  %v8352_v1 = vpop.f32.mrf.mxu1 }
 0x20d   : > { %v8347_v36 = vpop.f32.mrf.mxu0  ;;  %v8361_v43 = vpop.f32.mrf.mxu1 }
 0x20e   : > { %6776 = vmatmul.mubr.msk.bf16.gmra.mxu1 %vm1956_vm9, %v7133_v0  ;;  %9325 = vst [vmem:[#allocation10_spill] sm:$0xff] %v8361_v43  ;;  %v7154_v0 = vld [vmem:[#allocation2 + $0x188] sm:$0xff]  }
 0x20f   : > { %v8349_v46 = vpop.f32.mrf.mxu0  ;;  %6779 = vmatprep.mubr.msk.bf16.mxu1 %vm1956_vm9, %v7135_v24  ;;  %v7156_v24 = vld [vmem:[#allocation2 + $0x190] sm:$0xff]  }
 0x210   : > { %6874 = vmatmul.mubr.msk.bf16.gmra.mxu0 %vm1956_vm9, %v7142_v22 }
 0x211   : > { %v8355_v40 = vpop.f32.mrf.mxu0  ;;  %6877 = vmatprep.mubr.msk.bf16.mxu0 %vm1956_vm9, %v7144_v44 }
 0x213   : > { %v8359_v41 = vpop.f32.mrf.mxu0 }
 0x215   : > { %v8363_v30 = vpop.f32.mrf.mxu0 }
 0x216   : > { %6780 = vmatmul.mubr.msk.bf16.gmra.mxu1 %vm1956_vm9, %v7137_v49  ;;  %v8368_v33 = vpop.f32.mrf.mxu1 }
 0x217   : > { %v8365_v50 = vpop.f32.mrf.mxu0  ;;  %6783 = vmatprep.mubr.msk.bf16.mxu1 %vm1956_vm9, %v7139_v21  ;;  %v7149_v21 = vld [vmem:[#allocation2 + $0x1a0] sm:$0xff]  }
 0x218   : > { %v8373_v56 = vpop.f32.mrf.mxu1  ;;  %6878 = vmatmul.mubr.msk.bf16.gmra.mxu0 %vm1956_vm9, %v7146_v17  ;;  %v7151_v17 = vld [vmem:[#allocation2 + $0xa0] sm:$0xff]  }
 0x219   : > { %v8371_v28 = vpop.f32.mrf.mxu0  ;;  %6881 = vmatprep.mubr.msk.bf16.mxu0 %vm1956_vm9, %v7148_v52 }
 0x21a   : > { %v8379_v60 = vpop.f32.mrf.mxu1 }
 0x21b   : > { %v8377_v63 = vpop.f32.mrf.mxu0 }
 0x21c   : > { %v8386_v9 = vpop.f32.mrf.mxu1 }
 0x21d   : > { %v8381_v6 = vpop.f32.mrf.mxu0  ;;  %9327 = vst [vmem:[#allocation12_spill] sm:$0xff] %v8386_v9  ;;  %v7155_v9 = vld [vmem:[#allocation2 + $0xb0] sm:$0xff]  }
 0x21e   : > { %6784 = vmatmul.mubr.msk.bf16.gmra.mxu1 %vm1956_vm9, %v7141_v61 }
 0x21f   : > { %v8383_v51 = vpop.f32.mrf.mxu0  ;;  %6787 = vmatprep.mubr.msk.bf16.mxu1 %vm1956_vm9, %v7143_v20  ;;  %v7158_v20 = vld [vmem:[#allocation2 + $0x198] sm:$0xff]  }
 0x220   : > { %9326 = vst [vmem:[#allocation11_spill] sm:$0xff] %v8383_v51  ;;  %6882 = vmatmul.mubr.msk.bf16.gmra.mxu0 %vm1956_vm9, %v7150_v39  ;;  %v7160_v39 = vld [vmem:[#allocation2 + $0x1a0] sm:$0xff]  }
 0x221   : > { %v8390_v53 = vpop.f32.mrf.mxu0  ;;  %6885 = vmatprep.mubr.msk.bf16.mxu0 %vm1956_vm9, %v7152_v18 }
 0x223   : > { %v8393_v12 = vpop.f32.mrf.mxu1  ;;  %v8395_v7 = vpop.f32.mrf.mxu0 }
 0x225   : > { %v8397_v54 = vpop.f32.mrf.mxu1  ;;  %v8399_v57 = vpop.f32.mrf.mxu0 }
 0x226   : > { %6788 = vmatmul.mubr.msk.bf16.gmra.mxu1 %vm1956_vm9, %v7145_v26 }
 0x227   : > { %v8402_v2 = vpop.f32.mrf.mxu1  ;;  %6791 = vmatprep.mubr.msk.bf16.mxu1 %vm1956_vm9, %v7147_v5  ;;  %v8405_v22 = vpop.f32.mrf.mxu0 }
 0x228   : > { %9328 = vst [vmem:[#allocation13_spill] sm:$0xff] %v8405_v22  ;;  %6886 = vmatmul.mubr.msk.bf16.gmra.mxu0 %vm1956_vm9, %v7154_v0 }
 0x229   : > { %6889 = vmatprep.mubr.msk.bf16.mxu0 %vm1956_vm9, %v7156_v24  ;;  %v8409_v44 = vpop.f32.mrf.mxu1  ;;  %v7153_v24 = vld [vmem:[#allocation2 + $0xa8] sm:$0xff]  }
 0x22c   : > { %v8411_v49 = vpop.f32.mrf.mxu0 }
 0x22e   : > { %v8413_v52 = vpop.f32.mrf.mxu0  ;;  %v8415_v61 = vpop.f32.mrf.mxu1  ;;  %6792 = vmatmul.mubr.msk.bf16.gmra.mxu1 %vm1956_vm9, %v7149_v21  ;;  %v7171_v21 = vld [vmem:[#allocation2 + $0x1a8] sm:$0xff]  }
 0x22f   : > { %6831 = vmatprep.mubr.msk.bf16.mxu1 %vm1956_vm9, %v7151_v17 }
 0x230   : > { %v8419_v18 = vpop.f32.mrf.mxu1  ;;  %6890 = vmatmul.mubr.msk.bf16.gmra.mxu0 %vm1956_vm9, %v7158_v20  ;;  %v8422_v26 = vpop.f32.mrf.mxu0 }
 0x231   : > { %9329 = vst [vmem:[#allocation14_spill] sm:$0xff] %v8419_v18  ;;  %6893 = vmatprep.mubr.msk.bf16.mxu0 %vm1956_vm9, %v7160_v39 }
 0x232   : > { %v8425_v5 = vpop.f32.mrf.mxu1  ;;  %v8429_v22 = vpop.f32.mrf.mxu0 }
 0x233   : > { %9330 = vst [vmem:[#allocation15_spill] sm:$0xff] %v8425_v5  ;;  %9332 = vst [vmem:[#allocation17_spill] sm:$0xff] %v8429_v22 }
 0x234   : > { %v8427_v0 = vpop.f32.mrf.mxu1 }
 0x235   : > { %9331 = vst [vmem:[#allocation16_spill] sm:$0xff] %v8427_v0 }
 0x236   : > { %v6629_v51 = vpop.f32.mrf.mxu1  ;;  %6832 = vmatmul.mubr.msk.bf16.vlgmr.msra.gmra.mxu1 %vm1956_vm9, %v7153_v24 }
 0x237   : > { %v2344_v17 = vadd.f32 %v6629_v51, %v8253_v45  ;;  %6835 = vmatprep.mubr.msk.bf16.mxu1 %vm1956_vm9, %v7155_v9  ;;  %v7157_v51 = vld [vmem:[#allocation2 + $0xb8] sm:$0xff]  }
 0x238   : > { %v2335_v20 = vpop.f32.mrf.mxu1  ;;  %v8434_v43 = vpop.f32.mrf.mxu0  ;;  %6894 = vmatmul.mubr.msk.bf16.gmra.mxu0 %vm1956_vm9, %v7171_v21  ;;  %v7159_v21 = vld [vmem:[#allocation2 + $0xc0] sm:$0xff]  }
 0x239   : > { %9333 = vst [vmem:[#allocation18_spill] sm:$0xff] %v8434_v43  ;;  %v2336_v39 = vadd.f32 %v2335_v20, %v8255_v8  ;;  %v8439_v0 = vadd.f32 %v8305_v27, %v2344_v17 }
 0x23a   : > { %v6630_v5 = vpop.f32.mrf.mxu1  ;;  %v8441_v18 = vpop.f32.mrf.mxu0 }
 0x23b   : > { %v2347_v22 = vadd.f32 %v6630_v5, %v8259_v31  ;;  %v8445_v24 = vadd.f32 %v8311_v11, %v2336_v39 }
 0x23c   : > { %v2338_v45 = vpop.f32.mrf.mxu1  ;;  %v8447_v9 = vpop.f32.mrf.mxu0 }
 0x23d   : > { %v2339_v43 = vadd.f32 %v2338_v45, %v8263_v34  ;;  %v8451_v8 = vadd.f32 %v8315_v16, %v2347_v22 }
 0x23e   : > { %v6633_v27 = vpop.f32.mrf.mxu1  ;;  %6836 = vmatmul.mubr.msk.bf16.gmra.mxu1 %vm1956_vm9, %v7157_v51  ;;  %v8454_v17 = vpop.f32.mrf.mxu0 }
 0x23f   : > { %v2360_v31 = vadd.f32 %v6633_v27, %v8267_v35  ;;  %6839 = vmatprep.mubr.msk.bf16.mxu1 %vm1956_vm9, %v7159_v21  ;;  %v8459_v11 = vadd.f32 %v8317_v38, %v2339_v43  ;;  %v7161_v21 = vld [vmem:[#allocation2 + $0xc8] sm:$0xff]   ;;  %v7162_v27 = vld [vmem:[#allocation2 + $0xd0] sm:$0xff]  }
 0x240   : > { %v2351_v5 = vpop.f32.mrf.mxu1  ;;  %v8461_v20 = vpop.f32.mrf.mxu0 }
 0x241   : > { %v2352_v34 = vadd.f32 %v2351_v5, %v8271_v32  ;;  %v8465_v16 = vadd.f32 %v8323_v19, %v2360_v31 }
 0x242   : > { %v6634_v22 = vpop.f32.mrf.mxu1  ;;  %v8467_v39 = vpop.f32.mrf.mxu0 }
 0x243   : > { %v2363_v45 = vadd.f32 %v6634_v22, %v8275_v14  ;;  %v8471_v35 = vadd.f32 %v8327_v42, %v2352_v34 }
 0x244   : > { %v2354_v51 = vpop.f32.mrf.mxu1  ;;  %v8473_v38 = vpop.f32.mrf.mxu0 }
 0x245   : > { %v2355_v43 = vadd.f32 %v2354_v51, %v8279_v48  ;;  %v8477_v32 = vadd.f32 %v8331_v15, %v2363_v45  ;;  %v5144_v48 = vld [vmem:[%s9303_s5] sm:$0xf] }
 0x246   : > { %v6637_v19 = vpop.f32.mrf.mxu1  ;;  %6840 = vmatmul.mubr.msk.bf16.gmra.mxu1 %vm1956_vm9, %v7161_v21  ;;  %v8480_v31 = vpop.f32.mrf.mxu0  ;;  %6943 = vmatprep.subr.msk.bf16.mxu1 %vm2005_vm7, %v5144_v48 }
 0x247   : > { %v2376_v14 = vadd.f32 %v6637_v19, %v8287_v58  ;;  %6843 = vmatprep.mubr.msk.bf16.mxu1 %vm1956_vm9, %v7162_v27  ;;  %v8485_v42 = vadd.f32 %v8333_v47, %v2355_v43  ;;  %v5201_v58 = vsel %vm2005_vm7, %v5144_v48, 0  ;;  %v7163_v27 = vld [vmem:[#allocation2 + $0xd8] sm:$0xff]  }
 0x248   : > { %v2367_v5 = vpop.f32.mrf.mxu1  ;;  %v8490_v34 = vpop.f32.mrf.mxu0  ;;  %6898 = vmatpush3.bf16.msra.mxu1 %v5201_v58 }
 0x249   : > { %v2368_v15 = vadd.f32 %v2367_v5, %v8295_v62  ;;  %v8495_v22 = vadd.f32 %v8339_v23, %v2376_v14  ;;  %v7164_v5 = vld [vmem:[#allocation2 + $0xe0] sm:$0xff]  }
 0x24a   : > { %v6638_v45 = vpop.f32.mrf.mxu1  ;;  %v8498_v51 = vpop.f32.mrf.mxu0 }
 0x24b   : > { %v2379_v47 = vadd.f32 %v6638_v45, %v8297_v4  ;;  %v8502_v21 = vadd.f32 %v8343_v25, %v2368_v15 }
 0x24c   : > { %v2370_v43 = vpop.f32.mrf.mxu1  ;;  %v8504_v19 = vpop.f32.mrf.mxu0 }
 0x24d   : > { %v2371_v62 = vadd.f32 %v2370_v43, %v8301_v55  ;;  %v8508_v23 = vadd.f32 %v8347_v36, %v2379_v47 }
 0x24e   : > { %v6641_v14 = vpop.f32.mrf.mxu1  ;;  %6844 = vmatmul.mubr.msk.bf16.gmra.mxu1 %vm1956_vm9, %v7163_v27  ;;  %v8511_v48 = vpop.f32.mrf.mxu0 }
 0x24f   : > { %v2392_v4 = vadd.f32 %v6641_v14, %v8309_v10  ;;  %6847 = vmatprep.mubr.msk.bf16.mxu1 %vm1956_vm9, %v7164_v5  ;;  %v8516_v25 = vadd.f32 %v8349_v46, %v2371_v62  ;;  %v7165_v5 = vld [vmem:[#allocation2 + $0xe8] sm:$0xff]   ;;  %v7166_v14 = vld [vmem:[#allocation2 + $0xf0] sm:$0xff]  }
 0x250   : > { %v2383_v15 = vpop.f32.mrf.mxu1  ;;  %v8518_v58 = vpop.f32.mrf.mxu0 }
 0x251   : > { %v2384_v55 = vadd.f32 %v2383_v15, %v8313_v37  ;;  %v8522_v36 = vadd.f32 %v8355_v40, %v2392_v4 }
 0x252   : > { %v6642_v45 = vpop.f32.mrf.mxu1  ;;  %v8524_v47 = vpop.f32.mrf.mxu0 }
 0x253   : > { %v2395_v43 = vadd.f32 %v6642_v45, %v8320_v59  ;;  %v8528_v10 = vadd.f32 %v8359_v41, %v2384_v55 }
 0x254   : > { %v2386_v27 = vpop.f32.mrf.mxu1  ;;  %v8530_v46 = vpop.f32.mrf.mxu0 }
 0x255   : > { %v2387_v62 = vadd.f32 %v2386_v27, %v8329_v13  ;;  %v8534_v37 = vadd.f32 %v8363_v30, %v2395_v43 }
 0x256   : > { %v6645_v40 = vpop.f32.mrf.mxu1  ;;  %6848 = vmatmul.mubr.msk.bf16.gmra.mxu1 %vm1956_vm9, %v7165_v5  ;;  %v8537_v4 = vpop.f32.mrf.mxu0 }
 0x257   : > { %v2408_v59 = vadd.f32 %v6645_v40, %v8336_v3  ;;  %6851 = vmatprep.mubr.msk.bf16.mxu1 %vm1956_vm9, %v7166_v14  ;;  %v8542_v41 = vadd.f32 %v8365_v50, %v2387_v62  ;;  %v7167_v50 = vld [vmem:[#allocation2 + $0xf8] sm:$0xff]   ;;  %v7168_v14 = vld [vmem:[#allocation2 + $0x100] sm:$0xff]  }
 0x258   : > { %v2399_v15 = vpop.f32.mrf.mxu1  ;;  %v8544_v55 = vpop.f32.mrf.mxu0 }
 0x259   : > { %v2400_v13 = vadd.f32 %v2399_v15, %v8345_v29  ;;  %v8548_v30 = vadd.f32 %v8371_v28, %v2408_v59 }
 0x25a   : > { %v6646_v45 = vpop.f32.mrf.mxu1  ;;  %v8550_v43 = vpop.f32.mrf.mxu0 }
 0x25b   : > { %v2411_v27 = vadd.f32 %v6646_v45, %v8352_v1  ;;  %v8554_v3 = vadd.f32 %v8377_v63, %v2400_v13 }
 0x25c   : > { %v8556_v5 = vpop.f32.mrf.mxu1  ;;  %v8558_v62 = vpop.f32.mrf.mxu0 }
 0x25d   : > { %v8561_v40 = vadd.f32 %v8381_v6, %v2411_v27 }
 0x25e   : > { %v6649_v29 = vpop.f32.mrf.mxu1  ;;  %6852 = vmatmul.mubr.msk.bf16.gmra.mxu1 %vm1956_vm9, %v7167_v50  ;;  %v8564_v28 = vpop.f32.mrf.mxu0 }
 0x25f   : > { %9334 = vst [vmem:[#allocation19_spill] sm:$0xff] %v8561_v40  ;;  %v2424_v59 = vadd.f32 %v6649_v29, %v8368_v33  ;;  %6855 = vmatprep.mubr.msk.bf16.mxu1 %vm1956_vm9, %v7168_v14  ;;  %v7169_v33 = vld [vmem:[#allocation2 + $0x108] sm:$0xff]   ;;  %v7170_v29 = vld [vmem:[#allocation2 + $0x110] sm:$0xff]  }
 0x260   : > { %v2415_v1 = vpop.f32.mrf.mxu1  ;;  %v8568_v63 = vpop.f32.mrf.mxu0 }
 0x261   : > { %9335 = vst [vmem:[#allocation20_spill] sm:$0xff] %v8568_v63  ;;  %v2416_v15 = vadd.f32 %v2415_v1, %v8373_v56  ;;  %v8572_v13 = vadd.f32 %v8390_v53, %v2424_v59 }
 0x262   : > { %v6650_v45 = vpop.f32.mrf.mxu1  ;;  %v8574_v6 = vpop.f32.mrf.mxu0 }
 0x263   : > { %v2427_v27 = vadd.f32 %v6650_v45, %v8379_v60  ;;  %v8578_v50 = vadd.f32 %v8395_v7, %v2416_v15 }
 0x264   : > { %v8580_v40 = vpop.f32.mrf.mxu1  ;;  %v8582_v14 = vpop.f32.mrf.mxu0 }
 0x265   : > { %v8585_v63 = vadd.f32 %v8399_v57, %v2427_v27  ;;  %v7172_v57 = vld [vmem:[#allocation2 + $0x118] sm:$0xff]  }
 0x266   : > { %v6653_v56 = vpop.f32.mrf.mxu1  ;;  %6856 = vmatmul.mubr.msk.bf16.gmra.mxu1 %vm1956_vm9, %v7169_v33  ;;  %v8588_v53 = vpop.f32.mrf.mxu0 }
 0x267   : > { %9336 = vst [vmem:[#allocation21_spill] sm:$0xff] %v8585_v63  ;;  %v2440_v59 = vadd.f32 %v6653_v56, %v8393_v12  ;;  %6859 = vmatprep.mubr.msk.bf16.mxu1 %vm1956_vm9, %v7170_v29 }
 0x268   : > { %v2431_v60 = vpop.f32.mrf.mxu1  ;;  %v8592_v7 = vpop.f32.mrf.mxu0 }
 0x269   : > { %9337 = vst [vmem:[#allocation22_spill] sm:$0xff] %v8592_v7  ;;  %v2432_v1 = vadd.f32 %v2431_v60, %v8397_v54  ;;  %v8596_v15 = vadd.f32 %v8411_v49, %v2440_v59  ;;  %v9341_v60 = vld [vmem:[#allocation17_spill] sm:$0xff] }
 0x26a   : > { %v6654_v45 = vpop.f32.mrf.mxu1  ;;  %v8598_v27 = vpop.f32.mrf.mxu0 }
 0x26b   : > { %9338 = vst [vmem:[#allocation23_spill] sm:$0xff] %v8596_v15  ;;  %v2443_v33 = vadd.f32 %v6654_v45, %v8402_v2  ;;  %v8602_v63 = vadd.f32 %v8413_v52, %v2432_v1  ;;  %v9343_v45 = vld [vmem:[#allocation14_spill] sm:$0xff] }
 0x26c   : > { %v2434_v12 = vpop.f32.mrf.mxu1  ;;  %v8604_v56 = vpop.f32.mrf.mxu0  ;;  %v9344_v15 = vld [vmem:[#allocation18_spill] sm:$0xff] }
 0x26d   : > { %9339 = vst [vmem:[#allocation24_spill] sm:$0xff] %v8602_v63  ;;  %v2435_v29 = vadd.f32 %v2434_v12, %v8409_v44  ;;  %v8608_v7 = vadd.f32 %v8422_v26, %v2443_v33  ;;  %v9345_v12 = vld [vmem:[#allocation15_spill] sm:$0xff] }
 0x26e   : > { %v6657_v54 = vpop.f32.mrf.mxu1  ;;  %6860 = vmatmul.mubr.msk.bf16.gmra.mxu1 %vm1956_vm9, %v7172_v57  ;;  %v8611_v49 = vpop.f32.mrf.mxu0 }
 0x26f   : > { %9340 = vst [vmem:[#allocation25_spill] sm:$0xff] %v8608_v7  ;;  %v2456_v59 = vadd.f32 %v6657_v54, %v8415_v61  ;;  %v8615_v2 = vadd.f32 %v9341_v60, %v2435_v29  ;;  %v9346_v29 = vld [vmem:[#allocation16_spill] sm:$0xff] }
 0x270   : > { %v2447_v52 = vpop.f32.mrf.mxu1  ;;  %v8617_v1 = vpop.f32.mrf.mxu0 }
 0x271   : > { %9342 = vst [vmem:[#allocation17_spill] sm:$0xff] %v8615_v2  ;;  %v2448_v63 = vadd.f32 %v2447_v52, %v9343_v45  ;;  %v8621_v44 = vadd.f32 %v9344_v15, %v2456_v59 }
 0x272   : > { %v6658_v26 = vpop.f32.mrf.mxu1  ;;  %v8623_v33 = vpop.f32.mrf.mxu0 }
 0x273   : > { %v2459_v57 = vadd.f32 %v6658_v26, %v9345_v12  ;;  %v8627_v7 = vadd.f32 %v8441_v18, %v2448_v63 }
 0x274   : > { %v2450_v61 = vpop.f32.mrf.mxu1  ;;  %v8629_v54 = vpop.f32.mrf.mxu0 }
 0x275   : > { %v2451_v60 = vadd.f32 %v2450_v61, %v9346_v29  ;;  %v8633_v2 = vadd.f32 %v8447_v9, %v2459_v57 }
 0x276   : > { %v6697_v52 = vpop.f32.mrf.mxu1  ;;  %v8635_v45 = vpop.f32.mrf.mxu0 }
 0x277   : > { %v3155_v15 = vadd.f32 %v6697_v52, %v8439_v0  ;;  %v8639_v59 = vadd.f32 %v8454_v17, %v2451_v60 }
 0x278   : > { %v3026_v26 = vpop.f32.mrf.mxu1  ;;  %v8641_v12 = vpop.f32.mrf.mxu0 }
 0x279   : > { %v3153_v18 = vadd.f32 %v3026_v26, %v8445_v24  ;;  %v8645_v63 = vadd.f32 %v8461_v20, %v3155_v15 }
 0x27a   : > { %v6698_v61 = vpop.f32.mrf.mxu1  ;;  %v8647_v29 = vpop.f32.mrf.mxu0 }
 0x27b   : > { %v3156_v9 = vadd.f32 %v6698_v61, %v8451_v8  ;;  %v8651_v57 = vadd.f32 %v8467_v39, %v3153_v18 }
 0x27c   : > { %v3029_v0 = vpop.f32.mrf.mxu1  ;;  %v8653_v52 = vpop.f32.mrf.mxu0 }
 0x27d   : > { %v3154_v17 = vadd.f32 %v3029_v0, %v8459_v11  ;;  %v8657_v60 = vadd.f32 %v8473_v38, %v3156_v9 }
 0x27e   : > { %v6701_v24 = vpop.f32.mrf.mxu1  ;;  %v8659_v26 = vpop.f32.mrf.mxu0 }
 0x27f   : > { %v3159_v20 = vadd.f32 %v6701_v24, %v8465_v16  ;;  %v8663_v15 = vadd.f32 %v8480_v31, %v3154_v17 }
 0x280   : > { %v3042_v8 = vpop.f32.mrf.mxu1  ;;  %v8665_v61 = vpop.f32.mrf.mxu0 }
 0x281   : > { %v3157_v39 = vadd.f32 %v3042_v8, %v8471_v35  ;;  %v8669_v18 = vadd.f32 %v8490_v34, %v3159_v20 }
 0x282   : > { %v6702_v11 = vpop.f32.mrf.mxu1  ;;  %v8671_v0 = vpop.f32.mrf.mxu0 }
 0x283   : > { %v3160_v38 = vadd.f32 %v6702_v11, %v8477_v32  ;;  %v8675_v9 = vadd.f32 %v8498_v51, %v3157_v39 }
 0x284   : > { %v3045_v16 = vpop.f32.mrf.mxu1  ;;  %v8677_v24 = vpop.f32.mrf.mxu0 }
 0x285   : > { %v3158_v31 = vadd.f32 %v3045_v16, %v8485_v42  ;;  %v8681_v17 = vadd.f32 %v8504_v19, %v3160_v38 }
 0x286   : > { %v6705_v35 = vpop.f32.mrf.mxu1  ;;  %v8683_v8 = vpop.f32.mrf.mxu0 }
 0x287   : > { %v3163_v34 = vadd.f32 %v6705_v35, %v8495_v22  ;;  %v8687_v20 = vadd.f32 %v8511_v48, %v3158_v31 }
 0x288   : > { %v3058_v32 = vpop.f32.mrf.mxu1  ;;  %v8689_v11 = vpop.f32.mrf.mxu0 }
 0x289   : > { %v3161_v51 = vadd.f32 %v3058_v32, %v8502_v21  ;;  %v8693_v39 = vadd.f32 %v8518_v58, %v3163_v34 }
 0x28a   : > { %v6706_v42 = vpop.f32.mrf.mxu1  ;;  %v8695_v16 = vpop.f32.mrf.mxu0 }
 0x28b   : > { %v3164_v19 = vadd.f32 %v6706_v42, %v8508_v23  ;;  %v8699_v38 = vadd.f32 %v8524_v47, %v3161_v51 }
 0x28c   : > { %v3061_v22 = vpop.f32.mrf.mxu1  ;;  %v8701_v35 = vpop.f32.mrf.mxu0 }
 0x28d   : > { %9347 = vst [vmem:[#allocation14_spill] sm:$0xff] %v8701_v35  ;;  %v3162_v48 = vadd.f32 %v3061_v22, %v8516_v25  ;;  %v8705_v31 = vadd.f32 %v8530_v46, %v3164_v19  ;;  %v9355_v35 = vld [vmem:[#allocation11_spill] sm:$0xff] }
 0x28e   : > { %v6709_v21 = vpop.f32.mrf.mxu1  ;;  %v8707_v32 = vpop.f32.mrf.mxu0 }
 0x28f   : > { %9348 = vst [vmem:[#allocation18_spill] sm:$0xff] %v8707_v32  ;;  %v3167_v58 = vadd.f32 %v6709_v21, %v8522_v36  ;;  %v8711_v34 = vadd.f32 %v8537_v4, %v3162_v48 }
 0x290   : > { %v3074_v23 = vpop.f32.mrf.mxu1  ;;  %v8713_v42 = vpop.f32.mrf.mxu0 }
 0x291   : > { %9349 = vst [vmem:[#allocation15_spill] sm:$0xff] %v8711_v34  ;;  %v3165_v47 = vadd.f32 %v3074_v23, %v8528_v10  ;;  %v8717_v51 = vadd.f32 %v8544_v55, %v3167_v58  ;;  %v9351_v55 = vld [vmem:[#allocation10_spill] sm:$0xff] }
 0x292   : > { %v6710_v25 = vpop.f32.mrf.mxu1  ;;  %v8719_v22 = vpop.f32.mrf.mxu0  ;;  %v2403_v58 = vadd.f32 %v8556_v5, %v9351_v55 }
 0x293   : > { %v3168_v46 = vadd.f32 %v6710_v25, %v8534_v37  ;;  %v8723_v19 = vadd.f32 %v8550_v43, %v3165_v47 }
 0x294   : > { %v3077_v36 = vpop.f32.mrf.mxu1  ;;  %v8725_v21 = vpop.f32.mrf.mxu0  ;;  %v2808_v5 = vadd.f32 %v9355_v35, %v2403_v58 }
 0x295   : > { %v3166_v4 = vadd.f32 %v3077_v36, %v8542_v41  ;;  %v8729_v48 = vadd.f32 %v8558_v62, %v3168_v46  ;;  %v9353_v41 = vld [vmem:[#allocation20_spill] sm:$0xff] }
 0x296   : > { %v6713_v10 = vpop.f32.mrf.mxu1  ;;  %v8731_v23 = vpop.f32.mrf.mxu0 }
 0x297   : > { %9350 = vst [vmem:[#allocation16_spill] sm:$0xff] %v8731_v23  ;;  %v3171_v34 = vadd.f32 %v6713_v10, %v8548_v30  ;;  %v8737_v37 = vadd.f32 %v8564_v28, %v3166_v4  ;;  %v9354_v23 = vld [vmem:[#allocation19_spill] sm:$0xff] }
 0x298   : > { %v3090_v43 = vpop.f32.mrf.mxu1  ;;  %v8739_v47 = vpop.f32.mrf.mxu0 }
 0x299   : > { %9352 = vst [vmem:[#allocation10_spill] sm:$0xff] %v8737_v37  ;;  %v3169_v25 = vadd.f32 %v3090_v43, %v8554_v3  ;;  %v8743_v36 = vadd.f32 %v9353_v41, %v3171_v34  ;;  %v9357_v43 = vld [vmem:[#allocation12_spill] sm:$0xff]  ;;  %v9361_v37 = vld [vmem:[#allocation13_spill] sm:$0xff] }
 0x29a   : > { %v6714_v62 = vpop.f32.mrf.mxu1  ;;  %v8745_v46 = vpop.f32.mrf.mxu0  ;;  %v2419_v41 = vadd.f32 %v8580_v40, %v9357_v43 }
 0x29b   : > { %v3172_v32 = vadd.f32 %v6714_v62, %v9354_v23  ;;  %v8750_v30 = vadd.f32 %v8574_v6, %v3169_v25  ;;  %v9359_v62 = vld [vmem:[#allocation22_spill] sm:$0xff] }
 0x29c   : > { %v3093_v28 = vpop.f32.mrf.mxu1  ;;  %v8752_v4 = vpop.f32.mrf.mxu0  ;;  %v2812_v40 = vadd.f32 %v9361_v37, %v2419_v41 }
 0x29d   : > { %v3170_v10 = vadd.f32 %v3093_v28, %v2808_v5  ;;  %v8755_v55 = vadd.f32 %v8582_v14, %v3172_v32  ;;  %v9360_v28 = vld [vmem:[#allocation21_spill] sm:$0xff] }
 0x29e   : > { %v6717_v3 = vpop.f32.mrf.mxu1  ;;  %v8757_v34 = vpop.f32.mrf.mxu0 }
 0x29f   : > { %9356 = vst [vmem:[#allocation20_spill] sm:$0xff] %v8757_v34  ;;  %v3175_v23 = vadd.f32 %v6717_v3, %v8572_v13  ;;  %v8763_v35 = vadd.f32 %v8588_v53, %v3170_v10 }
 0x2a0   : > { %v3106_v6 = vpop.f32.mrf.mxu1  ;;  %v8765_v58 = vpop.f32.mrf.mxu0 }
 0x2a1   : > { %9358 = vst [vmem:[#allocation19_spill] sm:$0xff] %v8763_v35  ;;  %v3173_v25 = vadd.f32 %v3106_v6, %v8578_v50  ;;  %v8769_v5 = vadd.f32 %v9359_v62, %v3175_v23  ;;  %v9363_v6 = vld [vmem:[#allocation23_spill] sm:$0xff] }
 0x2a2   : > { %v6718_v14 = vpop.f32.mrf.mxu1  ;;  %v8771_v32 = vpop.f32.mrf.mxu0 }
 0x2a3   : > { %v3176_v34 = vadd.f32 %v6718_v14, %v9360_v28  ;;  %v8776_v13 = vadd.f32 %v8598_v27, %v3173_v25  ;;  %v9365_v27 = vld [vmem:[#allocation24_spill] sm:$0xff] }
 0x2a4   : > { %v3109_v53 = vpop.f32.mrf.mxu1  ;;  %v8778_v10 = vpop.f32.mrf.mxu0 }
 0x2a5   : > { %v3174_v3 = vadd.f32 %v3109_v53, %v2812_v40  ;;  %v8781_v43 = vadd.f32 %v8604_v56, %v3176_v34  ;;  %v9366_v56 = vld [vmem:[#allocation25_spill] sm:$0xff] }
 0x2a6   : > { %v6721_v50 = vpop.f32.mrf.mxu1  ;;  %v8783_v23 = vpop.f32.mrf.mxu0 }
 0x2a7   : > { %9362 = vst [vmem:[#allocation11_spill] sm:$0xff] %v8783_v23  ;;  %v3179_v62 = vadd.f32 %v6721_v50, %v9363_v6  ;;  %v8787_v35 = vadd.f32 %v8611_v49, %v3174_v3  ;;  %v9367_v49 = vld [vmem:[#allocation17_spill] sm:$0xff] }
 0x2a8   : > { %v3122_v14 = vpop.f32.mrf.mxu1  ;;  %v8789_v37 = vpop.f32.mrf.mxu0 }
 0x2a9   : > { %9364 = vst [vmem:[#allocation12_spill] sm:$0xff] %v8787_v35  ;;  %v3177_v41 = vadd.f32 %v3122_v14, %v9365_v27  ;;  %v8793_v25 = vadd.f32 %v8617_v1, %v3179_v62 }
 0x2aa   : > { %v6722_v28 = vpop.f32.mrf.mxu1  ;;  %v8795_v40 = vpop.f32.mrf.mxu0 }
 0x2ab   : > { %v3180_v34 = vadd.f32 %v6722_v28, %v9366_v56  ;;  %v8799_v53 = vadd.f32 %v8623_v33, %v3177_v41 }
 0x2ac   : > { %v3125_v50 = vpop.f32.mrf.mxu1  ;;  %v8801_v6 = vpop.f32.mrf.mxu0 }
 0x2ad   : > { %v3178_v3 = vadd.f32 %v3125_v50, %v9367_v49  ;;  %v8805_v35 = vadd.f32 %v8629_v54, %v3180_v34 }
 0x2ae   : > { %v6725_v14 = vpop.f32.mrf.mxu1  ;;  %v8807_v27 = vpop.f32.mrf.mxu0 }
 0x2af   : > { %9368 = vst [vmem:[#allocation22_spill] sm:$0xff] %v8807_v27  ;;  %v3183_v1 = vadd.f32 %v6725_v14, %v8621_v44  ;;  %v8811_v62 = vadd.f32 %v8635_v45, %v3178_v3 }
 0x2b0   : > { %v3138_v28 = vpop.f32.mrf.mxu1  ;;  %v8813_v56 = vpop.f32.mrf.mxu0 }
 0x2b1   : > { %9369 = vst [vmem:[#allocation21_spill] sm:$0xff] %v8811_v62  ;;  %v3181_v33 = vadd.f32 %v3138_v28, %v8627_v7  ;;  %v8817_v41 = vadd.f32 %v8641_v12, %v3183_v1 }
 0x2b2   : > { %v6726_v50 = vpop.f32.mrf.mxu1  ;;  %v8819_v49 = vpop.f32.mrf.mxu0 }
 0x2b3   : > { %v3184_v54 = vadd.f32 %v6726_v50, %v8633_v2  ;;  %v8823_v34 = vadd.f32 %v8647_v29, %v3181_v33 }
 0x2b4   : > { %v3141_v44 = vpop.f32.mrf.mxu1  ;;  %v8825_v14 = vpop.f32.mrf.mxu0 }
 0x2b5   : > { %v3182_v45 = vadd.f32 %v3141_v44, %v8639_v59  ;;  %v8829_v3 = vadd.f32 %v8653_v52, %v3184_v54 }
 0x2b6   : > { %v6765_v7 = vpop.f32.mrf.mxu1  ;;  %v8831_v28 = vpop.f32.mrf.mxu0 }
 0x2b7   : > { %9370 = vst [vmem:[#allocation13_spill] sm:$0xff] %v8831_v28  ;;  %v3877_v12 = vadd.f32 %v6765_v7, %v8645_v63  ;;  %v8835_v1 = vadd.f32 %v8659_v26, %v3182_v45 }
 0x2b8   : > { %v3748_v2 = vpop.f32.mrf.mxu1  ;;  %v8837_v50 = vpop.f32.mrf.mxu0 }
 0x2b9   : > { %9371 = vst [vmem:[#allocation23_spill] sm:$0xff] %v8835_v1  ;;  %v3875_v29 = vadd.f32 %v3748_v2, %v8651_v57  ;;  %v8841_v33 = vadd.f32 %v8665_v61, %v3877_v12 }
 0x2ba   : > { %v8843_v59 = vpop.f32.mrf.mxu1  ;;  %v8845_v52 = vpop.f32.mrf.mxu0 }
 0x2bb   : > { %v8848_v54 = vadd.f32 %v8671_v0, %v3875_v29 }
 0x2bc   : > { %v8850_v44 = vpop.f32.mrf.mxu1  ;;  %v8852_v63 = vpop.f32.mrf.mxu0 }
 0x2be   : > { %v6769_v26 = vpop.f32.mrf.mxu1  ;;  %v8854_v45 = vpop.f32.mrf.mxu0 }
 0x2bf   : > { %9372 = vst [vmem:[#allocation24_spill] sm:$0xff] %v8854_v45  ;;  %v3881_v7 = vadd.f32 %v6769_v26, %v8669_v18 }
 0x2c0   : > { %v3764_v57 = vpop.f32.mrf.mxu1  ;;  %v8857_v2 = vpop.f32.mrf.mxu0 }
 0x2c1   : > { %v3879_v61 = vadd.f32 %v3764_v57, %v8675_v9  ;;  %v8861_v12 = vadd.f32 %v8689_v11, %v3881_v7 }
 0x2c2   : > { %v8863_v1 = vpop.f32.mrf.mxu1  ;;  %v8865_v0 = vpop.f32.mrf.mxu0 }
 0x2c3   : > { %v8868_v29 = vadd.f32 %v8695_v16, %v3879_v61 }
 0x2c4   : > { %v8870_v28 = vpop.f32.mrf.mxu1  ;;  %v8872_v45 = vpop.f32.mrf.mxu0 }
 0x2c5   : > { %9373 = vst [vmem:[#allocation25_spill] sm:$0xff] %v8868_v29 }
 0x2c6   : > { %v6773_v18 = vpop.f32.mrf.mxu1  ;;  %v8875_v27 = vpop.f32.mrf.mxu0 }
 0x2c7   : > { %v3885_v26 = vadd.f32 %v6773_v18, %v8693_v39 }
 0x2c8   : > { %v3780_v62 = vpop.f32.mrf.mxu1  ;;  %v8887_v23 = vpop.f32.mrf.mxu0 }
 0x2c9   : > { %v3883_v9 = vadd.f32 %v3780_v62, %v8699_v38  ;;  %v8879_v11 = vadd.f32 %v8713_v42, %v3885_v26 }
 0x2ca   : > { %v6774_v7 = vpop.f32.mrf.mxu1  ;;  %v8893_v62 = vpop.f32.mrf.mxu0 }
 0x2cb   : > { %v3886_v57 = vadd.f32 %v6774_v7, %v8705_v31  ;;  %v8883_v16 = vadd.f32 %v8719_v22, %v3883_v9 }
 0x2cc   : > { %v8885_v61 = vpop.f32.mrf.mxu1 }
 0x2cd   : > { %v8890_v39 = vadd.f32 %v8725_v21, %v3886_v57  ;;  %v8905_v21 = vpop.f32.mrf.mxu0 }
 0x2ce   : > { %v6777_v18 = vpop.f32.mrf.mxu1 }
 0x2cf   : > { %v3889_v29 = vadd.f32 %v6777_v18, %v8717_v51 }
 0x2d0   : > { %v3796_v38 = vpop.f32.mrf.mxu1 }
 0x2d1   : > { %v3887_v42 = vadd.f32 %v3796_v38, %v8723_v19  ;;  %v8897_v31 = vadd.f32 %v8739_v47, %v3889_v29  ;;  %v8911_v38 = vpop.f32.mrf.mxu0 }
 0x2d2   : > { %v6778_v22 = vpop.f32.mrf.mxu1 }
 0x2d3   : > { %v3890_v26 = vadd.f32 %v6778_v22, %v8729_v48  ;;  %v8901_v9 = vadd.f32 %v8745_v46, %v3887_v42 }
 0x2d4   : > { %v8903_v7 = vpop.f32.mrf.mxu1 }
 0x2d5   : > { %v8908_v51 = vadd.f32 %v8752_v4, %v3890_v26  ;;  %v8923_v4 = vpop.f32.mrf.mxu0 }
 0x2d6   : > { %v6781_v57 = vpop.f32.mrf.mxu1 }
 0x2d7   : > { %v3893_v18 = vadd.f32 %v6781_v57, %v8743_v36 }
 0x2d8   : > { %v3812_v19 = vpop.f32.mrf.mxu1 }
 0x2d9   : > { %v3891_v47 = vadd.f32 %v3812_v19, %v8750_v30  ;;  %v8915_v48 = vadd.f32 %v8765_v58, %v3893_v18  ;;  %v8929_v19 = vpop.f32.mrf.mxu0 }
 0x2da   : > { %v6782_v46 = vpop.f32.mrf.mxu1 }
 0x2db   : > { %v3894_v29 = vadd.f32 %v6782_v46, %v8755_v55  ;;  %v8919_v42 = vadd.f32 %v8771_v32, %v3891_v47  ;;  %v8939_v46 = vpop.f32.mrf.mxu0 }
 0x2dc   : > { %v8921_v22 = vpop.f32.mrf.mxu1 }
 0x2dd   : > { %v8926_v36 = vadd.f32 %v8778_v10, %v3894_v29 }
 0x2de   : > { %v6785_v26 = vpop.f32.mrf.mxu1 }
 0x2df   : > { %v3897_v57 = vadd.f32 %v6785_v26, %v8769_v5 }
 0x2e0   : > { %v3828_v30 = vpop.f32.mrf.mxu1 }
 0x2e1   : > { %v3895_v58 = vadd.f32 %v3828_v30, %v8776_v13  ;;  %v8933_v55 = vadd.f32 %v8789_v37, %v3897_v57  ;;  %v8947_v13 = vpop.f32.mrf.mxu0 }
 0x2e2   : > { %v6786_v32 = vpop.f32.mrf.mxu1 }
 0x2e3   : > { %v3898_v18 = vadd.f32 %v6786_v32, %v8781_v43  ;;  %v8937_v47 = vadd.f32 %v8795_v40, %v3895_v58  ;;  %v8957_v32 = vpop.f32.mrf.mxu0 }
 0x2e4   : > { %v8941_v10 = vpop.f32.mrf.mxu1 }
 0x2e5   : > { %v8944_v5 = vadd.f32 %v8801_v6, %v3898_v18 }
 0x2e6   : > { %v6789_v29 = vpop.f32.mrf.mxu1 }
 0x2e7   : > { %v3901_v26 = vadd.f32 %v6789_v29, %v8793_v25 }
 0x2e8   : > { %v3844_v37 = vpop.f32.mrf.mxu1 }
 0x2e9   : > { %v3899_v57 = vadd.f32 %v3844_v37, %v8799_v53  ;;  %v8951_v43 = vadd.f32 %v8813_v56, %v3901_v26  ;;  %v8965_v53 = vpop.f32.mrf.mxu0 }
 0x2ea   : > { %v6790_v40 = vpop.f32.mrf.mxu1 }
 0x2eb   : > { %v3902_v30 = vadd.f32 %v6790_v40, %v8805_v35  ;;  %v8955_v58 = vadd.f32 %v8819_v49, %v3899_v57  ;;  %v8975_v40 = vpop.f32.mrf.mxu0 }
 0x2ec   : > { %v8959_v6 = vpop.f32.mrf.mxu1 }
 0x2ed   : > { %v8962_v25 = vadd.f32 %v8825_v14, %v3902_v30 }
 0x2ee   : > { %v6793_v18 = vpop.f32.mrf.mxu1 }
 0x2ef   : > { %v3905_v29 = vadd.f32 %v6793_v18, %v8817_v41  ;;  %v3878_v41 = vadd.f32 %v8843_v59, %v8657_v60  ;;  %v8995_v60 = vld [vmem:[%s9302_s4] ss:$0 sm:$0xff] }
 0x2f0   : > { %v3860_v56 = vpop.f32.mrf.mxu1 }
 0x2f1   : > { %v3903_v26 = vadd.f32 %v3860_v56, %v8823_v34  ;;  %v8969_v35 = vadd.f32 %v8837_v50, %v3905_v29  ;;  %v3876_v50 = vadd.f32 %v8850_v44, %v8663_v15 }
 0x2f2   : > { %v6794_v49 = vpop.f32.mrf.mxu1 }
 0x2f3   : > { %v3906_v37 = vadd.f32 %v6794_v49, %v8829_v3  ;;  %v8973_v57 = vadd.f32 %v8845_v52, %v3903_v26  ;;  %v8987_v3 = vpop.f32.mrf.mxu0  ;;  %v4240_v26 = vadd.f32 %v8677_v24, %v3878_v41  ;;  %v3882_v24 = vadd.f32 %v8863_v1, %v8681_v17  ;;  %v9374_v17 = vld [vmem:[#allocation25_spill] sm:$0xff] }
 0x2f4   : > { %v8977_v14 = vpop.f32.mrf.mxu1  ;;  %v3880_v41 = vadd.f32 %v8870_v28, %v8687_v20  ;;  %v9375_v28 = vld [vmem:[#allocation14_spill] sm:$0xff] }
 0x2f5   : > { %v8982_v30 = vadd.f32 %v8852_v63, %v3906_v37  ;;  %v8999_v44 = vpop.f32.mrf.mxu0 }
 0x2f6   : > { %v6833_v34 = vpop.f32.mrf.mxu1 }
 0x2f7   : > { %v4600_v18 = vadd.f32 %v6833_v34, %v8841_v33  ;;  %v4238_v33 = vadd.f32 %v8683_v8, %v3876_v50 }
 0x2f8   : > { %v4471_v52 = vpop.f32.mrf.mxu1 }
 0x2f9   : > { %v4961_v29 = vadd.f32 %v8857_v2, %v4600_v18  ;;  %v4598_v56 = vadd.f32 %v4471_v52, %v8848_v54  ;;  %v9011_v52 = vpop.f32.mrf.mxu0 }
 0x2fa   : > { %v6834_v59 = vpop.f32.mrf.mxu1 }
 0x2fb   : > { %v4959_v63 = vadd.f32 %v8865_v0, %v4598_v56  ;;  %v4601_v15 = vadd.f32 %v6834_v59, %v4240_v26  ;;  %v5000_v2 = vadd.f32 %v8995_v60, %v4961_v29  ;;  %v4244_v59 = vadd.f32 %v9375_v28, %v3882_v24 }
 0x2fc   : > { %v4474_v49 = vpop.f32.mrf.mxu1 }
 0x2fd   : > { %v4962_v54 = vadd.f32 %v8872_v45, %v4601_v15  ;;  %v4599_v37 = vadd.f32 %v4474_v49, %v4238_v33  ;;  %v4998_v0 = vadd.f32 %v8995_v60, %v4959_v63  ;;  %v5032_v45 = vmax.f32 %v5000_v2, 0.0  ;;  %v9376_v15 = vld [vmem:[#allocation18_spill] sm:$0xff] }
 0x2fe   : > { %v6837_v34 = vpop.f32.mrf.mxu1  ;;  %v4242_v33 = vadd.f32 %v9376_v15, %v3880_v41 }
 0x2ff   : > { %v5001_v18 = vadd.f32 %v8995_v60, %v4962_v54  ;;  %v4960_v8 = vadd.f32 %v8875_v27, %v4599_v37  ;;  %v4604_v50 = vadd.f32 %v6837_v34, %v8861_v12  ;;  %v5030_v49 = vmax.f32 %v4998_v0, 0.0  ;;  %v9019_v37 = vpop.f32.mrf.mxu0 }
 0x300   : > { %v4487_v29 = vpop.f32.mrf.mxu1 }
 0x301   : > { %v5033_v56 = vmax.f32 %v5001_v18, 0.0  ;;  %v4999_v26 = vadd.f32 %v8995_v60, %v4960_v8  ;;  %v4602_v1 = vadd.f32 %v4487_v29, %v9374_v17  ;;  %v4965_v20 = vadd.f32 %v8887_v23, %v4604_v50 }
 0x302   : > { %v6838_v63 = vpop.f32.mrf.mxu1 }
 0x303   : > { %v5063_v27 = vpack.c.bf16 %v5033_v56, %v5032_v45  ;;  %v5031_v54 = vmax.f32 %v4999_v26, 0.0  ;;  %v4963_v12 = vadd.f32 %v8893_v62, %v4602_v1  ;;  %v4605_v2 = vadd.f32 %v6838_v63, %v4244_v59  ;;  %v9377_v62 = vld [vmem:[#allocation15_spill] sm:$0xff]  ;;  %v9029_v56 = vpop.f32.mrf.mxu0 }
 0x304   : > { %v4490_v34 = vpop.f32.mrf.mxu1  ;;  %v5004_v29 = vadd.f32 %v8995_v60, %v4965_v20  ;;  %v3884_v45 = vadd.f32 %v8885_v61, %v9377_v62 }
 0x305   : > { %v5062_v18 = vpack.c.bf16 %v5031_v54, %v5030_v49  ;;  %v4603_v8 = vadd.f32 %v4490_v34, %v4242_v33  ;;  %v4966_v23 = vadd.f32 %v8905_v21, %v4605_v2  ;;  %v5002_v24 = vadd.f32 %v8995_v60, %v4963_v12  ;;  %v9037_v15 = vpop.f32.mrf.mxu0  ;;  %v9378_v54 = vld [vmem:[#allocation16_spill] sm:$0xff] }
 0x306   : > { %v6841_v50 = vpop.f32.mrf.mxu1  ;;  %v5036_v20 = vmax.f32 %v5004_v29, 0.0 }
 0x307   : > { %v4964_v41 = vadd.f32 %v8911_v38, %v4603_v8  ;;  %v4608_v0 = vadd.f32 %v6841_v50, %v8879_v11  ;;  %6899 = vmatprep.mubr.msk.bf16.mxu1 %vm1956_vm9, %v5062_v18  ;;  %v5005_v26 = vadd.f32 %v8995_v60, %v4966_v23  ;;  %v5034_v59 = vmax.f32 %v5002_v24, 0.0  ;;  %v9379_v8 = vld [vmem:[#allocation10_spill] sm:$0xff] }
 0x308   : > { %v4503_v17 = vpop.f32.mrf.mxu1  ;;  %6900 = vmatmul.mubr.msk.bf16.vlgmr.msra.gmra.mxu1 %vm1956_vm9, %v5063_v27  ;;  %v4246_v27 = vadd.f32 %v9378_v54, %v3884_v45  ;;  %v3888_v29 = vadd.f32 %v8903_v7, %v9379_v8  ;;  %v9382_v8 = vld [vmem:[#allocation11_spill] sm:$0xff] }
 0x309   : > { %v5003_v21 = vadd.f32 %v8995_v60, %v4964_v41  ;;  %v4969_v1 = vadd.f32 %v8923_v4, %v4608_v0  ;;  %v4606_v38 = vadd.f32 %v4503_v17, %v8883_v16  ;;  %v5037_v11 = vmax.f32 %v5005_v26, 0.0 }
 0x30a   : > { %v6842_v28 = vpop.f32.mrf.mxu1 }
 0x30b   : > { %v5035_v63 = vmax.f32 %v5003_v21, 0.0  ;;  %v4609_v61 = vadd.f32 %v6842_v28, %v8890_v39  ;;  %v5065_v33 = vpack.c.bf16 %v5037_v11, %v5036_v20  ;;  %v4967_v49 = vadd.f32 %v8929_v19, %v4606_v38  ;;  %v9048_v19 = vpop.f32.mrf.mxu0 }
 0x30c   : > { %v4506_v12 = vpop.f32.mrf.mxu1  ;;  %v5008_v4 = vadd.f32 %v8995_v60, %v4969_v1  ;;  %v9380_v1 = vld [vmem:[#allocation20_spill] sm:$0xff] }
 0x30d   : > { %v5064_v2 = vpack.c.bf16 %v5035_v63, %v5034_v59  ;;  %v4970_v16 = vadd.f32 %v8939_v46, %v4609_v61  ;;  %v4607_v34 = vadd.f32 %v4506_v12, %v4246_v27  ;;  %v5006_v50 = vadd.f32 %v8995_v60, %v4967_v49 }
 0x30e   : > { %v6845_v18 = vpop.f32.mrf.mxu1  ;;  %v5040_v46 = vmax.f32 %v5008_v4, 0.0  ;;  %v4250_v38 = vadd.f32 %v9380_v1, %v3888_v29 }
 0x30f   : > { %v5009_v39 = vadd.f32 %v8995_v60, %v4970_v16  ;;  %v4612_v23 = vadd.f32 %v6845_v18, %v8897_v31  ;;  %6903 = vmatprep.mubr.msk.bf16.mxu1 %vm1956_vm9, %v5064_v2  ;;  %v4968_v24 = vadd.f32 %v8947_v13, %v4607_v34  ;;  %v6888_v13 = vpop.f32.mrf.mxu0  ;;  %v5038_v20 = vmax.f32 %v5006_v50, 0.0 }
 0x310   : > { %v4519_v41 = vpop.f32.mrf.mxu1  ;;  %6904 = vmatmul.mubr.msk.bf16.gmra.mxu1 %vm1956_vm9, %v5065_v33 }
 0x311   : > { %v5041_v0 = vmax.f32 %v5009_v39, 0.0  ;;  %v4973_v62 = vadd.f32 %v8957_v32, %v4612_v23  ;;  %v4610_v7 = vadd.f32 %v4519_v41, %v8901_v9  ;;  %v5007_v45 = vadd.f32 %v8995_v60, %v4968_v24  ;;  %v9381_v9 = vld [vmem:[#allocation19_spill] sm:$0xff]  ;;  %v4915_v12 = vpop.f32.mrf.mxu0 }
 0x312   : > { %v6846_v31 = vpop.f32.mrf.mxu1  ;;  %v3892_v61 = vadd.f32 %v8921_v22, %v9381_v9  ;;  %v9384_v9 = vld [vmem:[#allocation22_spill] sm:$0xff] }
 0x313   : > { %v5067_v26 = vpack.c.bf16 %v5041_v0, %v5040_v46  ;;  %v4971_v17 = vadd.f32 %v8965_v53, %v4610_v7  ;;  %v4613_v21 = vadd.f32 %v6846_v31, %v8908_v51  ;;  %v5039_v11 = vmax.f32 %v5007_v45, 0.0  ;;  %v6891_v50 = vpop.f32.mrf.mxu0 }
 0x314   : > { %v4522_v28 = vpop.f32.mrf.mxu1  ;;  %v5012_v59 = vadd.f32 %v8995_v60, %v4973_v62  ;;  %v4254_v29 = vadd.f32 %v9382_v8, %v3892_v61 }
 0x315   : > { %v4974_v32 = vadd.f32 %v8975_v40, %v4613_v21  ;;  %v4611_v63 = vadd.f32 %v4522_v28, %v4250_v38  ;;  %v5066_v33 = vpack.c.bf16 %v5039_v11, %v5038_v20  ;;  %v5010_v53 = vadd.f32 %v8995_v60, %v4971_v17 }
 0x316   : > { %v6849_v49 = vpop.f32.mrf.mxu1  ;;  %v5044_v4 = vmax.f32 %v5012_v59, 0.0 }
 0x317   : > { %v5013_v51 = vadd.f32 %v8995_v60, %v4974_v32  ;;  %v4972_v54 = vadd.f32 %v8987_v3, %v4611_v63  ;;  %v4616_v27 = vadd.f32 %v6849_v49, %v8915_v48  ;;  %6907 = vmatprep.mubr.msk.bf16.mxu1 %vm1956_vm9, %v5066_v33  ;;  %v5042_v3 = vmax.f32 %v5010_v53, 0.0 }
 0x318   : > { %v4535_v2 = vpop.f32.mrf.mxu1  ;;  %6908 = vmatmul.mubr.msk.bf16.gmra.mxu1 %vm1956_vm9, %v5067_v26 }
 0x319   : > { %v5045_v40 = vmax.f32 %v5013_v51, 0.0  ;;  %v5011_v16 = vadd.f32 %v8995_v60, %v4972_v54  ;;  %v4614_v22 = vadd.f32 %v4535_v2, %v8919_v42  ;;  %v4977_v34 = vadd.f32 %v8999_v44, %v4616_v27  ;;  %v9385_v54 = vld [vmem:[#allocation21_spill] sm:$0xff] }
 0x31a   : > { %v6850_v18 = vpop.f32.mrf.mxu1  ;;  %v3900_v27 = vadd.f32 %v8959_v6, %v9385_v54 }
 0x31b   : > { %v5069_v39 = vpack.c.bf16 %v5045_v40, %v5044_v4  ;;  %v5043_v48 = vmax.f32 %v5011_v16, 0.0  ;;  %v4975_v23 = vadd.f32 %v9011_v52, %v4614_v22  ;;  %v4617_v24 = vadd.f32 %v6850_v18, %v8926_v36  ;;  %v9383_v52 = vld [vmem:[#allocation12_spill] sm:$0xff]  ;;  %v4928_v36 = vpop.f32.mrf.mxu0 }
 0x31c   : > { %v4538_v41 = vpop.f32.mrf.mxu1  ;;  %v5016_v42 = vadd.f32 %v8995_v60, %v4977_v34  ;;  %v3896_v26 = vadd.f32 %v8941_v10, %v9383_v52 }
 0x31d   : > { %v5068_v46 = vpack.c.bf16 %v5043_v48, %v5042_v3  ;;  %v4615_v0 = vadd.f32 %v4538_v41, %v4254_v29  ;;  %v4978_v62 = vadd.f32 %v9019_v37, %v4617_v24  ;;  %v5014_v44 = vadd.f32 %v8995_v60, %v4975_v23  ;;  %v6892_v10 = vpop.f32.mrf.mxu0  ;;  %v9386_v48 = vld [vmem:[#allocation13_spill] sm:$0xff] }
 0x31e   : > { %v6853_v7 = vpop.f32.mrf.mxu1  ;;  %v4258_v61 = vadd.f32 %v9384_v9, %v3896_v26  ;;  %v4262_v23 = vadd.f32 %v9386_v48, %v3900_v27 }
 0x31f   : > { %v4976_v45 = vadd.f32 %v9029_v56, %v4615_v0  ;;  %v4620_v31 = vadd.f32 %v6853_v7, %v8933_v55  ;;  %6911 = vmatprep.mubr.msk.bf16.mxu1 %vm1956_vm9, %v5068_v46  ;;  %v5017_v17 = vadd.f32 %v8995_v60, %v4978_v62  ;;  %v5048_v56 = vmax.f32 %v5016_v42, 0.0  ;;  %v4931_v4 = vpop.f32.mrf.mxu0 }
 0x320   : > { %v4551_v21 = vpop.f32.mrf.mxu1  ;;  %6912 = vmatmul.mubr.msk.bf16.gmra.mxu1 %vm1956_vm9, %v5069_v39  ;;  %v5046_v11 = vmax.f32 %v5014_v44, 0.0 }
 0x321   : > { %v5015_v1 = vadd.f32 %v8995_v60, %v4976_v45  ;;  %v4981_v37 = vadd.f32 %v9037_v15, %v4620_v31  ;;  %v4618_v38 = vadd.f32 %v4551_v21, %v8937_v47  ;;  %v5049_v20 = vmax.f32 %v5017_v17, 0.0  ;;  %v6895_v29 = vpop.f32.mrf.mxu0 }
 0x322   : > { %v6854_v55 = vpop.f32.mrf.mxu1 }
 0x323   : > { %v5047_v28 = vmax.f32 %v5015_v1, 0.0  ;;  %v4621_v59 = vadd.f32 %v6854_v55, %v8944_v5  ;;  %v5071_v32 = vpack.c.bf16 %v5049_v20, %v5048_v56  ;;  %v4979_v63 = vadd.f32 %v9048_v19, %v4618_v38  ;;  %v4944_v7 = vpop.f32.mrf.mxu0  ;;  %v9388_v56 = vld [vmem:[#allocation24_spill] sm:$0xff] }
 0x324   : > { %v4554_v33 = vpop.f32.mrf.mxu1  ;;  %v5020_v15 = vadd.f32 %v8995_v60, %v4981_v37 }
 0x325   : > { %v5070_v49 = vpack.c.bf16 %v5047_v28, %v5046_v11  ;;  %v4982_v47 = vadd.f32 %v6888_v13, %v4621_v59  ;;  %v4619_v53 = vadd.f32 %v4554_v33, %v4258_v61  ;;  %v5018_v19 = vadd.f32 %v8995_v60, %v4979_v63  ;;  %v6896_v37 = vpop.f32.mrf.mxu0 }
 0x326   : > { %v6857_v51 = vpop.f32.mrf.mxu1  ;;  %v5052_v22 = vmax.f32 %v5020_v15, 0.0 }
 0x327   : > { %v5021_v2 = vadd.f32 %v8995_v60, %v4982_v47  ;;  %v4624_v5 = vadd.f32 %v6857_v51, %v8951_v43  ;;  %6915 = vmatprep.mubr.msk.bf16.mxu1 %vm1956_vm9, %v5070_v49  ;;  %v4980_v40 = vadd.f32 %v4915_v12, %v4619_v53  ;;  %v5050_v24 = vmax.f32 %v5018_v19, 0.0  ;;  %v4947_v61 = vpop.f32.mrf.mxu0 }
 0x328   : > { %v4567_v16 = vpop.f32.mrf.mxu1  ;;  %6916 = vmatmul.mubr.msk.bf16.gmra.mxu1 %vm1956_vm9, %v5071_v32 }
 0x329   : > { %v5053_v34 = vmax.f32 %v5021_v2, 0.0  ;;  %v4985_v18 = vadd.f32 %v6891_v50, %v4624_v5  ;;  %v4622_v13 = vadd.f32 %v4567_v16, %v8955_v58  ;;  %v5019_v6 = vadd.f32 %v8995_v60, %v4980_v40  ;;  %v9387_v58 = vld [vmem:[#allocation23_spill] sm:$0xff] }
 0x32a   : > { %v6858_v8 = vpop.f32.mrf.mxu1  ;;  %v3904_v42 = vadd.f32 %v8977_v14, %v9387_v58  ;;  %v6352_v5 = vld [vmem:[%s7419_s23 + $0x8] sm:$0xff]  }
 0x32b   : > { %v5073_v3 = vpack.c.bf16 %v5053_v34, %v5052_v22  ;;  %v4983_v43 = vadd.f32 %v4928_v36, %v4622_v13  ;;  %v4625_v39 = vadd.f32 %v6858_v8, %v8962_v25  ;;  %v5051_v12 = vmax.f32 %v5019_v6, 0.0 }
 0x32c   : > { %v4570_v41 = vpop.f32.mrf.mxu1  ;;  %v5024_v46 = vadd.f32 %v8995_v60, %v4985_v18  ;;  %v4266_v20 = vadd.f32 %v9388_v56, %v3904_v42  ;;  %v6294_v19 = vunpack.c.l.bf16 %v6352_v5  ;;  %v6295_v6 = vunpack.c.h.bf16 %v6352_v5 }
 0x32d   : > { %v4986_v50 = vadd.f32 %v6892_v10, %v4625_v39  ;;  %v4623_v0 = vadd.f32 %v4570_v41, %v4262_v23  ;;  %v5072_v62 = vpack.c.bf16 %v5051_v12, %v5050_v24  ;;  %v5022_v45 = vadd.f32 %v8995_v60, %v4983_v43  ;;  %v6353_v24 = vld [vmem:[%s7419_s23 + $0x10] sm:$0xff]  }
 0x32e   : > { %v6861_v44 = vpop.f32.mrf.mxu1  ;;  %v5056_v36 = vmax.f32 %v5024_v46, 0.0 }
 0x32f   : > { %v5025_v31 = vadd.f32 %v8995_v60, %v4986_v50  ;;  %v4984_v25 = vadd.f32 %v4931_v4, %v4623_v0  ;;  %v4628_v52 = vadd.f32 %v6861_v44, %v8969_v35  ;;  %6919 = vmatprep.mubr.msk.bf16.mxu1 %vm1956_vm9, %v5072_v62  ;;  %v5054_v55 = vmax.f32 %v5022_v45, 0.0  ;;  %v9127_v4 = vld [vmem:[%s9304_s6] ss:$0 sm:$0xff] }
 0x330   : > { %v4583_v26 = vpop.f32.mrf.mxu1  ;;  %6920 = vmatmul.mubr.msk.bf16.gmra.mxu1 %vm1956_vm9, %v5073_v3 }
 0x331   : > { %v5057_v17 = vmax.f32 %v5025_v31, 0.0  ;;  %v5023_v21 = vadd.f32 %v8995_v60, %v4984_v25  ;;  %v4626_v1 = vadd.f32 %v4583_v26, %v8973_v57  ;;  %v4989_v14 = vadd.f32 %v6895_v29, %v4628_v52  ;;  %v6354_v29 = vld [vmem:[%s7419_s23 + $0x18] sm:$0xff]  }
 0x332   : > { %v6862_v38 = vpop.f32.mrf.mxu1  ;;  %v6302_v50 = vunpack.c.l.bf16 %v6354_v29  ;;  %v6303_v52 = vunpack.c.h.bf16 %v6354_v29 }
 0x333   : > { %v5075_v11 = vpack.c.bf16 %v5057_v17, %v5056_v36  ;;  %v5055_v28 = vmax.f32 %v5023_v21, 0.0  ;;  %v4987_v35 = vadd.f32 %v4944_v7, %v4626_v1  ;;  %v4629_v59 = vadd.f32 %v6862_v38, %v8982_v30 }
 0x334   : > { %v4586_v10 = vpop.f32.mrf.mxu1  ;;  %v5028_v9 = vadd.f32 %v8995_v60, %v4989_v14  ;;  %v6298_v7 = vunpack.c.l.bf16 %v6353_v24  ;;  %v6299_v1 = vunpack.c.h.bf16 %v6353_v24  ;;  %v6356_v14 = vld [vmem:[%s7419_s23 + $0x28] sm:$0xff]  }
 0x335   : > { %v5074_v32 = vpack.c.bf16 %v5055_v28, %v5054_v55  ;;  %v4627_v63 = vadd.f32 %v4586_v10, %v4266_v20  ;;  %v4990_v57 = vadd.f32 %v6896_v37, %v4629_v59  ;;  %v5026_v33 = vadd.f32 %v8995_v60, %v4987_v35  ;;  %v6355_v55 = vld [vmem:[%s7419_s23 + $0x20] sm:$0xff]  }
 0x336   : > { %v5060_v30 = vmax.f32 %v5028_v9, 0.0 }
 0x337   : > { %v4988_v49 = vadd.f32 %v4947_v61, %v4627_v63  ;;  %6923 = vmatprep.mubr.msk.bf16.mxu1 %vm1956_vm9, %v5074_v32  ;;  %v5029_v15 = vadd.f32 %v8995_v60, %v4990_v57  ;;  %v5058_v51 = vmax.f32 %v5026_v33, 0.0  ;;  %v6306_v32 = vunpack.c.l.bf16 %v6355_v55 }
 0x338   : > { %6924 = vmatmul.mubr.msk.bf16.gmra.mxu1 %vm1956_vm9, %v5075_v11  ;;  %v6310_v11 = vunpack.c.l.bf16 %v6356_v14  ;;  %v6311_v33 = vunpack.c.h.bf16 %v6356_v14 }
 0x339   : > { %v5027_v47 = vadd.f32 %v8995_v60, %v4988_v49  ;;  %v5061_v53 = vmax.f32 %v5029_v15, 0.0  ;;  %v6289_v60 = vld [vmem:[%s7419_s23] sm:$0xff]   ;;  %v6358_v15 = vld [vmem:[%s7419_s23 + $0x38] sm:$0xff]  }
 0x33a   : > { %v6290_v22 = vunpack.c.l.bf16 %v6289_v60  ;;  %v6291_v48 = vunpack.c.h.bf16 %v6289_v60 }
 0x33b   : > { %v5059_v54 = vmax.f32 %v5027_v47, 0.0  ;;  %v5077_v27 = vpack.c.bf16 %v5061_v53, %v5060_v30 }
 0x33d   : > { %v5076_v2 = vpack.c.bf16 %v5059_v54, %v5058_v51  ;;  %v6307_v51 = vunpack.c.h.bf16 %v6355_v55  ;;  %v6361_v55 = vld [vmem:[%s7419_s23 + $0x50] sm:$0xff]  }
 0x33f   : > { %6927 = vmatprep.mubr.msk.bf16.mxu1 %vm1956_vm9, %v5076_v2 }
 0x340   : > { %6928 = vmatmul.mubr.msk.bf16.gmra.mxu1 %vm1956_vm9, %v5077_v27  ;;  %v6357_v27 = vld [vmem:[%s7419_s23 + $0x30] sm:$0xff]  }
 0x3c8   : > { %v6901_v40 = vpop.f32.mrf.mxu1 }
 0x3c9   : > { %v5246_v16 = vadd.f32 %v6901_v40, %v9127_v4 }
 0x3ca   : > { %v5237_v34 = vpop.f32.mrf.mxu1 }
 0x3cb   : > { %v5366_v18 = vadd.f32 %v6294_v19, %v5246_v16  ;;  %v5238_v13 = vadd.f32 %v9127_v4, %v5237_v34  ;;  %v6318_v19 = vunpack.c.l.bf16 %v6358_v15 }
 0x3cc   : > { %v6902_v8 = vpop.f32.mrf.mxu1 }
 0x3cd   : > { %v5398_v3 = vmax.f32 %v5366_v18, 0.0  ;;  %v5364_v43 = vadd.f32 %v6290_v22, %v5238_v13  ;;  %v5249_v39 = vadd.f32 %v6902_v8, %v9127_v4  ;;  %v6314_v18 = vunpack.c.l.bf16 %v6357_v27 }
 0x3ce   : > { %v5240_v23 = vpop.f32.mrf.mxu1 }
 0x3cf   : > { %5431 = vst.msk [vmem:[%s9136_s17 + $0x10] sm:$0xff] %vm452_vm0, %v5398_v3  ;;  %v5396_v12 = vmax.f32 %v5364_v43, 0.0  ;;  %v5367_v41 = vadd.f32 %v6295_v6, %v5249_v39  ;;  %v5241_v46 = vadd.f32 %v9127_v4, %v5240_v23  ;;  %v6319_v3 = vunpack.c.h.bf16 %v6358_v15  ;;  %v6360_v39 = vld [vmem:[%s7419_s23 + $0x48] sm:$0xff]  }
 0x3d0   : > { %v6905_v0 = vpop.f32.mrf.mxu1 }
 0x3d1   : > { %5429 = vst.msk [vmem:[%s9136_s17] sm:$0xff] %vm452_vm0, %v5396_v12  ;;  %v5399_v58 = vmax.f32 %v5367_v41, 0.0  ;;  %v5365_v42 = vadd.f32 %v6291_v48, %v5241_v46  ;;  %v5262_v62 = vadd.f32 %v6905_v0, %v9127_v4  ;;  %v6315_v12 = vunpack.c.h.bf16 %v6357_v27  ;;  %v6359_v46 = vld [vmem:[%s7419_s23 + $0x40] sm:$0xff]  }
 0x3d2   : > { %v5253_v44 = vpop.f32.mrf.mxu1 }
 0x3d3   : > { %5432 = vst.msk [vmem:[%s9136_s17 + $0x18] sm:$0xff] %vm452_vm0, %v5399_v58  ;;  %v5397_v45 = vmax.f32 %v5365_v42, 0.0  ;;  %v5370_v31 = vadd.f32 %v6302_v50, %v5262_v62  ;;  %v5254_v25 = vadd.f32 %v9127_v4, %v5253_v44  ;;  %v6326_v42 = vunpack.c.l.bf16 %v6360_v39 }
 0x3d4   : > { %v6906_v26 = vpop.f32.mrf.mxu1 }
 0x3d5   : > { %5430 = vst.msk [vmem:[%s9136_s17 + $0x8] sm:$0xff] %vm452_vm0, %v5397_v45  ;;  %v5402_v36 = vmax.f32 %v5370_v31, 0.0  ;;  %v5368_v17 = vadd.f32 %v6298_v7, %v5254_v25  ;;  %v5265_v21 = vadd.f32 %v6906_v26, %v9127_v4  ;;  %v6322_v31 = vunpack.c.l.bf16 %v6359_v46 }
 0x3d6   : > { %v5256_v37 = vpop.f32.mrf.mxu1 }
 0x3d7   : > { %5435 = vst.msk [vmem:[%s9136_s17 + $0x30] sm:$0xff] %vm452_vm0, %v5402_v36  ;;  %v5400_v38 = vmax.f32 %v5368_v17, 0.0  ;;  %v5371_v56 = vadd.f32 %v6303_v52, %v5265_v21  ;;  %v5257_v20 = vadd.f32 %v9127_v4, %v5256_v37  ;;  %v6327_v17 = vunpack.c.h.bf16 %v6360_v39 }
 0x3d8   : > { %v6909_v59 = vpop.f32.mrf.mxu1 }
 0x3d9   : > { %5433 = vst.msk [vmem:[%s9136_s17 + $0x20] sm:$0xff] %vm452_vm0, %v5400_v38  ;;  %v5403_v28 = vmax.f32 %v5371_v56, 0.0  ;;  %v5369_v35 = vadd.f32 %v6299_v1, %v5257_v20  ;;  %v5278_v10 = vadd.f32 %v6909_v59, %v9127_v4  ;;  %v6362_v1 = vld [vmem:[%s7419_s23 + $0x58] sm:$0xff]   ;;  %v6323_v56 = vunpack.c.h.bf16 %v6359_v46 }
 0x3da   : > { %v5269_v9 = vpop.f32.mrf.mxu1  ;;  %v6334_v59 = vunpack.c.l.bf16 %v6362_v1 }
 0x3db   : > { %5436 = vst.msk [vmem:[%s9136_s17 + $0x38] sm:$0xff] %vm452_vm0, %v5403_v28  ;;  %v5401_v63 = vmax.f32 %v5369_v35, 0.0  ;;  %v5374_v61 = vadd.f32 %v6310_v11, %v5278_v10  ;;  %v5270_v57 = vadd.f32 %v9127_v4, %v5269_v9 }
 0x3dc   : > { %v6910_v49 = vpop.f32.mrf.mxu1 }
 0x3dd   : > { %5434 = vst.msk [vmem:[%s9136_s17 + $0x28] sm:$0xff] %vm452_vm0, %v5401_v63  ;;  %v5406_v47 = vmax.f32 %v5374_v61, 0.0  ;;  %v5372_v30 = vadd.f32 %v6306_v32, %v5270_v57  ;;  %v5281_v53 = vadd.f32 %v6910_v49, %v9127_v4  ;;  %v6330_v61 = vunpack.c.l.bf16 %v6361_v55 }
 0x3de   : > { %v5272_v54 = vpop.f32.mrf.mxu1 }
 0x3df   : > { %5439 = vst.msk [vmem:[%s9136_s17 + $0x50] sm:$0xff] %vm452_vm0, %v5406_v47  ;;  %v5404_v2 = vmax.f32 %v5372_v30, 0.0  ;;  %v5375_v5 = vadd.f32 %v6311_v33, %v5281_v53  ;;  %v5273_v60 = vadd.f32 %v9127_v4, %v5272_v54  ;;  %v6335_v47 = vunpack.c.h.bf16 %v6362_v1  ;;  %v6364_v53 = vld [vmem:[%s7419_s23 + $0x68] sm:$0xff]  }
 0x3e0   : > { %v6913_v40 = vpop.f32.mrf.mxu1 }
 0x3e1   : > { %5437 = vst.msk [vmem:[%s9136_s17 + $0x40] sm:$0xff] %vm452_vm0, %v5404_v2  ;;  %v5407_v16 = vmax.f32 %v5375_v5, 0.0  ;;  %v5373_v22 = vadd.f32 %v6307_v51, %v5273_v60  ;;  %v5294_v34 = vadd.f32 %v6913_v40, %v9127_v4  ;;  %v6331_v2 = vunpack.c.h.bf16 %v6361_v55  ;;  %v6363_v60 = vld [vmem:[%s7419_s23 + $0x60] sm:$0xff]  }
 0x3e2   : > { %v5285_v13 = vpop.f32.mrf.mxu1 }
 0x3e3   : > { %5440 = vst.msk [vmem:[%s9136_s17 + $0x58] sm:$0xff] %vm452_vm0, %v5407_v16  ;;  %v5405_v6 = vmax.f32 %v5373_v22, 0.0  ;;  %v5378_v8 = vadd.f32 %v6318_v19, %v5294_v34  ;;  %v5286_v29 = vadd.f32 %v9127_v4, %v5285_v13  ;;  %v6342_v22 = vunpack.c.l.bf16 %v6364_v53 }
 0x3e4   : > { %v6914_v43 = vpop.f32.mrf.mxu1 }
 0x3e5   : > { %5438 = vst.msk [vmem:[%s9136_s17 + $0x48] sm:$0xff] %vm452_vm0, %v5405_v6  ;;  %v5410_v48 = vmax.f32 %v5378_v8, 0.0  ;;  %v5376_v23 = vadd.f32 %v6314_v18, %v5286_v29  ;;  %v5297_v24 = vadd.f32 %v6914_v43, %v9127_v4  ;;  %v6338_v8 = vunpack.c.l.bf16 %v6363_v60 }
 0x3e6   : > { %v5288_v41 = vpop.f32.mrf.mxu1 }
 0x3e7   : > { %5443 = vst.msk [vmem:[%s9136_s17 + $0x70] sm:$0xff] %vm452_vm0, %v5410_v48  ;;  %v5408_v50 = vmax.f32 %v5376_v23, 0.0  ;;  %v5379_v0 = vadd.f32 %v6319_v3, %v5297_v24  ;;  %v5289_v58 = vadd.f32 %v9127_v4, %v5288_v41  ;;  %v6343_v48 = vunpack.c.h.bf16 %v6364_v53  ;;  %v6366_v24 = vld [vmem:[%s7419_s23 + $0x78] sm:$0xff]  }
 0x3e8   : > { %v6917_v62 = vpop.f32.mrf.mxu1 }
 0x3e9   : > { %5441 = vst.msk [vmem:[%s9136_s17 + $0x60] sm:$0xff] %vm452_vm0, %v5408_v50  ;;  %v5411_v7 = vmax.f32 %v5379_v0, 0.0  ;;  %v5377_v44 = vadd.f32 %v6315_v12, %v5289_v58  ;;  %v5310_v45 = vadd.f32 %v6917_v62, %v9127_v4  ;;  %v6339_v50 = vunpack.c.h.bf16 %v6363_v60  ;;  %v6365_v58 = vld [vmem:[%s7419_s23 + $0x70] sm:$0xff]   ;;  %s6287_s23 = sshll.u32 %s7274_s27, 12  ;;  %s5462_s27 = scalar_lea.sflag [#allocation5], %s7415_s9 }
 0x3ea   : > { %v5301_v25 = vpop.f32.mrf.mxu1  ;;  %v6347_v55 = vunpack.c.h.bf16 %v6365_v58  ;;  %s9244_s30 = scalar_lea.hbm %s9305_s7, %s6287_s23 }
 0x3eb   : > { %5444 = vst.msk [vmem:[%s9136_s17 + $0x78] sm:$0xff] %vm452_vm0, %v5411_v7  ;;  %v5409_v52 = vmax.f32 %v5377_v44, 0.0  ;;  %v5382_v26 = vadd.f32 %v6326_v42, %v5310_v45  ;;  %v5302_v36 = vadd.f32 %v9127_v4, %v5301_v25  ;;  %v6350_v44 = vunpack.c.l.bf16 %v6366_v24 }
 0x3ec   : > { %v6918_v21 = vpop.f32.mrf.mxu1 }
 0x3ed   : > { %5442 = vst.msk [vmem:[%s9136_s17 + $0x68] sm:$0xff] %vm452_vm0, %v5409_v52  ;;  %v5414_v14 = vmax.f32 %v5382_v26, 0.0  ;;  %v5380_v37 = vadd.f32 %v6322_v31, %v5302_v36  ;;  %v5313_v38 = vadd.f32 %v6918_v21, %v9127_v4  ;;  %v6346_v26 = vunpack.c.l.bf16 %v6365_v58 }
 0x3ee   : > { %v5304_v20 = vpop.f32.mrf.mxu1 }
 0x3ef   : > { %5447 = vst.msk [vmem:[%s9136_s17 + $0x90] sm:$0xff] %vm452_vm0, %v5414_v14  ;;  %v5412_v11 = vmax.f32 %v5380_v37, 0.0  ;;  %v5383_v28 = vadd.f32 %v6327_v17, %v5313_v38  ;;  %v5305_v35 = vadd.f32 %v9127_v4, %v5304_v20  ;;  %v6351_v14 = vunpack.c.h.bf16 %v6366_v24 }
 0x3f0   : > { %v6921_v10 = vpop.f32.mrf.mxu1 }
 0x3f1   : > { %5445 = vst.msk [vmem:[%s9136_s17 + $0x80] sm:$0xff] %vm452_vm0, %v5412_v11  ;;  %v5415_v32 = vmax.f32 %v5383_v28, 0.0  ;;  %v5381_v63 = vadd.f32 %v6323_v56, %v5305_v35  ;;  %v5326_v9 = vadd.f32 %v6921_v10, %v9127_v4 }
 0x3f2   : > { %v5317_v57 = vpop.f32.mrf.mxu1 }
 0x3f3   : > { %5448 = vst.msk [vmem:[%s9136_s17 + $0x98] sm:$0xff] %vm452_vm0, %v5415_v32  ;;  %v5413_v33 = vmax.f32 %v5381_v63, 0.0  ;;  %v5386_v49 = vadd.f32 %v6334_v59, %v5326_v9  ;;  %v5318_v15 = vadd.f32 %v9127_v4, %v5317_v57 }
 0x3f4   : > { %v6922_v30 = vpop.f32.mrf.mxu1 }
 0x3f5   : > { %5446 = vst.msk [vmem:[%s9136_s17 + $0x88] sm:$0xff] %vm452_vm0, %v5413_v33  ;;  %v5418_v51 = vmax.f32 %v5386_v49, 0.0  ;;  %v5384_v54 = vadd.f32 %v6330_v61, %v5318_v15  ;;  %v5329_v27 = vadd.f32 %v6922_v30, %v9127_v4 }
 0x3f6   : > { %v5320_v5 = vpop.f32.mrf.mxu1 }
 0x3f7   : > { %5451 = vst.msk [vmem:[%s9136_s17 + $0xb0] sm:$0xff] %vm452_vm0, %v5418_v51  ;;  %v5416_v19 = vmax.f32 %v5384_v54, 0.0  ;;  %v5387_v40 = vadd.f32 %v6335_v47, %v5329_v27  ;;  %v5321_v16 = vadd.f32 %v9127_v4, %v5320_v5 }
 0x3f8   : > { %v6925_v34 = vpop.f32.mrf.mxu1 }
 0x3f9   : > { %5449 = vst.msk [vmem:[%s9136_s17 + $0xa0] sm:$0xff] %vm452_vm0, %v5416_v19  ;;  %v5419_v18 = vmax.f32 %v5387_v40, 0.0  ;;  %v5385_v13 = vadd.f32 %v6331_v2, %v5321_v16  ;;  %v5342_v6 = vadd.f32 %v6925_v34, %v9127_v4 }
 0x3fa   : > { %v5333_v29 = vpop.f32.mrf.mxu1 }
 0x3fb   : > { %5452 = vst.msk [vmem:[%s9136_s17 + $0xb8] sm:$0xff] %vm452_vm0, %v5419_v18  ;;  %v5417_v3 = vmax.f32 %v5385_v13, 0.0  ;;  %v5390_v43 = vadd.f32 %v6342_v22, %v5342_v6  ;;  %v5334_v39 = vadd.f32 %v9127_v4, %v5333_v29 }
 0x3fc   : > { %v6926_v23 = vpop.f32.mrf.mxu1 }
 0x3fd   : > { %5450 = vst.msk [vmem:[%s9136_s17 + $0xa8] sm:$0xff] %vm452_vm0, %v5417_v3  ;;  %v5422_v12 = vmax.f32 %v5390_v43, 0.0  ;;  %v5388_v41 = vadd.f32 %v6338_v8, %v5334_v39  ;;  %v5345_v46 = vadd.f32 %v6926_v23, %v9127_v4 }
 0x3fe   : > { %v5336_v0 = vpop.f32.mrf.mxu1 }
 0x3ff   : > { %5455 = vst.msk [vmem:[%s9136_s17 + $0xd0] sm:$0xff] %vm452_vm0, %v5422_v12  ;;  %v5420_v42 = vmax.f32 %v5388_v41, 0.0  ;;  %v5391_v62 = vadd.f32 %v6343_v48, %v5345_v46  ;;  %v5337_v7 = vadd.f32 %v9127_v4, %v5336_v0 }
 0x400   : > { %v6929_v45 = vpop.f32.mrf.mxu1 }
 0x401   : > { %5453 = vst.msk [vmem:[%s9136_s17 + $0xc0] sm:$0xff] %vm452_vm0, %v5420_v42  ;;  %v5423_v31 = vmax.f32 %v5391_v62, 0.0  ;;  %v5389_v25 = vadd.f32 %v6339_v50, %v5337_v7  ;;  %v5358_v52 = vadd.f32 %v6929_v45, %v9127_v4 }
 0x402   : > { %v5349_v36 = vpop.f32.mrf.mxu1 }
 0x403   : > { %5456 = vst.msk [vmem:[%s9136_s17 + $0xd8] sm:$0xff] %vm452_vm0, %v5423_v31  ;;  %v5421_v17 = vmax.f32 %v5389_v25, 0.0  ;;  %v5394_v21 = vadd.f32 %v6350_v44, %v5358_v52  ;;  %v5350_v1 = vadd.f32 %v9127_v4, %v5349_v36 }
 0x404   : > { %v6930_v37 = vpop.f32.mrf.mxu1 }
 0x405   : > { %5454 = vst.msk [vmem:[%s9136_s17 + $0xc8] sm:$0xff] %vm452_vm0, %v5421_v17  ;;  %v5426_v38 = vmax.f32 %v5394_v21, 0.0  ;;  %v5392_v56 = vadd.f32 %v6346_v26, %v5350_v1  ;;  %v5361_v20 = vadd.f32 %v6930_v37, %v9127_v4 }
 0x406   : > { %v5352_v11 = vpop.f32.mrf.mxu1 }
 0x407   : > { %5459 = vst.msk [vmem:[%s9136_s17 + $0xf0] sm:$0xff] %vm452_vm0, %v5426_v38  ;;  %v5424_v28 = vmax.f32 %v5392_v56, 0.0  ;;  %v5395_v35 = vadd.f32 %v6351_v14, %v5361_v20  ;;  %v5353_v59 = vadd.f32 %v9127_v4, %v5352_v11 }
 0x409   : > { %5457 = vst.msk [vmem:[%s9136_s17 + $0xe0] sm:$0xff] %vm452_vm0, %v5424_v28  ;;  %v5427_v10 = vmax.f32 %v5395_v35, 0.0  ;;  %v5393_v32 = vadd.f32 %v6347_v55, %v5353_v59 }
 0x40b   : > { %5460 = vst.msk [vmem:[%s9136_s17 + $0xf8] sm:$0xff] %vm452_vm0, %v5427_v10  ;;  %v5425_v63 = vmax.f32 %v5393_v32, 0.0 }
 0x40d   : > { %5458 = vst.msk [vmem:[%s9136_s17 + $0xe8] sm:$0xff] %vm452_vm0, %v5425_v63 }
 0x40e   : > { %7215 = shalt.err (!%p7212_p6)
}
 0x40f   : > { %s7216_s20 = scalar_lea.hbm %s9244_s30, 4096  ;;  %s7220_s17 = scalar_lea.hbm %s9305_s7, 8192 }
 0x410   : > { %p7217_p7 = scmp.ne.s32.totalorder %s9244_s30, %s7216_s20  ;;  %p7221_p13 = scmp.lt.s32.totalorder %s9244_s30, %s9305_s7 }
 0x411   : > { %p7222_p2 = scmp.lt.s32.totalorder %s7220_s17, %s7216_s20 }
 0x412   : > { %p7218_p10 = pnand %p7217_p7, %p7382_p9 }
 0x413   : > { %p7223_p8 = por %p7222_p2, %p7221_p13 }
 0x414   : > { %p7219_p4 = pneg %p7218_p10 }
 0x416   : > { %p7224_p12 = pnand %p7223_p8, %p7219_p4 }
 0x418   : > { %7227 = shalt.err (!%p7224_p12)
}
 0x419   : > { %s7289_s22 = smov 128   ;;  %s7290_s8 = smov 8  }
 0x41a   : > { %6946 = dma.vmem_to_hbm [thread:$0]  (%p7382_p9), %s9246_s19, 4096, %s9244_s30, %s5462_s27, %s7289_s22, %s7289_s22, %s7290_s8  }
 0x41b PF: > { %s5493_s10 = sand.u32 1, %s7262_s24   ;;  %p9389_p0 = scmp.ge.s32.totalorder %s7282_s29, 2 }
 0x41c   : > { %s5494_s13 = scalar_lea.sflag [#allocation5], %s5493_s10 }
 0x41d   : > { %p6953_p1 = pnand %p9389_p0, %p7389_p11 }
 0x41f   : > { %p6954_p3 = pneg %p6953_p1 }
 0x421   : > { %7257 = dma.done.wait (%p6954_p3), %s5494_s13, 4096  }
 0x422   : > { %7259 = vsyncadd (%p6954_p3), %s5494_s13, 4294963200  ;;  %s23_s29 = sadd.s32 1, %s7282_s29   ;;  %s9390_s14 = sld [smem:[#allocation9_spill]] }
 0x423   : > { %p20_p5 = scmp.ge.s32.totalorder %s23_s29, 4   ;;  %s9391_s24 = smov %s7266_s25 }
 0x424   : > { %s9392_s25 = smov %s7270_s26  ;;  %s9393_s26 = smov %s7387_s15 }
 0x425   : > { %s9394_s27 = smov %s7278_s28  ;;  %22 = sbr.rel (!%p20_p5) target bundleno = 6 (0x6), region = 119 }
 0x428   : > { %s9395_s28 = smov %s9390_s14 }
 0x42a   :  { %5499 = vsyncpa [#allocation4], 1 }
 0x42b   :  { %5501 = vsyncpa [#allocation4 + $0x1], 1 }
 0x42c   :  { %5502 = vsyncpa [#allocation5], 1 }
 0x42d   :  { %5504 = vsyncpa [#allocation5 + $0x1], 1 }

</bundles_post_ra>
